<compile_context>
chip_gen: v5e
topology: v5e:2x2
jax: 0.10.0
libtpu: 0.0.40
codegen_flags: <defaults>
</compile_context>

<pallas_src>
import functools

import numpy as np
import jax
import jax.numpy as jnp
from jax.experimental import pallas as pl
from jax.experimental.pallas import tpu as pltpu


# 32 MiB is safe for v7x (64 MiB physical VMEM); on v5e/v6e (128 MiB) this can be raised.
_VMEM_LIMIT = 32 * 1024 * 1024
_LN_EPS = 1e-5                   # nn.LayerNorm default (reference uses norm_layer=nn.LayerNorm)


# ----------------------- sincos position embeddings (identical to reference) --------

def get_1d_sincos_pos_embed_from_grid(embed_dim, pos):
    assert embed_dim % 2 == 0
    omega = np.arange(embed_dim // 2, dtype=np.float64)
    omega /= embed_dim / 2.0
    omega = 1.0 / 10000 ** omega
    pos = pos.reshape(-1)
    out = np.einsum('m,d->md', pos, omega)
    emb_sin = np.sin(out)
    emb_cos = np.cos(out)
    return np.concatenate([emb_sin, emb_cos], axis=1)


def get_2d_sincos_pos_embed_from_grid(embed_dim, grid):
    assert embed_dim % 2 == 0
    emb_h = get_1d_sincos_pos_embed_from_grid(embed_dim // 2, grid[0])
    emb_w = get_1d_sincos_pos_embed_from_grid(embed_dim // 2, grid[1])
    return np.concatenate([emb_h, emb_w], axis=1)


def get_2d_sincos_pos_embed(embed_dim, grid_size, cls_token=False):
    grid_h = np.arange(grid_size, dtype=np.float32)
    grid_w = np.arange(grid_size, dtype=np.float32)
    grid = np.meshgrid(grid_w, grid_h)
    grid = np.stack(grid, axis=0)
    grid = grid.reshape([2, 1, grid_size, grid_size])
    pos_embed = get_2d_sincos_pos_embed_from_grid(embed_dim, grid)
    if cls_token:
        pos_embed = np.concatenate([np.zeros([1, embed_dim]), pos_embed], axis=0)
    return pos_embed


# ----------------------------------- small helpers -----------------------------------

def _round_up(x, m):
    return (x + m - 1) // m * m


def _pad_to(a, shape):
    pads = [(0, s - d) for d, s in zip(a.shape, shape)]
    if all(p == (0, 0) for p in pads):
        return a
    return jnp.pad(a, pads)


def _tiles(M, N):
    """Lane-dense, 8/128-aligned tiles; prefer >=2 row-tiles so the parallel axis can
    feed both v7x TensorCores."""
    tm = min(256, _round_up(M, 8))
    Mp = _round_up(M, tm)
    if Mp // tm == 1 and tm > 8:
        tm_half = _round_up((M + 1) // 2, 8)
        if tm_half < tm:
            tm = tm_half
            Mp = _round_up(M, tm)
    Np = _round_up(N, 128)
    tn = Np
    for c in (512, 384, 256, 128):
        if Np % c == 0:
            tn = c
            break
    return tm, tn, Mp, Np


def _gelu_exact(y):
    """Exact (erf) GELU. erf via Abramowitz & Stegun 7.1.26 (max abs err ~1.5e-7);
    built from exp/mul/add only so it lowers cleanly in Mosaic."""
    z = y * 0.7071067811865476
    az = jnp.abs(z)
    t = 1.0 / (1.0 + 0.3275911 * az)
    poly = t * (0.254829592 + t * (-0.284496736 + t * (1.421413741
            + t * (-1.453152027 + t * 1.061405429))))
    erf_abs = 1.0 - poly * jnp.exp(-az * az)
    erf_z = jnp.where(z >= 0, erf_abs, -erf_abs)
    return 0.5 * y * (1.0 + erf_z)


# ----------------------------------- Pallas kernels ---------------------------------

def _linear_kernel(x_ref, w_ref, b_ref, o_ref, *, act):
    y = jnp.dot(x_ref[...], w_ref[...], preferred_element_type=jnp.float32) + b_ref[...]
    if act == 'gelu':
        y = _gelu_exact(y)
    o_ref[...] = y.astype(o_ref.dtype)


def _linear_res_kernel(x_ref, w_ref, b_ref, res_ref, o_ref, *, act):
    y = jnp.dot(x_ref[...], w_ref[...], preferred_element_type=jnp.float32) + b_ref[...]
    if act == 'gelu':
        y = _gelu_exact(y)
    o_ref[...] = (y + res_ref[...].astype(jnp.float32)).astype(o_ref.dtype)


def linear_pallas(x2d, w, b, act=None, residual=None, out_dtype=jnp.float32):
    """(M,K) @ (K,N) + (N,) [+ residual], M/N-tiled, bf16 MXU inputs, f32 accumulation."""
    M, K = x2d.shape
    N = w.shape[1]
    tm, tn, Mp, Np = _tiles(M, N)
    xp = _pad_to(x2d.astype(jnp.bfloat16), (Mp, K))
    wp = _pad_to(w.astype(jnp.bfloat16), (K, Np))
    bp = _pad_to(b.reshape(1, N).astype(jnp.float32), (1, Np))
    in_specs = [pl.BlockSpec((tm, K), lambda i, j: (i, 0)),
                pl.BlockSpec((K, tn), lambda i, j: (0, j)),
                pl.BlockSpec((1, tn), lambda i, j: (0, j))]
    args = [xp, wp, bp]
    if residual is not None:
        rp = _pad_to(residual.astype(jnp.float32), (Mp, Np))
        in_specs.append(pl.BlockSpec((tm, tn), lambda i, j: (i, j)))
        args.append(rp)
        kern = functools.partial(_linear_res_kernel, act=act)
    else:
        kern = functools.partial(_linear_kernel, act=act)
    out = pl.pallas_call(
        kern,
        out_shape=jax.ShapeDtypeStruct((Mp, Np), out_dtype),
        grid=(Mp // tm, Np // tn),
        in_specs=in_specs,
        out_specs=pl.BlockSpec((tm, tn), lambda i, j: (i, j)),
        compiler_params=pltpu.CompilerParams(
            dimension_semantics=("parallel", "parallel"),
            vmem_limit_bytes=_VMEM_LIMIT),
    )(*args)
    return out[:M, :N]


def _ln_linear_kernel(x_ref, g_ref, bb_ref, w_ref, b_ref, o_ref, xn_ref, *, eps, act):
    # LayerNorm is computed once per row-tile (j == 0) into the bf16 VMEM scratch and
    # reused for every N-tile; the j axis is "arbitrary" so a core never starts at j > 0.
    @pl.when(pl.program_id(1) == 0)
    def _():
        x = x_ref[...].astype(jnp.float32)
        mu = jnp.mean(x, axis=-1, keepdims=True)
        var = jnp.mean(jnp.square(x - mu), axis=-1, keepdims=True)
        xn = (x - mu) * jax.lax.rsqrt(var + eps) * g_ref[...] + bb_ref[...]
        xn_ref[...] = xn.astype(jnp.bfloat16)
    y = jnp.dot(xn_ref[...], w_ref[...], preferred_element_type=jnp.float32) + b_ref[...]
    if act == 'gelu':
        y = _gelu_exact(y)
    o_ref[...] = y.astype(o_ref.dtype)


def ln_linear_pallas(x2d, gamma, beta, w, b, act=None, out_dtype=jnp.float32, eps=_LN_EPS):
    """Fused LayerNorm(K) + (M,K)@(K,N)+bias (+ optional exact GELU). M/N-tiled."""
    M, K = x2d.shape
    N = w.shape[1]
    tm, tn, Mp, Np = _tiles(M, N)
    xp = _pad_to(x2d.astype(jnp.float32), (Mp, K))      # f32 rows for exact LN stats
    wp = _pad_to(w.astype(jnp.bfloat16), (K, Np))
    bp = _pad_to(b.reshape(1, N).astype(jnp.float32), (1, Np))
    gp = gamma.reshape(1, K).astype(jnp.float32)
    btp = beta.reshape(1, K).astype(jnp.float32)
    out = pl.pallas_call(
        functools.partial(_ln_linear_kernel, eps=eps, act=act),
        out_shape=jax.ShapeDtypeStruct((Mp, Np), out_dtype),
        grid=(Mp // tm, Np // tn),
        in_specs=[pl.BlockSpec((tm, K), lambda i, j: (i, 0)),
                  pl.BlockSpec((1, K), lambda i, j: (0, 0)),
                  pl.BlockSpec((1, K), lambda i, j: (0, 0)),
                  pl.BlockSpec((K, tn), lambda i, j: (0, j)),
                  pl.BlockSpec((1, tn), lambda i, j: (0, j))],
        out_specs=pl.BlockSpec((tm, tn), lambda i, j: (i, j)),
        scratch_shapes=[pltpu.VMEM((tm, K), jnp.bfloat16)],
        compiler_params=pltpu.CompilerParams(
            dimension_semantics=("parallel", "arbitrary"),
            vmem_limit_bytes=_VMEM_LIMIT),
    )(xp, gp, btp, wp, bp)
    return out[:M, :N]


def linear3d(x, w, b, act=None, residual=None, out_dtype=jnp.float32):
    B, S, D = x.shape
    res2d = None if residual is None else residual.reshape(B * S, w.shape[1])
    return linear_pallas(x.reshape(B * S, D), w, b, act=act, residual=res2d,
                         out_dtype=out_dtype).reshape(B, S, w.shape[1])


def ln_linear3d(x, gamma, beta, w, b, act=None, out_dtype=jnp.float32):
    B, S, D = x.shape
    return ln_linear_pallas(x.reshape(B * S, D), gamma, beta, w, b, act=act,
                            out_dtype=out_dtype).reshape(B, S, w.shape[1])


def _attn_kernel(qkv_ref, o_ref, *, num_heads, head_dim, scale):
    D = num_heads * head_dim
    qkv = qkv_ref[0]                                        # (S, 3D) bf16
    outs = []
    for h in range(num_heads):                              # static, unrolled
        q = qkv[:, h * head_dim:(h + 1) * head_dim] * scale         # scale on q (S*Dh elems)
        k = qkv[:, D + h * head_dim:D + (h + 1) * head_dim]
        v = qkv[:, 2 * D + h * head_dim:2 * D + (h + 1) * head_dim]
        s = jax.lax.dot_general(q, k, (((1,), (1,)), ((), ())),
                                preferred_element_type=jnp.float32)  # (S, S), no transpose
        s = s - jnp.max(s, axis=-1, keepdims=True)
        p = jnp.exp(s)
        p = p * pl.reciprocal(jnp.sum(p, axis=-1, keepdims=True), approx=True)
        outs.append(jnp.dot(p.astype(jnp.bfloat16), v,
                            preferred_element_type=jnp.float32))
    # lane-dense (S, D) store -> output lands directly in (B, S, D) layout, no transposes.
    o_ref[0] = jnp.concatenate(outs, axis=-1).astype(o_ref.dtype)


def attention_pallas(qkv, num_heads, scale):
    """qkv: (B, S, 3D) bf16 with column layout [q|k|v], each [head][Dh] (timm order).
    One grid step per batch element; all heads processed in-kernel."""
    B, S, threeD = qkv.shape
    D = threeD // 3
    Dh = D // num_heads
    # TODO(synk): for long sequences switch to a KV-tiled online-softmax form so VMEM stays
    # O(S*Dh) per head instead of O(S^2).
    return pl.pallas_call(
        functools.partial(_attn_kernel, num_heads=num_heads, head_dim=Dh, scale=scale),
        out_shape=jax.ShapeDtypeStruct((B, S, D), jnp.bfloat16),
        grid=(B,),
        in_specs=[pl.BlockSpec((1, S, threeD), lambda b: (b, 0, 0))],
        out_specs=pl.BlockSpec((1, S, D), lambda b: (b, 0, 0)),
        compiler_params=pltpu.CompilerParams(
            dimension_semantics=("parallel",),
            vmem_limit_bytes=_VMEM_LIMIT),
    )(qkv)


def _masked_mse_kernel(pred_ref, tgt_ref, mask_ref, o_ref, acc_ref, *, inv_p):
    @pl.when(pl.program_id(0) == 0)
    def _():
        acc_ref[...] = jnp.zeros_like(acc_ref)
    d = pred_ref[...] - tgt_ref[...]
    # (1, P) lane-vector partial; cross-lane reduce + 1/P scale only at the end.
    acc_ref[...] += jnp.sum(d * d * mask_ref[...], axis=0, keepdims=True)
    @pl.when(pl.program_id(0) == pl.num_programs(0) - 1)
    def _():
        o_ref[...] = jnp.sum(acc_ref[...], axis=-1, keepdims=True) * inv_p


def masked_mse_sum_pallas(pred, target, mask):
    """Returns sum_{n,l} mean_p((pred-target)^2) * mask  as a scalar (row-tiled reduction)."""
    N, L, P = pred.shape
    R = N * L
    tr = min(512, _round_up(R, 8))
    Rp = _round_up(R, tr)
    predp = _pad_to(pred.reshape(R, P).astype(jnp.float32), (Rp, P))
    tgtp = _pad_to(target.reshape(R, P).astype(jnp.float32), (Rp, P))
    maskp = _pad_to(mask.reshape(R, 1).astype(jnp.float32), (Rp, 1))
    out = pl.pallas_call(
        functools.partial(_masked_mse_kernel, inv_p=1.0 / P),
        out_shape=jax.ShapeDtypeStruct((1, 1), jnp.float32),
        grid=(Rp // tr,),
        in_specs=[pl.BlockSpec((tr, P), lambda i: (i, 0)),
                  pl.BlockSpec((tr, P), lambda i: (i, 0)),
                  pl.BlockSpec((tr, 1), lambda i: (i, 0))],
        out_specs=pl.BlockSpec((1, 1), lambda i: (0, 0)),
        scratch_shapes=[pltpu.VMEM((1, P), jnp.float32)],
        compiler_params=pltpu.CompilerParams(
            dimension_semantics=("arbitrary",),
            vmem_limit_bytes=_VMEM_LIMIT),
    )(predp, tgtp, maskp)
    return out[0, 0]


# ----------------------------------- model pieces -----------------------------------

def patch_embed_pallas(x, w_flat, b, patch_size):
    """Conv(kernel=stride=p) == patchify (c,i,j ordering) + matmul (done in Pallas)."""
    N, C, H, W = x.shape
    p = patch_size
    h, wg = H // p, W // p
    xp = x.reshape(N, C, h, p, wg, p)
    xp = jnp.transpose(xp, (0, 2, 4, 1, 3, 5)).reshape(N, h * wg, C * p * p)
    E = w_flat.shape[1]
    out = linear_pallas(xp.reshape(N * h * wg, C * p * p), w_flat, b)
    return out.reshape(N, h * wg, E)


def patchify(imgs, p):
    N, C, H, W = imgs.shape
    h = w = H // p
    x = imgs.reshape(N, C, h, p, w, p)
    x = jnp.einsum('nchpwq->nhwpqc', x)
    return x.reshape(N, h * w, p * p * C)


def block_forward(x, bp, num_heads):
    """Pre-norm ViT block (timm Block, qkv_bias=True, exact-GELU MLP).
    LayerNorms fused into qkv / fc1; GELU fused into fc1; residual adds fused into
    proj / fc2; attention consumes the fused (B,S,3D) qkv directly (no transposes)."""
    B, S, D = x.shape
    Dh = D // num_heads
    scale = Dh ** -0.5

    qkv = ln_linear3d(x, bp['norm1_w'], bp['norm1_b'], bp['qkv_w'], bp['qkv_b'],
                      out_dtype=jnp.bfloat16)                         # (B,S,3D) bf16
    o = attention_pallas(qkv, num_heads, scale)                       # (B,S,D) bf16
    x = linear3d(o, bp['proj_w'], bp['proj_b'], residual=x)           # f32, residual fused

    h = ln_linear3d(x, bp['norm2_w'], bp['norm2_b'], bp['fc1_w'], bp['fc1_b'],
                    act='gelu', out_dtype=jnp.bfloat16)               # (B,S,4D) bf16
    x = linear3d(h, bp['fc2_w'], bp['fc2_b'], residual=x)             # f32, residual fused
    return x


# ------------------ host-side bg-masking indices (data-dependent shapes) ------------

def _compute_bg_indices(bg_mask, grid_size, bg_masking_type):
    """Replicates Mae4BgGen.bg_masking index logic on host so len_keep (a data-dependent
    shape) is a concrete Python int and the rest of the forward can be jitted."""
    bm = np.asarray(jax.device_get(bg_mask)).astype(np.float64)       # (N,1,H,W)
    lo, hi = bm.min(), bm.max()
    denom = hi - lo
    if denom == 0:
        denom = 1.0   # TODO(synk): reference divides by zero (NaN) for a constant bg_mask
    bm = (bm - lo) / denom
    bm = (bm > 0.5).astype(np.float64)
    H, W = bg_mask.shape[2], bg_mask.shape[3]
    h, w = grid_size
    row_idx = (np.arange(h) * H) // h                                  # F.interpolate nearest
    col_idx = (np.arange(w) * W) // w
    bm = bm[:, 0][:, row_idx][:, :, col_idx].reshape(bm.shape[0], h * w)

    inv = np.abs(1.0 - bm)
    ids_shuffle = np.argsort(inv, axis=1, kind='stable')
    ids_restore = np.argsort(ids_shuffle, axis=1, kind='stable')

    per_sample = bm.sum(axis=1)
    if bg_masking_type == 'mean':
        len_keep = int(per_sample.mean())
    elif bg_masking_type == 'median':
        srt = np.sort(per_sample)
        len_keep = int(srt[(len(srt) - 1) // 2])      # torch.median: lower-middle element
    elif bg_masking_type == 'max':
        len_keep = int(per_sample.max())
    elif bg_masking_type == 'min':
        len_keep = int(per_sample.min())
    else:
        raise ValueError(f'Unknown bg_masking_type {bg_masking_type}')

    N, L = bm.shape
    mask = np.ones((N, L), np.float32)
    mask[:, :len_keep] = 0.0
    mask = np.take_along_axis(mask, ids_restore, axis=1)
    ids_keep = ids_shuffle[:, :len_keep]
    return (jnp.asarray(ids_keep, jnp.int32),
            jnp.asarray(ids_restore, jnp.int32),
            jnp.asarray(mask, jnp.float32))


# ---------------------------------- jitted forward ----------------------------------

@functools.partial(jax.jit, static_argnames=('patch_size', 'num_heads', 'decoder_num_heads'))
def _forward_core(params, image, bg_mask, ids_keep, ids_restore, mask,
                  *, patch_size, num_heads, decoder_num_heads):
    p = patch_size

    # ---- forward_encoder ----
    x = image * bg_mask
    x = patch_embed_pallas(x, params['patch_w'], params['patch_b'], p)
    x = x + params['pos_embed'][:, 1:, :]
    N, L, E = x.shape
    len_keep = ids_keep.shape[1]
    gather_idx = jnp.broadcast_to(ids_keep[:, :, None], (N, len_keep, E))
    x = jnp.take_along_axis(x, gather_idx, axis=1)
    cls = params['cls_token'] + params['pos_embed'][:, :1, :]
    cls = jnp.broadcast_to(cls, (N, 1, E))
    x = jnp.concatenate([cls, x], axis=1)
    for bp in params['enc_blocks']:
        x = block_forward(x, bp, num_heads)

    # ---- forward_decoder ----
    # final encoder LayerNorm fused into decoder_embed (latent itself is not an output)
    y = ln_linear3d(x, params['norm_w'], params['norm_b'],
                    params['dec_embed_w'], params['dec_embed_b'])
    B, S, De = y.shape
    mask_tokens = jnp.broadcast_to(params['mask_token'], (B, L + 1 - S, De))
    y_ = jnp.concatenate([y[:, 1:, :], mask_tokens], axis=1)
    restore_idx = jnp.broadcast_to(ids_restore[:, :, None], (B, L, De))
    y_ = jnp.take_along_axis(y_, restore_idx, axis=1)
    y = jnp.concatenate([y[:, :1, :], y_], axis=1)
    y = y + params['decoder_pos_embed']
    for bp in params['dec_blocks']:
        y = block_forward(y, bp, decoder_num_heads)
    # decoder_norm fused into decoder_pred
    y = ln_linear3d(y, params['dec_norm_w'], params['dec_norm_b'],
                    params['dec_pred_w'], params['dec_pred_b'])
    pred = y[:, 1:, :]

    # ---- forward_loss ----
    target = patchify(image, p)
    masked_sum = masked_mse_sum_pallas(pred, target, mask)
    loss = masked_sum / jnp.sum(mask)
    return loss, pred, mask


def mae4bggen_forward(params, image, bg_mask, cfg):
    grid_size = (cfg['img_size'] // cfg['patch_size'], cfg['img_size'] // cfg['patch_size'])
    ids_keep, ids_restore, mask = _compute_bg_indices(bg_mask, grid_size,
                                                      cfg['bg_masking_type'])
    loss, pred, mask = _forward_core(params, image, bg_mask, ids_keep, ids_restore, mask,
                                     patch_size=cfg['patch_size'],
                                     num_heads=cfg['num_heads'],
                                     decoder_num_heads=cfg['decoder_num_heads'])
    return {'loss': loss, 'pred': pred, 'mask': mask}


# ------------------------------ deterministic parameter init ------------------------

def init_params(key, cfg):
    E = cfg['embed_dim']
    De = cfg['decoder_embed_dim']
    C = cfg['in_chans']
    p = cfg['patch_size']
    hidden = int(E * cfg['mlp_ratio'])
    dec_hidden = int(De * cfg['mlp_ratio'])
    gs = cfg['img_size'] // p

    keys = iter(jax.random.split(key, 256))

    def xavier(fan_in, fan_out, shape):
        a = float(np.sqrt(6.0 / (fan_in + fan_out)))
        return jax.random.uniform(next(keys), shape, jnp.float32, -a, a)

    def block_params(D, hid):
        return dict(
            norm1_w=jnp.ones((D,), jnp.float32), norm1_b=jnp.zeros((D,), jnp.float32),
            qkv_w=xavier(D, 3 * D, (D, 3 * D)), qkv_b=jnp.zeros((3 * D,), jnp.float32),
            proj_w=xavier(D, D, (D, D)), proj_b=jnp.zeros((D,), jnp.float32),
            norm2_w=jnp.ones((D,), jnp.float32), norm2_b=jnp.zeros((D,), jnp.float32),
            fc1_w=xavier(D, hid, (D, hid)), fc1_b=jnp.zeros((hid,), jnp.float32),
            fc2_w=xavier(hid, D, (hid, D)), fc2_b=jnp.zeros((D,), jnp.float32),
        )

    return dict(
        patch_w=xavier(C * p * p, E, (C * p * p, E)),
        patch_b=jnp.zeros((E,), jnp.float32),
        cls_token=0.02 * jax.random.normal(next(keys), (1, 1, E), jnp.float32),
        pos_embed=jnp.asarray(get_2d_sincos_pos_embed(E, gs, cls_token=True),
                              jnp.float32)[None],
        enc_blocks=[block_params(E, hidden) for _ in range(cfg['depth'])],
        norm_w=jnp.ones((E,), jnp.float32), norm_b=jnp.zeros((E,), jnp.float32),
        dec_embed_w=xavier(E, De, (E, De)), dec_embed_b=jnp.zeros((De,), jnp.float32),
        mask_token=0.02 * jax.random.normal(next(keys), (1, 1, De), jnp.float32),
        decoder_pos_embed=jnp.asarray(get_2d_sincos_pos_embed(De, gs, cls_token=True),
                                      jnp.float32)[None],
        dec_blocks=[block_params(De, dec_hidden) for _ in range(cfg['decoder_depth'])],
        dec_norm_w=jnp.ones((De,), jnp.float32), dec_norm_b=jnp.zeros((De,), jnp.float32),
        dec_pred_w=xavier(De, p * p * C, (De, p * p * C)),
        dec_pred_b=jnp.zeros((p * p * C,), jnp.float32),
    )


# ----------------------------------------- main --------------------------------------

if __name__ == "__main__":
    cfg = dict(img_size=32, patch_size=8, in_chans=3, embed_dim=64, depth=2,
               num_heads=4, decoder_embed_dim=32, decoder_depth=1,
               decoder_num_heads=4, mlp_ratio=4.0, bg_masking_type='mean')

    key = jax.random.PRNGKey(0)
    k_param, k_img, k_mask = jax.random.split(key, 3)
    params = init_params(k_param, cfg)

    B = 2
    image = jax.random.normal(k_img, (B, 3, cfg['img_size'], cfg['img_size']), jnp.float32)
    bg_mask = jax.random.uniform(k_mask, (B, 1, cfg['img_size'], cfg['img_size']), jnp.float32)

    outputs = mae4bggen_forward(params, image, bg_mask, cfg)
    jax.block_until_ready(outputs['loss'])
    jax.block_until_ready(outputs['pred'])
    jax.block_until_ready(outputs['mask'])
    print("KERNEL_OK")
</pallas_src>

<mosaic_0001>
module attributes {stable_mosaic.version = 11 : i64} {
  func.func @_linear_kernel(%arg0: i32, %arg1: i32, %arg2: memref<16x192xbf16, #tpu.memory_space<vmem>>, %arg3: memref<192x128xbf16, #tpu.memory_space<vmem>>, %arg4: memref<1x128xf32, #tpu.memory_space<vmem>>, %arg5: memref<16x128xf32, #tpu.memory_space<vmem>>) attributes {dimension_semantics = [#tpu.dimension_semantics<parallel>, #tpu.dimension_semantics<parallel>], iteration_bounds = array<i64: 2, 1>, scalar_prefetch = 0 : i64, scratch_operands = 0 : i64, tpu.core_type = #tpu.core_type<tc>, window_params = [{transform_indices = @transform_0, window_bounds = array<i64: 16, 192>}, {transform_indices = @transform_1, window_bounds = array<i64: 192, 128>}, {transform_indices = @transform_2, window_bounds = array<i64: 1, 128>}, {transform_indices = @transform_3, window_bounds = array<i64: 16, 128>}]} {
    %c0 = arith.constant 0 : index
    %c0_0 = arith.constant 0 : index
    %0 = vector.load %arg2[%c0, %c0_0] : memref<16x192xbf16, #tpu.memory_space<vmem>>, vector<16x192xbf16>
    %c0_1 = arith.constant 0 : index
    %c0_2 = arith.constant 0 : index
    %1 = vector.load %arg3[%c0_1, %c0_2] : memref<192x128xbf16, #tpu.memory_space<vmem>>, vector<192x128xbf16>
    %cst = arith.constant dense<0.000000e+00> : vector<16x128xf32>
    %2 = tpu.matmul %0, %1, %cst {dimension_numbers = #tpu.dot_dimension_numbers<[1], [0], [0], [1], [0, 0, 1, 1], [], []>} : vector<16x192xbf16>, vector<192x128xbf16>, vector<16x128xf32> -> vector<16x128xf32>
    %c0_3 = arith.constant 0 : index
    %c0_4 = arith.constant 0 : index
    %3 = vector.load %arg4[%c0_3, %c0_4] : memref<1x128xf32, #tpu.memory_space<vmem>>, vector<1x128xf32>
    %4 = vector.broadcast %3 : vector<1x128xf32> to vector<16x128xf32>
    %5 = arith.addf %2, %4 : vector<16x128xf32>
    %c0_5 = arith.constant 0 : index
    %c0_6 = arith.constant 0 : index
    %6 = vector.load %arg5[%c0_5, %c0_6] : memref<16x128xf32, #tpu.memory_space<vmem>>, vector<16x128xf32>
    tpu.vector_store %arg5[%c0_5, %c0_6], %5 {strides = array<i32>} : memref<16x128xf32, #tpu.memory_space<vmem>>, vector<16x128xf32>,
    return
  }
  func.func @transform_0(%arg0: i32, %arg1: i32) -> (i32, i32) {
    %c0_i32 = arith.constant 0 : i32
    %c0_i32_0 = arith.constant 0 : i32
    return %arg0, %c0_i32 : i32, i32
  }
  func.func @transform_1(%arg0: i32, %arg1: i32) -> (i32, i32) {
    %c0_i32 = arith.constant 0 : i32
    %c0_i32_0 = arith.constant 0 : i32
    return %c0_i32, %arg1 : i32, i32
  }
  func.func @transform_2(%arg0: i32, %arg1: i32) -> (i32, i32) {
    %c0_i32 = arith.constant 0 : i32
    %c0_i32_0 = arith.constant 0 : i32
    return %c0_i32, %arg1 : i32, i32
  }
  func.func @transform_3(%arg0: i32, %arg1: i32) -> (i32, i32) {
    %c0_i32 = arith.constant 0 : i32
    return %arg0, %arg1 : i32, i32
  }
}

module attributes {stable_mosaic.version = 11 : i64} {
  func.func @_attn_kernel(%arg0: i32, %arg1: memref<1x8x192xbf16, #tpu.memory_space<vmem>>, %arg2: memref<1x8x64xbf16, #tpu.memory_space<vmem>>) attributes {dimension_semantics = [#tpu.dimension_semantics<parallel>], iteration_bounds = array<i64: 2>, scalar_prefetch = 0 : i64, scratch_operands = 0 : i64, tpu.core_type = #tpu.core_type<tc>, window_params = [{transform_indices = @transform_0, window_bounds = array<i64: 1, 8, 192>}, {transform_indices = @transform_1, window_bounds = array<i64: 1, 8, 64>}]} {
    %c0 = arith.constant 0 : index
    %c0_0 = arith.constant 0 : index
    %c0_1 = arith.constant 0 : index
    %0 = vector.load %arg1[%c0, %c0_0, %c0_1] : memref<1x8x192xbf16, #tpu.memory_space<vmem>>, vector<1x8x192xbf16>
    %1 = vector.shape_cast %0 : vector<1x8x192xbf16> to vector<8x192xbf16>
    %2 = vector.extract_strided_slice %1 {offsets = [0, 0], sizes = [8, 16], strides = [1, 1]} : vector<8x192xbf16> to vector<8x16xbf16>
    %cst = arith.constant 2.500000e-01 : bf16
    %3 = vector.broadcast %cst : bf16 to vector<8x16xbf16>
    %4 = arith.mulf %2, %3 : vector<8x16xbf16>
    %5 = vector.extract_strided_slice %1 {offsets = [0, 64], sizes = [8, 16], strides = [1, 1]} : vector<8x192xbf16> to vector<8x16xbf16>
    %6 = vector.extract_strided_slice %1 {offsets = [0, 128], sizes = [8, 16], strides = [1, 1]} : vector<8x192xbf16> to vector<8x16xbf16>
    %cst_2 = arith.constant dense<0.000000e+00> : vector<8x8xf32>
    %7 = tpu.matmul %4, %5, %cst_2 {dimension_numbers = #tpu.dot_dimension_numbers<[1], [1], [0], [0], [0, 0, 1, 0], [], []>} : vector<8x16xbf16>, vector<8x16xbf16>, vector<8x8xf32> -> vector<8x8xf32>
    %cst_3 = arith.constant dense<0xFF800000> : vector<8xf32>
    %8 = vector.multi_reduction <maximumf>, %7, %cst_3 [1] : vector<8x8xf32> to vector<8xf32>
    %9 = vector.shape_cast %8 : vector<8xf32> to vector<8x1xf32>
    %10 = vector.broadcast %9 : vector<8x1xf32> to vector<8x8xf32>
    %11 = arith.subf %7, %10 : vector<8x8xf32>
    %12 = math.exp %11 : vector<8x8xf32>
    %cst_4 = arith.constant dense<0.000000e+00> : vector<8xf32>
    %13 = vector.multi_reduction <add>, %12, %cst_4 [1] : vector<8x8xf32> to vector<8xf32>
    %14 = vector.shape_cast %13 : vector<8xf32> to vector<8x1xf32>
    %15 = tpu.reciprocal %14 {approx = true} : vector<8x1xf32> -> vector<8x1xf32>
    %16 = vector.broadcast %15 : vector<8x1xf32> to vector<8x8xf32>
    %17 = arith.mulf %12, %16 : vector<8x8xf32>
    %18 = arith.truncf %17 : vector<8x8xf32> to vector<8x8xbf16>
    %cst_5 = arith.constant dense<0.000000e+00> : vector<8x16xf32>
    %19 = tpu.matmul %18, %6, %cst_5 {dimension_numbers = #tpu.dot_dimension_numbers<[1], [0], [0], [1], [0, 0, 1, 1], [], []>} : vector<8x8xbf16>, vector<8x16xbf16>, vector<8x16xf32> -> vector<8x16xf32>
    %20 = vector.extract_strided_slice %1 {offsets = [0, 16], sizes = [8, 16], strides = [1, 1]} : vector<8x192xbf16> to vector<8x16xbf16>
    %cst_6 = arith.constant 2.500000e-01 : bf16
    %21 = vector.broadcast %cst_6 : bf16 to vector<8x16xbf16>
    %22 = arith.mulf %20, %21 : vector<8x16xbf16>
    %23 = vector.extract_strided_slice %1 {offsets = [0, 80], sizes = [8, 16], strides = [1, 1]} : vector<8x192xbf16> to vector<8x16xbf16>
    %24 = vector.extract_strided_slice %1 {offsets = [0, 144], sizes = [8, 16], strides = [1, 1]} : vector<8x192xbf16> to vector<8x16xbf16>
    %cst_7 = arith.constant dense<0.000000e+00> : vector<8x8xf32>
    %25 = tpu.matmul %22, %23, %cst_7 {dimension_numbers = #tpu.dot_dimension_numbers<[1], [1], [0], [0], [0, 0, 1, 0], [], []>} : vector<8x16xbf16>, vector<8x16xbf16>, vector<8x8xf32> -> vector<8x8xf32>
    %cst_8 = arith.constant dense<0xFF800000> : vector<8xf32>
    %26 = vector.multi_reduction <maximumf>, %25, %cst_8 [1] : vector<8x8xf32> to vector<8xf32>
    %27 = vector.shape_cast %26 : vector<8xf32> to vector<8x1xf32>
    %28 = vector.broadcast %27 : vector<8x1xf32> to vector<8x8xf32>
    %29 = arith.subf %25, %28 : vector<8x8xf32>
    %30 = math.exp %29 : vector<8x8xf32>
    %cst_9 = arith.constant dense<0.000000e+00> : vector<8xf32>
    %31 = vector.multi_reduction <add>, %30, %cst_9 [1] : vector<8x8xf32> to vector<8xf32>
    %32 = vector.shape_cast %31 : vector<8xf32> to vector<8x1xf32>
    %33 = tpu.reciprocal %32 {approx = true} : vector<8x1xf32> -> vector<8x1xf32>
    %34 = vector.broadcast %33 : vector<8x1xf32> to vector<8x8xf32>
    %35 = arith.mulf %30, %34 : vector<8x8xf32>
    %36 = arith.truncf %35 : vector<8x8xf32> to vector<8x8xbf16>
    %cst_10 = arith.constant dense<0.000000e+00> : vector<8x16xf32>
    %37 = tpu.matmul %36, %24, %cst_10 {dimension_numbers = #tpu.dot_dimension_numbers<[1], [0], [0], [1], [0, 0, 1, 1], [], []>} : vector<8x8xbf16>, vector<8x16xbf16>, vector<8x16xf32> -> vector<8x16xf32>
    %38 = vector.extract_strided_slice %1 {offsets = [0, 32], sizes = [8, 16], strides = [1, 1]} : vector<8x192xbf16> to vector<8x16xbf16>
    %cst_11 = arith.constant 2.500000e-01 : bf16
    %39 = vector.broadcast %cst_11 : bf16 to vector<8x16xbf16>
    %40 = arith.mulf %38, %39 : vector<8x16xbf16>
    %41 = vector.extract_strided_slice %1 {offsets = [0, 96], sizes = [8, 16], strides = [1, 1]} : vector<8x192xbf16> to vector<8x16xbf16>
    %42 = vector.extract_strided_slice %1 {offsets = [0, 160], sizes = [8, 16], strides = [1, 1]} : vector<8x192xbf16> to vector<8x16xbf16>
    %cst_12 = arith.constant dense<0.000000e+00> : vector<8x8xf32>
    %43 = tpu.matmul %40, %41, %cst_12 {dimension_numbers = #tpu.dot_dimension_numbers<[1], [1], [0], [0], [0, 0, 1, 0], [], []>} : vector<8x16xbf16>, vector<8x16xbf16>, vector<8x8xf32> -> vector<8x8xf32>
    %cst_13 = arith.constant dense<0xFF800000> : vector<8xf32>
    %44 = vector.multi_reduction <maximumf>, %43, %cst_13 [1] : vector<8x8xf32> to vector<8xf32>
    %45 = vector.shape_cast %44 : vector<8xf32> to vector<8x1xf32>
    %46 = vector.broadcast %45 : vector<8x1xf32> to vector<8x8xf32>
    %47 = arith.subf %43, %46 : vector<8x8xf32>
    %48 = math.exp %47 : vector<8x8xf32>
    %cst_14 = arith.constant dense<0.000000e+00> : vector<8xf32>
    %49 = vector.multi_reduction <add>, %48, %cst_14 [1] : vector<8x8xf32> to vector<8xf32>
    %50 = vector.shape_cast %49 : vector<8xf32> to vector<8x1xf32>
    %51 = tpu.reciprocal %50 {approx = true} : vector<8x1xf32> -> vector<8x1xf32>
    %52 = vector.broadcast %51 : vector<8x1xf32> to vector<8x8xf32>
    %53 = arith.mulf %48, %52 : vector<8x8xf32>
    %54 = arith.truncf %53 : vector<8x8xf32> to vector<8x8xbf16>
    %cst_15 = arith.constant dense<0.000000e+00> : vector<8x16xf32>
    %55 = tpu.matmul %54, %42, %cst_15 {dimension_numbers = #tpu.dot_dimension_numbers<[1], [0], [0], [1], [0, 0, 1, 1], [], []>} : vector<8x8xbf16>, vector<8x16xbf16>, vector<8x16xf32> -> vector<8x16xf32>
    %56 = vector.extract_strided_slice %1 {offsets = [0, 48], sizes = [8, 16], strides = [1, 1]} : vector<8x192xbf16> to vector<8x16xbf16>
    %cst_16 = arith.constant 2.500000e-01 : bf16
    %57 = vector.broadcast %cst_16 : bf16 to vector<8x16xbf16>
    %58 = arith.mulf %56, %57 : vector<8x16xbf16>
    %59 = vector.extract_strided_slice %1 {offsets = [0, 112], sizes = [8, 16], strides = [1, 1]} : vector<8x192xbf16> to vector<8x16xbf16>
    %60 = vector.extract_strided_slice %1 {offsets = [0, 176], sizes = [8, 16], strides = [1, 1]} : vector<8x192xbf16> to vector<8x16xbf16>
    %cst_17 = arith.constant dense<0.000000e+00> : vector<8x8xf32>
    %61 = tpu.matmul %58, %59, %cst_17 {dimension_numbers = #tpu.dot_dimension_numbers<[1], [1], [0], [0], [0, 0, 1, 0], [], []>} : vector<8x16xbf16>, vector<8x16xbf16>, vector<8x8xf32> -> vector<8x8xf32>
    %cst_18 = arith.constant dense<0xFF800000> : vector<8xf32>
    %62 = vector.multi_reduction <maximumf>, %61, %cst_18 [1] : vector<8x8xf32> to vector<8xf32>
    %63 = vector.shape_cast %62 : vector<8xf32> to vector<8x1xf32>
    %64 = vector.broadcast %63 : vector<8x1xf32> to vector<8x8xf32>
    %65 = arith.subf %61, %64 : vector<8x8xf32>
    %66 = math.exp %65 : vector<8x8xf32>
    %cst_19 = arith.constant dense<0.000000e+00> : vector<8xf32>
    %67 = vector.multi_reduction <add>, %66, %cst_19 [1] : vector<8x8xf32> to vector<8xf32>
    %68 = vector.shape_cast %67 : vector<8xf32> to vector<8x1xf32>
    %69 = tpu.reciprocal %68 {approx = true} : vector<8x1xf32> -> vector<8x1xf32>
    %70 = vector.broadcast %69 : vector<8x1xf32> to vector<8x8xf32>
    %71 = arith.mulf %66, %70 : vector<8x8xf32>
    %72 = arith.truncf %71 : vector<8x8xf32> to vector<8x8xbf16>
    %cst_20 = arith.constant dense<0.000000e+00> : vector<8x16xf32>
    %73 = tpu.matmul %72, %60, %cst_20 {dimension_numbers = #tpu.dot_dimension_numbers<[1], [0], [0], [1], [0, 0, 1, 1], [], []>} : vector<8x8xbf16>, vector<8x16xbf16>, vector<8x16xf32> -> vector<8x16xf32>
    %74 = tpu.concatenate %19, %37, %55, %73 in 1 : vector<8x16xf32>, vector<8x16xf32>, vector<8x16xf32>, vector<8x16xf32> -> vector<8x64xf32>
    %75 = arith.truncf %74 : vector<8x64xf32> to vector<8x64xbf16>
    %c0_21 = arith.constant 0 : index
    %c0_22 = arith.constant 0 : index
    %c0_23 = arith.constant 0 : index
    %76 = vector.load %arg2[%c0_21, %c0_22, %c0_23] : memref<1x8x64xbf16, #tpu.memory_space<vmem>>, vector<1x8x64xbf16>
    %77 = vector.shape_cast %76 : vector<1x8x64xbf16> to vector<8x64xbf16>
    %78 = vector.shape_cast %75 : vector<8x64xbf16> to vector<1x8x64xbf16>
    tpu.vector_store %arg2[%c0_21, %c0_22, %c0_23], %78 {strides = array<i32>} : memref<1x8x64xbf16, #tpu.memory_space<vmem>>, vector<1x8x64xbf16>,
    return
  }
  func.func @transform_0(%arg0: i32) -> (i32, i32, i32) {
    %c0_i32 = arith.constant 0 : i32
    %c0_i32_0 = arith.constant 0 : i32
    %c0_i32_1 = arith.constant 0 : i32
    return %arg0, %c0_i32, %c0_i32_0 : i32, i32, i32
  }
  func.func @transform_1(%arg0: i32) -> (i32, i32, i32) {
    %c0_i32 = arith.constant 0 : i32
    %c0_i32_0 = arith.constant 0 : i32
    %c0_i32_1 = arith.constant 0 : i32
    return %arg0, %c0_i32, %c0_i32_0 : i32, i32, i32
  }
}

module attributes {stable_mosaic.version = 11 : i64} {
  func.func @_ln_linear_kernel(%arg0: i32, %arg1: i32, %arg2: memref<8x64xf32, #tpu.memory_space<vmem>>, %arg3: memref<1x64xf32, #tpu.memory_space<vmem>>, %arg4: memref<1x64xf32, #tpu.memory_space<vmem>>, %arg5: memref<64x256xbf16, #tpu.memory_space<vmem>>, %arg6: memref<1x256xf32, #tpu.memory_space<vmem>>, %arg7: memref<8x256xbf16, #tpu.memory_space<vmem>>, %arg8: memref<8x64xbf16, #tpu.memory_space<vmem>>) attributes {dimension_semantics = [#tpu.dimension_semantics<parallel>, #tpu.dimension_semantics<arbitrary>], iteration_bounds = array<i64: 2, 1>, scalar_prefetch = 0 : i64, scratch_operands = 1 : i64, tpu.core_type = #tpu.core_type<tc>, window_params = [{transform_indices = @transform_0, window_bounds = array<i64: 8, 64>}, {pipeline_mode = #tpu.pipeline_mode<synchronous>, transform_indices = @transform_1, window_bounds = array<i64: 1, 64>}, {pipeline_mode = #tpu.pipeline_mode<synchronous>, transform_indices = @transform_2, window_bounds = array<i64: 1, 64>}, {transform_indices = @transform_3, window_bounds = array<i64: 64, 256>}, {transform_indices = @transform_4, window_bounds = array<i64: 1, 256>}, {transform_indices = @transform_5, window_bounds = array<i64: 8, 256>}]} {
    %c0_i32 = arith.constant 0 : i32
    %0 = arith.cmpi eq, %arg1, %c0_i32 : i32
    %1 = arith.extui %0 : i1 to i32
    %c0_i32_0 = arith.constant 0 : i32
    %2 = arith.cmpi ne, %1, %c0_i32_0 : i32
    scf.if %2 {
      %c0_8 = arith.constant 0 : index
      %c0_9 = arith.constant 0 : index
      %11 = vector.load %arg2[%c0_8, %c0_9] : memref<8x64xf32, #tpu.memory_space<vmem>>, vector<8x64xf32>
      %cst_10 = arith.constant dense<0.000000e+00> : vector<8xf32>
      %12 = vector.multi_reduction <add>, %11, %cst_10 [1] : vector<8x64xf32> to vector<8xf32>
      %13 = vector.shape_cast %12 : vector<8xf32> to vector<8x1xf32>
      %cst_11 = arith.constant 6.400000e+01 : f32
      %14 = vector.broadcast %cst_11 : f32 to vector<8x1xf32>
      %15 = arith.divf %13, %14 : vector<8x1xf32>
      %16 = vector.broadcast %15 : vector<8x1xf32> to vector<8x64xf32>
      %17 = arith.subf %11, %16 : vector<8x64xf32>
      %18 = arith.mulf %17, %17 : vector<8x64xf32>
      %cst_12 = arith.constant dense<0.000000e+00> : vector<8xf32>
      %19 = vector.multi_reduction <add>, %18, %cst_12 [1] : vector<8x64xf32> to vector<8xf32>
      %20 = vector.shape_cast %19 : vector<8xf32> to vector<8x1xf32>
      %cst_13 = arith.constant 6.400000e+01 : f32
      %21 = vector.broadcast %cst_13 : f32 to vector<8x1xf32>
      %22 = arith.divf %20, %21 : vector<8x1xf32>
      %23 = vector.broadcast %15 : vector<8x1xf32> to vector<8x64xf32>
      %24 = arith.subf %11, %23 : vector<8x64xf32>
      %cst_14 = arith.constant 9.99999974E-6 : f32
      %25 = vector.broadcast %cst_14 : f32 to vector<8x1xf32>
      %26 = arith.addf %22, %25 : vector<8x1xf32>
      %27 = math.rsqrt %26 : vector<8x1xf32>
      %28 = vector.broadcast %27 : vector<8x1xf32> to vector<8x64xf32>
      %29 = arith.mulf %24, %28 : vector<8x64xf32>
      %c0_15 = arith.constant 0 : index
      %c0_16 = arith.constant 0 : index
      %30 = vector.load %arg3[%c0_15, %c0_16] : memref<1x64xf32, #tpu.memory_space<vmem>>, vector<1x64xf32>
      %31 = vector.broadcast %30 : vector<1x64xf32> to vector<8x64xf32>
      %32 = arith.mulf %29, %31 : vector<8x64xf32>
      %c0_17 = arith.constant 0 : index
      %c0_18 = arith.constant 0 : index
      %33 = vector.load %arg4[%c0_17, %c0_18] : memref<1x64xf32, #tpu.memory_space<vmem>>, vector<1x64xf32>
      %34 = vector.broadcast %33 : vector<1x64xf32> to vector<8x64xf32>
      %35 = arith.addf %32, %34 : vector<8x64xf32>
      %36 = arith.truncf %35 : vector<8x64xf32> to vector<8x64xbf16>
      %c0_19 = arith.constant 0 : index
      %c0_20 = arith.constant 0 : index
      %37 = vector.load %arg8[%c0_19, %c0_20] : memref<8x64xbf16, #tpu.memory_space<vmem>>, vector<8x64xbf16>
      tpu.vector_store %arg8[%c0_19, %c0_20], %36 {strides = array<i32>} : memref<8x64xbf16, #tpu.memory_space<vmem>>, vector<8x64xbf16>,
    } else {
    }
    %c0 = arith.constant 0 : index
    %c0_1 = arith.constant 0 : index
    %3 = vector.load %arg8[%c0, %c0_1] : memref<8x64xbf16, #tpu.memory_space<vmem>>, vector<8x64xbf16>
    %c0_2 = arith.constant 0 : index
    %c0_3 = arith.constant 0 : index
    %4 = vector.load %arg5[%c0_2, %c0_3] : memref<64x256xbf16, #tpu.memory_space<vmem>>, vector<64x256xbf16>
    %cst = arith.constant dense<0.000000e+00> : vector<8x256xf32>
    %5 = tpu.matmul %3, %4, %cst {dimension_numbers = #tpu.dot_dimension_numbers<[1], [0], [0], [1], [0, 0, 1, 1], [], []>} : vector<8x64xbf16>, vector<64x256xbf16>, vector<8x256xf32> -> vector<8x256xf32>
    %c0_4 = arith.constant 0 : index
    %c0_5 = arith.constant 0 : index
    %6 = vector.load %arg6[%c0_4, %c0_5] : memref<1x256xf32, #tpu.memory_space<vmem>>, vector<1x256xf32>
    %7 = vector.broadcast %6 : vector<1x256xf32> to vector<8x256xf32>
    %8 = arith.addf %5, %7 : vector<8x256xf32>
    %9 = arith.truncf %8 : vector<8x256xf32> to vector<8x256xbf16>
    %c0_6 = arith.constant 0 : index
    %c0_7 = arith.constant 0 : index
    %10 = vector.load %arg7[%c0_6, %c0_7] : memref<8x256xbf16, #tpu.memory_space<vmem>>, vector<8x256xbf16>
    tpu.vector_store %arg7[%c0_6, %c0_7], %9 {strides = array<i32>} : memref<8x256xbf16, #tpu.memory_space<vmem>>, vector<8x256xbf16>,
    return
  }
  func.func @transform_0(%arg0: i32, %arg1: i32) -> (i32, i32) {
    %c0_i32 = arith.constant 0 : i32
    %c0_i32_0 = arith.constant 0 : i32
    return %arg0, %c0_i32 : i32, i32
  }
  func.func @transform_1(%arg0: i32, %arg1: i32) -> (i32, i32) {
    %c0_i32 = arith.constant 0 : i32
    %c0_i32_0 = arith.constant 0 : i32
    %c0_i32_1 = arith.constant 0 : i32
    return %c0_i32, %c0_i32_0 : i32, i32
  }
  func.func @transform_2(%arg0: i32, %arg1: i32) -> (i32, i32) {
    %c0_i32 = arith.constant 0 : i32
    %c0_i32_0 = arith.constant 0 : i32
    %c0_i32_1 = arith.constant 0 : i32
    return %c0_i32, %c0_i32_0 : i32, i32
  }
  func.func @transform_3(%arg0: i32, %arg1: i32) -> (i32, i32) {
    %c0_i32 = arith.constant 0 : i32
    %c0_i32_0 = arith.constant 0 : i32
    return %c0_i32, %arg1 : i32, i32
  }
  func.func @transform_4(%arg0: i32, %arg1: i32) -> (i32, i32) {
    %c0_i32 = arith.constant 0 : i32
    %c0_i32_0 = arith.constant 0 : i32
    return %c0_i32, %arg1 : i32, i32
  }
  func.func @transform_5(%arg0: i32, %arg1: i32) -> (i32, i32) {
    %c0_i32 = arith.constant 0 : i32
    return %arg0, %arg1 : i32, i32
  }
}

module attributes {stable_mosaic.version = 11 : i64} {
  func.func @_linear_res_kernel(%arg0: i32, %arg1: i32, %arg2: memref<8x64xbf16, #tpu.memory_space<vmem>>, %arg3: memref<64x128xbf16, #tpu.memory_space<vmem>>, %arg4: memref<1x128xf32, #tpu.memory_space<vmem>>, %arg5: memref<8x128xf32, #tpu.memory_space<vmem>>, %arg6: memref<8x128xf32, #tpu.memory_space<vmem>>) attributes {dimension_semantics = [#tpu.dimension_semantics<parallel>, #tpu.dimension_semantics<parallel>], iteration_bounds = array<i64: 2, 1>, scalar_prefetch = 0 : i64, scratch_operands = 0 : i64, tpu.core_type = #tpu.core_type<tc>, window_params = [{transform_indices = @transform_0, window_bounds = array<i64: 8, 64>}, {transform_indices = @transform_1, window_bounds = array<i64: 64, 128>}, {transform_indices = @transform_2, window_bounds = array<i64: 1, 128>}, {transform_indices = @transform_3, window_bounds = array<i64: 8, 128>}, {transform_indices = @transform_4, window_bounds = array<i64: 8, 128>}]} {
    %c0 = arith.constant 0 : index
    %c0_0 = arith.constant 0 : index
    %0 = vector.load %arg2[%c0, %c0_0] : memref<8x64xbf16, #tpu.memory_space<vmem>>, vector<8x64xbf16>
    %c0_1 = arith.constant 0 : index
    %c0_2 = arith.constant 0 : index
    %1 = vector.load %arg3[%c0_1, %c0_2] : memref<64x128xbf16, #tpu.memory_space<vmem>>, vector<64x128xbf16>
    %cst = arith.constant dense<0.000000e+00> : vector<8x128xf32>
    %2 = tpu.matmul %0, %1, %cst {dimension_numbers = #tpu.dot_dimension_numbers<[1], [0], [0], [1], [0, 0, 1, 1], [], []>} : vector<8x64xbf16>, vector<64x128xbf16>, vector<8x128xf32> -> vector<8x128xf32>
    %c0_3 = arith.constant 0 : index
    %c0_4 = arith.constant 0 : index
    %3 = vector.load %arg4[%c0_3, %c0_4] : memref<1x128xf32, #tpu.memory_space<vmem>>, vector<1x128xf32>
    %4 = vector.broadcast %3 : vector<1x128xf32> to vector<8x128xf32>
    %5 = arith.addf %2, %4 : vector<8x128xf32>
    %c0_5 = arith.constant 0 : index
    %c0_6 = arith.constant 0 : index
    %6 = vector.load %arg5[%c0_5, %c0_6] : memref<8x128xf32, #tpu.memory_space<vmem>>, vector<8x128xf32>
    %7 = arith.addf %5, %6 : vector<8x128xf32>
    %c0_7 = arith.constant 0 : index
    %c0_8 = arith.constant 0 : index
    %8 = vector.load %arg6[%c0_7, %c0_8] : memref<8x128xf32, #tpu.memory_space<vmem>>, vector<8x128xf32>
    tpu.vector_store %arg6[%c0_7, %c0_8], %7 {strides = array<i32>} : memref<8x128xf32, #tpu.memory_space<vmem>>, vector<8x128xf32>,
    return
  }
  func.func @transform_0(%arg0: i32, %arg1: i32) -> (i32, i32) {
    %c0_i32 = arith.constant 0 : i32
    %c0_i32_0 = arith.constant 0 : i32
    return %arg0, %c0_i32 : i32, i32
  }
  func.func @transform_1(%arg0: i32, %arg1: i32) -> (i32, i32) {
    %c0_i32 = arith.constant 0 : i32
    %c0_i32_0 = arith.constant 0 : i32
    return %c0_i32, %arg1 : i32, i32
  }
  func.func @transform_2(%arg0: i32, %arg1: i32) -> (i32, i32) {
    %c0_i32 = arith.constant 0 : i32
    %c0_i32_0 = arith.constant 0 : i32
    return %c0_i32, %arg1 : i32, i32
  }
  func.func @transform_3(%arg0: i32, %arg1: i32) -> (i32, i32) {
    %c0_i32 = arith.constant 0 : i32
    return %arg0, %arg1 : i32, i32
  }
  func.func @transform_4(%arg0: i32, %arg1: i32) -> (i32, i32) {
    %c0_i32 = arith.constant 0 : i32
    return %arg0, %arg1 : i32, i32
  }
}

module attributes {stable_mosaic.version = 11 : i64} {
  func.func @_ln_linear_kernel(%arg0: i32, %arg1: i32, %arg2: memref<8x64xf32, #tpu.memory_space<vmem>>, %arg3: memref<1x64xf32, #tpu.memory_space<vmem>>, %arg4: memref<1x64xf32, #tpu.memory_space<vmem>>, %arg5: memref<64x256xbf16, #tpu.memory_space<vmem>>, %arg6: memref<1x256xf32, #tpu.memory_space<vmem>>, %arg7: memref<8x256xbf16, #tpu.memory_space<vmem>>, %arg8: memref<8x64xbf16, #tpu.memory_space<vmem>>) attributes {dimension_semantics = [#tpu.dimension_semantics<parallel>, #tpu.dimension_semantics<arbitrary>], iteration_bounds = array<i64: 2, 1>, scalar_prefetch = 0 : i64, scratch_operands = 1 : i64, tpu.core_type = #tpu.core_type<tc>, window_params = [{transform_indices = @transform_0, window_bounds = array<i64: 8, 64>}, {pipeline_mode = #tpu.pipeline_mode<synchronous>, transform_indices = @transform_1, window_bounds = array<i64: 1, 64>}, {pipeline_mode = #tpu.pipeline_mode<synchronous>, transform_indices = @transform_2, window_bounds = array<i64: 1, 64>}, {transform_indices = @transform_3, window_bounds = array<i64: 64, 256>}, {transform_indices = @transform_4, window_bounds = array<i64: 1, 256>}, {transform_indices = @transform_5, window_bounds = array<i64: 8, 256>}]} {
    %c0_i32 = arith.constant 0 : i32
    %0 = arith.cmpi eq, %arg1, %c0_i32 : i32
    %1 = arith.extui %0 : i1 to i32
    %c0_i32_0 = arith.constant 0 : i32
    %2 = arith.cmpi ne, %1, %c0_i32_0 : i32
    scf.if %2 {
      %c0_23 = arith.constant 0 : index
      %c0_24 = arith.constant 0 : index
      %51 = vector.load %arg2[%c0_23, %c0_24] : memref<8x64xf32, #tpu.memory_space<vmem>>, vector<8x64xf32>
      %cst_25 = arith.constant dense<0.000000e+00> : vector<8xf32>
      %52 = vector.multi_reduction <add>, %51, %cst_25 [1] : vector<8x64xf32> to vector<8xf32>
      %53 = vector.shape_cast %52 : vector<8xf32> to vector<8x1xf32>
      %cst_26 = arith.constant 6.400000e+01 : f32
      %54 = vector.broadcast %cst_26 : f32 to vector<8x1xf32>
      %55 = arith.divf %53, %54 : vector<8x1xf32>
      %56 = vector.broadcast %55 : vector<8x1xf32> to vector<8x64xf32>
      %57 = arith.subf %51, %56 : vector<8x64xf32>
      %58 = arith.mulf %57, %57 : vector<8x64xf32>
      %cst_27 = arith.constant dense<0.000000e+00> : vector<8xf32>
      %59 = vector.multi_reduction <add>, %58, %cst_27 [1] : vector<8x64xf32> to vector<8xf32>
      %60 = vector.shape_cast %59 : vector<8xf32> to vector<8x1xf32>
      %cst_28 = arith.constant 6.400000e+01 : f32
      %61 = vector.broadcast %cst_28 : f32 to vector<8x1xf32>
      %62 = arith.divf %60, %61 : vector<8x1xf32>
      %63 = vector.broadcast %55 : vector<8x1xf32> to vector<8x64xf32>
      %64 = arith.subf %51, %63 : vector<8x64xf32>
      %cst_29 = arith.constant 9.99999974E-6 : f32
      %65 = vector.broadcast %cst_29 : f32 to vector<8x1xf32>
      %66 = arith.addf %62, %65 : vector<8x1xf32>
      %67 = math.rsqrt %66 : vector<8x1xf32>
      %68 = vector.broadcast %67 : vector<8x1xf32> to vector<8x64xf32>
      %69 = arith.mulf %64, %68 : vector<8x64xf32>
      %c0_30 = arith.constant 0 : index
      %c0_31 = arith.constant 0 : index
      %70 = vector.load %arg3[%c0_30, %c0_31] : memref<1x64xf32, #tpu.memory_space<vmem>>, vector<1x64xf32>
      %71 = vector.broadcast %70 : vector<1x64xf32> to vector<8x64xf32>
      %72 = arith.mulf %69, %71 : vector<8x64xf32>
      %c0_32 = arith.constant 0 : index
      %c0_33 = arith.constant 0 : index
      %73 = vector.load %arg4[%c0_32, %c0_33] : memref<1x64xf32, #tpu.memory_space<vmem>>, vector<1x64xf32>
      %74 = vector.broadcast %73 : vector<1x64xf32> to vector<8x64xf32>
      %75 = arith.addf %72, %74 : vector<8x64xf32>
      %76 = arith.truncf %75 : vector<8x64xf32> to vector<8x64xbf16>
      %c0_34 = arith.constant 0 : index
      %c0_35 = arith.constant 0 : index
      %77 = vector.load %arg8[%c0_34, %c0_35] : memref<8x64xbf16, #tpu.memory_space<vmem>>, vector<8x64xbf16>
      tpu.vector_store %arg8[%c0_34, %c0_35], %76 {strides = array<i32>} : memref<8x64xbf16, #tpu.memory_space<vmem>>, vector<8x64xbf16>,
    } else {
    }
    %c0 = arith.constant 0 : index
    %c0_1 = arith.constant 0 : index
    %3 = vector.load %arg8[%c0, %c0_1] : memref<8x64xbf16, #tpu.memory_space<vmem>>, vector<8x64xbf16>
    %c0_2 = arith.constant 0 : index
    %c0_3 = arith.constant 0 : index
    %4 = vector.load %arg5[%c0_2, %c0_3] : memref<64x256xbf16, #tpu.memory_space<vmem>>, vector<64x256xbf16>
    %cst = arith.constant dense<0.000000e+00> : vector<8x256xf32>
    %5 = tpu.matmul %3, %4, %cst {dimension_numbers = #tpu.dot_dimension_numbers<[1], [0], [0], [1], [0, 0, 1, 1], [], []>} : vector<8x64xbf16>, vector<64x256xbf16>, vector<8x256xf32> -> vector<8x256xf32>
    %c0_4 = arith.constant 0 : index
    %c0_5 = arith.constant 0 : index
    %6 = vector.load %arg6[%c0_4, %c0_5] : memref<1x256xf32, #tpu.memory_space<vmem>>, vector<1x256xf32>
    %7 = vector.broadcast %6 : vector<1x256xf32> to vector<8x256xf32>
    %8 = arith.addf %5, %7 : vector<8x256xf32>
    %cst_6 = arith.constant 0.707106769 : f32
    %9 = vector.broadcast %cst_6 : f32 to vector<8x256xf32>
    %10 = arith.mulf %8, %9 : vector<8x256xf32>
    %11 = math.absf %10 : vector<8x256xf32>
    %cst_7 = arith.constant 0.327591091 : f32
    %12 = vector.broadcast %cst_7 : f32 to vector<8x256xf32>
    %13 = arith.mulf %12, %11 : vector<8x256xf32>
    %cst_8 = arith.constant 1.000000e+00 : f32
    %14 = vector.broadcast %cst_8 : f32 to vector<8x256xf32>
    %15 = arith.addf %14, %13 : vector<8x256xf32>
    %cst_9 = arith.constant 1.000000e+00 : f32
    %16 = vector.broadcast %cst_9 : f32 to vector<8x256xf32>
    %17 = arith.divf %16, %15 : vector<8x256xf32>
    %cst_10 = arith.constant 1.06140542 : f32
    %18 = vector.broadcast %cst_10 : f32 to vector<8x256xf32>
    %19 = arith.mulf %17, %18 : vector<8x256xf32>
    %cst_11 = arith.constant -1.45315206 : f32
    %20 = vector.broadcast %cst_11 : f32 to vector<8x256xf32>
    %21 = arith.addf %20, %19 : vector<8x256xf32>
    %22 = arith.mulf %17, %21 : vector<8x256xf32>
    %cst_12 = arith.constant 1.42141378 : f32
    %23 = vector.broadcast %cst_12 : f32 to vector<8x256xf32>
    %24 = arith.addf %23, %22 : vector<8x256xf32>
    %25 = arith.mulf %17, %24 : vector<8x256xf32>
    %cst_13 = arith.constant -0.284496725 : f32
    %26 = vector.broadcast %cst_13 : f32 to vector<8x256xf32>
    %27 = arith.addf %26, %25 : vector<8x256xf32>
    %28 = arith.mulf %17, %27 : vector<8x256xf32>
    %cst_14 = arith.constant 0.254829586 : f32
    %29 = vector.broadcast %cst_14 : f32 to vector<8x256xf32>
    %30 = arith.addf %29, %28 : vector<8x256xf32>
    %31 = arith.mulf %17, %30 : vector<8x256xf32>
    %cst_15 = arith.constant 0.000000e+00 : f32
    %32 = vector.broadcast %cst_15 : f32 to vector<8x256xf32>
    %33 = arith.subf %32, %11 : vector<8x256xf32>
    %34 = arith.mulf %33, %11 : vector<8x256xf32>
    %35 = math.exp %34 : vector<8x256xf32>
    %36 = arith.mulf %31, %35 : vector<8x256xf32>
    %cst_16 = arith.constant 1.000000e+00 : f32
    %37 = vector.broadcast %cst_16 : f32 to vector<8x256xf32>
    %38 = arith.subf %37, %36 : vector<8x256xf32>
    %cst_17 = arith.constant 0.000000e+00 : f32
    %39 = vector.broadcast %cst_17 : f32 to vector<8x256xf32>
    %40 = arith.cmpf oge, %10, %39 : vector<8x256xf32>
    %cst_18 = arith.constant 0.000000e+00 : f32
    %41 = vector.broadcast %cst_18 : f32 to vector<8x256xf32>
    %42 = arith.subf %41, %38 : vector<8x256xf32>
    %43 = arith.select %40, %38, %42 : vector<8x256xi1>, vector<8x256xf32>
    %cst_19 = arith.constant 5.000000e-01 : f32
    %44 = vector.broadcast %cst_19 : f32 to vector<8x256xf32>
    %45 = arith.mulf %44, %8 : vector<8x256xf32>
    %cst_20 = arith.constant 1.000000e+00 : f32
    %46 = vector.broadcast %cst_20 : f32 to vector<8x256xf32>
    %47 = arith.addf %46, %43 : vector<8x256xf32>
    %48 = arith.mulf %45, %47 : vector<8x256xf32>
    %49 = arith.truncf %48 : vector<8x256xf32> to vector<8x256xbf16>
    %c0_21 = arith.constant 0 : index
    %c0_22 = arith.constant 0 : index
    %50 = vector.load %arg7[%c0_21, %c0_22] : memref<8x256xbf16, #tpu.memory_space<vmem>>, vector<8x256xbf16>
    tpu.vector_store %arg7[%c0_21, %c0_22], %49 {strides = array<i32>} : memref<8x256xbf16, #tpu.memory_space<vmem>>, vector<8x256xbf16>,
    return
  }
  func.func @transform_0(%arg0: i32, %arg1: i32) -> (i32, i32) {
    %c0_i32 = arith.constant 0 : i32
    %c0_i32_0 = arith.constant 0 : i32
    return %arg0, %c0_i32 : i32, i32
  }
  func.func @transform_1(%arg0: i32, %arg1: i32) -> (i32, i32) {
    %c0_i32 = arith.constant 0 : i32
    %c0_i32_0 = arith.constant 0 : i32
    %c0_i32_1 = arith.constant 0 : i32
    return %c0_i32, %c0_i32_0 : i32, i32
  }
  func.func @transform_2(%arg0: i32, %arg1: i32) -> (i32, i32) {
    %c0_i32 = arith.constant 0 : i32
    %c0_i32_0 = arith.constant 0 : i32
    %c0_i32_1 = arith.constant 0 : i32
    return %c0_i32, %c0_i32_0 : i32, i32
  }
  func.func @transform_3(%arg0: i32, %arg1: i32) -> (i32, i32) {
    %c0_i32 = arith.constant 0 : i32
    %c0_i32_0 = arith.constant 0 : i32
    return %c0_i32, %arg1 : i32, i32
  }
  func.func @transform_4(%arg0: i32, %arg1: i32) -> (i32, i32) {
    %c0_i32 = arith.constant 0 : i32
    %c0_i32_0 = arith.constant 0 : i32
    return %c0_i32, %arg1 : i32, i32
  }
  func.func @transform_5(%arg0: i32, %arg1: i32) -> (i32, i32) {
    %c0_i32 = arith.constant 0 : i32
    return %arg0, %arg1 : i32, i32
  }
}

module attributes {stable_mosaic.version = 11 : i64} {
  func.func @_linear_res_kernel(%arg0: i32, %arg1: i32, %arg2: memref<8x256xbf16, #tpu.memory_space<vmem>>, %arg3: memref<256x128xbf16, #tpu.memory_space<vmem>>, %arg4: memref<1x128xf32, #tpu.memory_space<vmem>>, %arg5: memref<8x128xf32, #tpu.memory_space<vmem>>, %arg6: memref<8x128xf32, #tpu.memory_space<vmem>>) attributes {dimension_semantics = [#tpu.dimension_semantics<parallel>, #tpu.dimension_semantics<parallel>], iteration_bounds = array<i64: 2, 1>, scalar_prefetch = 0 : i64, scratch_operands = 0 : i64, tpu.core_type = #tpu.core_type<tc>, window_params = [{transform_indices = @transform_0, window_bounds = array<i64: 8, 256>}, {transform_indices = @transform_1, window_bounds = array<i64: 256, 128>}, {transform_indices = @transform_2, window_bounds = array<i64: 1, 128>}, {transform_indices = @transform_3, window_bounds = array<i64: 8, 128>}, {transform_indices = @transform_4, window_bounds = array<i64: 8, 128>}]} {
    %c0 = arith.constant 0 : index
    %c0_0 = arith.constant 0 : index
    %0 = vector.load %arg2[%c0, %c0_0] : memref<8x256xbf16, #tpu.memory_space<vmem>>, vector<8x256xbf16>
    %c0_1 = arith.constant 0 : index
    %c0_2 = arith.constant 0 : index
    %1 = vector.load %arg3[%c0_1, %c0_2] : memref<256x128xbf16, #tpu.memory_space<vmem>>, vector<256x128xbf16>
    %cst = arith.constant dense<0.000000e+00> : vector<8x128xf32>
    %2 = tpu.matmul %0, %1, %cst {dimension_numbers = #tpu.dot_dimension_numbers<[1], [0], [0], [1], [0, 0, 1, 1], [], []>} : vector<8x256xbf16>, vector<256x128xbf16>, vector<8x128xf32> -> vector<8x128xf32>
    %c0_3 = arith.constant 0 : index
    %c0_4 = arith.constant 0 : index
    %3 = vector.load %arg4[%c0_3, %c0_4] : memref<1x128xf32, #tpu.memory_space<vmem>>, vector<1x128xf32>
    %4 = vector.broadcast %3 : vector<1x128xf32> to vector<8x128xf32>
    %5 = arith.addf %2, %4 : vector<8x128xf32>
    %c0_5 = arith.constant 0 : index
    %c0_6 = arith.constant 0 : index
    %6 = vector.load %arg5[%c0_5, %c0_6] : memref<8x128xf32, #tpu.memory_space<vmem>>, vector<8x128xf32>
    %7 = arith.addf %5, %6 : vector<8x128xf32>
    %c0_7 = arith.constant 0 : index
    %c0_8 = arith.constant 0 : index
    %8 = vector.load %arg6[%c0_7, %c0_8] : memref<8x128xf32, #tpu.memory_space<vmem>>, vector<8x128xf32>
    tpu.vector_store %arg6[%c0_7, %c0_8], %7 {strides = array<i32>} : memref<8x128xf32, #tpu.memory_space<vmem>>, vector<8x128xf32>,
    return
  }
  func.func @transform_0(%arg0: i32, %arg1: i32) -> (i32, i32) {
    %c0_i32 = arith.constant 0 : i32
    %c0_i32_0 = arith.constant 0 : i32
    return %arg0, %c0_i32 : i32, i32
  }
  func.func @transform_1(%arg0: i32, %arg1: i32) -> (i32, i32) {
    %c0_i32 = arith.constant 0 : i32
    %c0_i32_0 = arith.constant 0 : i32
    return %c0_i32, %arg1 : i32, i32
  }
  func.func @transform_2(%arg0: i32, %arg1: i32) -> (i32, i32) {
    %c0_i32 = arith.constant 0 : i32
    %c0_i32_0 = arith.constant 0 : i32
    return %c0_i32, %arg1 : i32, i32
  }
  func.func @transform_3(%arg0: i32, %arg1: i32) -> (i32, i32) {
    %c0_i32 = arith.constant 0 : i32
    return %arg0, %arg1 : i32, i32
  }
  func.func @transform_4(%arg0: i32, %arg1: i32) -> (i32, i32) {
    %c0_i32 = arith.constant 0 : i32
    return %arg0, %arg1 : i32, i32
  }
}

module attributes {stable_mosaic.version = 11 : i64} {
  func.func @_ln_linear_kernel(%arg0: i32, %arg1: i32, %arg2: memref<8x64xf32, #tpu.memory_space<vmem>>, %arg3: memref<1x64xf32, #tpu.memory_space<vmem>>, %arg4: memref<1x64xf32, #tpu.memory_space<vmem>>, %arg5: memref<64x128xbf16, #tpu.memory_space<vmem>>, %arg6: memref<1x128xf32, #tpu.memory_space<vmem>>, %arg7: memref<8x128xf32, #tpu.memory_space<vmem>>, %arg8: memref<8x64xbf16, #tpu.memory_space<vmem>>) attributes {dimension_semantics = [#tpu.dimension_semantics<parallel>, #tpu.dimension_semantics<arbitrary>], iteration_bounds = array<i64: 2, 1>, scalar_prefetch = 0 : i64, scratch_operands = 1 : i64, tpu.core_type = #tpu.core_type<tc>, window_params = [{transform_indices = @transform_0, window_bounds = array<i64: 8, 64>}, {pipeline_mode = #tpu.pipeline_mode<synchronous>, transform_indices = @transform_1, window_bounds = array<i64: 1, 64>}, {pipeline_mode = #tpu.pipeline_mode<synchronous>, transform_indices = @transform_2, window_bounds = array<i64: 1, 64>}, {transform_indices = @transform_3, window_bounds = array<i64: 64, 128>}, {transform_indices = @transform_4, window_bounds = array<i64: 1, 128>}, {transform_indices = @transform_5, window_bounds = array<i64: 8, 128>}]} {
    %c0_i32 = arith.constant 0 : i32
    %0 = arith.cmpi eq, %arg1, %c0_i32 : i32
    %1 = arith.extui %0 : i1 to i32
    %c0_i32_0 = arith.constant 0 : i32
    %2 = arith.cmpi ne, %1, %c0_i32_0 : i32
    scf.if %2 {
      %c0_8 = arith.constant 0 : index
      %c0_9 = arith.constant 0 : index
      %10 = vector.load %arg2[%c0_8, %c0_9] : memref<8x64xf32, #tpu.memory_space<vmem>>, vector<8x64xf32>
      %cst_10 = arith.constant dense<0.000000e+00> : vector<8xf32>
      %11 = vector.multi_reduction <add>, %10, %cst_10 [1] : vector<8x64xf32> to vector<8xf32>
      %12 = vector.shape_cast %11 : vector<8xf32> to vector<8x1xf32>
      %cst_11 = arith.constant 6.400000e+01 : f32
      %13 = vector.broadcast %cst_11 : f32 to vector<8x1xf32>
      %14 = arith.divf %12, %13 : vector<8x1xf32>
      %15 = vector.broadcast %14 : vector<8x1xf32> to vector<8x64xf32>
      %16 = arith.subf %10, %15 : vector<8x64xf32>
      %17 = arith.mulf %16, %16 : vector<8x64xf32>
      %cst_12 = arith.constant dense<0.000000e+00> : vector<8xf32>
      %18 = vector.multi_reduction <add>, %17, %cst_12 [1] : vector<8x64xf32> to vector<8xf32>
      %19 = vector.shape_cast %18 : vector<8xf32> to vector<8x1xf32>
      %cst_13 = arith.constant 6.400000e+01 : f32
      %20 = vector.broadcast %cst_13 : f32 to vector<8x1xf32>
      %21 = arith.divf %19, %20 : vector<8x1xf32>
      %22 = vector.broadcast %14 : vector<8x1xf32> to vector<8x64xf32>
      %23 = arith.subf %10, %22 : vector<8x64xf32>
      %cst_14 = arith.constant 9.99999974E-6 : f32
      %24 = vector.broadcast %cst_14 : f32 to vector<8x1xf32>
      %25 = arith.addf %21, %24 : vector<8x1xf32>
      %26 = math.rsqrt %25 : vector<8x1xf32>
      %27 = vector.broadcast %26 : vector<8x1xf32> to vector<8x64xf32>
      %28 = arith.mulf %23, %27 : vector<8x64xf32>
      %c0_15 = arith.constant 0 : index
      %c0_16 = arith.constant 0 : index
      %29 = vector.load %arg3[%c0_15, %c0_16] : memref<1x64xf32, #tpu.memory_space<vmem>>, vector<1x64xf32>
      %30 = vector.broadcast %29 : vector<1x64xf32> to vector<8x64xf32>
      %31 = arith.mulf %28, %30 : vector<8x64xf32>
      %c0_17 = arith.constant 0 : index
      %c0_18 = arith.constant 0 : index
      %32 = vector.load %arg4[%c0_17, %c0_18] : memref<1x64xf32, #tpu.memory_space<vmem>>, vector<1x64xf32>
      %33 = vector.broadcast %32 : vector<1x64xf32> to vector<8x64xf32>
      %34 = arith.addf %31, %33 : vector<8x64xf32>
      %35 = arith.truncf %34 : vector<8x64xf32> to vector<8x64xbf16>
      %c0_19 = arith.constant 0 : index
      %c0_20 = arith.constant 0 : index
      %36 = vector.load %arg8[%c0_19, %c0_20] : memref<8x64xbf16, #tpu.memory_space<vmem>>, vector<8x64xbf16>
      tpu.vector_store %arg8[%c0_19, %c0_20], %35 {strides = array<i32>} : memref<8x64xbf16, #tpu.memory_space<vmem>>, vector<8x64xbf16>,
    } else {
    }
    %c0 = arith.constant 0 : index
    %c0_1 = arith.constant 0 : index
    %3 = vector.load %arg8[%c0, %c0_1] : memref<8x64xbf16, #tpu.memory_space<vmem>>, vector<8x64xbf16>
    %c0_2 = arith.constant 0 : index
    %c0_3 = arith.constant 0 : index
    %4 = vector.load %arg5[%c0_2, %c0_3] : memref<64x128xbf16, #tpu.memory_space<vmem>>, vector<64x128xbf16>
    %cst = arith.constant dense<0.000000e+00> : vector<8x128xf32>
    %5 = tpu.matmul %3, %4, %cst {dimension_numbers = #tpu.dot_dimension_numbers<[1], [0], [0], [1], [0, 0, 1, 1], [], []>} : vector<8x64xbf16>, vector<64x128xbf16>, vector<8x128xf32> -> vector<8x128xf32>
    %c0_4 = arith.constant 0 : index
    %c0_5 = arith.constant 0 : index
    %6 = vector.load %arg6[%c0_4, %c0_5] : memref<1x128xf32, #tpu.memory_space<vmem>>, vector<1x128xf32>
    %7 = vector.broadcast %6 : vector<1x128xf32> to vector<8x128xf32>
    %8 = arith.addf %5, %7 : vector<8x128xf32>
    %c0_6 = arith.constant 0 : index
    %c0_7 = arith.constant 0 : index
    %9 = vector.load %arg7[%c0_6, %c0_7] : memref<8x128xf32, #tpu.memory_space<vmem>>, vector<8x128xf32>
    tpu.vector_store %arg7[%c0_6, %c0_7], %8 {strides = array<i32>} : memref<8x128xf32, #tpu.memory_space<vmem>>, vector<8x128xf32>,
    return
  }
  func.func @transform_0(%arg0: i32, %arg1: i32) -> (i32, i32) {
    %c0_i32 = arith.constant 0 : i32
    %c0_i32_0 = arith.constant 0 : i32
    return %arg0, %c0_i32 : i32, i32
  }
  func.func @transform_1(%arg0: i32, %arg1: i32) -> (i32, i32) {
    %c0_i32 = arith.constant 0 : i32
    %c0_i32_0 = arith.constant 0 : i32
    %c0_i32_1 = arith.constant 0 : i32
    return %c0_i32, %c0_i32_0 : i32, i32
  }
  func.func @transform_2(%arg0: i32, %arg1: i32) -> (i32, i32) {
    %c0_i32 = arith.constant 0 : i32
    %c0_i32_0 = arith.constant 0 : i32
    %c0_i32_1 = arith.constant 0 : i32
    return %c0_i32, %c0_i32_0 : i32, i32
  }
  func.func @transform_3(%arg0: i32, %arg1: i32) -> (i32, i32) {
    %c0_i32 = arith.constant 0 : i32
    %c0_i32_0 = arith.constant 0 : i32
    return %c0_i32, %arg1 : i32, i32
  }
  func.func @transform_4(%arg0: i32, %arg1: i32) -> (i32, i32) {
    %c0_i32 = arith.constant 0 : i32
    %c0_i32_0 = arith.constant 0 : i32
    return %c0_i32, %arg1 : i32, i32
  }
  func.func @transform_5(%arg0: i32, %arg1: i32) -> (i32, i32) {
    %c0_i32 = arith.constant 0 : i32
    return %arg0, %arg1 : i32, i32
  }
}

module attributes {stable_mosaic.version = 11 : i64} {
  func.func @_ln_linear_kernel(%arg0: i32, %arg1: i32, %arg2: memref<24x32xf32, #tpu.memory_space<vmem>>, %arg3: memref<1x32xf32, #tpu.memory_space<vmem>>, %arg4: memref<1x32xf32, #tpu.memory_space<vmem>>, %arg5: memref<32x128xbf16, #tpu.memory_space<vmem>>, %arg6: memref<1x128xf32, #tpu.memory_space<vmem>>, %arg7: memref<24x128xbf16, #tpu.memory_space<vmem>>, %arg8: memref<24x32xbf16, #tpu.memory_space<vmem>>) attributes {dimension_semantics = [#tpu.dimension_semantics<parallel>, #tpu.dimension_semantics<arbitrary>], iteration_bounds = array<i64: 2, 1>, scalar_prefetch = 0 : i64, scratch_operands = 1 : i64, tpu.core_type = #tpu.core_type<tc>, window_params = [{transform_indices = @transform_0, window_bounds = array<i64: 24, 32>}, {pipeline_mode = #tpu.pipeline_mode<synchronous>, transform_indices = @transform_1, window_bounds = array<i64: 1, 32>}, {pipeline_mode = #tpu.pipeline_mode<synchronous>, transform_indices = @transform_2, window_bounds = array<i64: 1, 32>}, {transform_indices = @transform_3, window_bounds = array<i64: 32, 128>}, {transform_indices = @transform_4, window_bounds = array<i64: 1, 128>}, {transform_indices = @transform_5, window_bounds = array<i64: 24, 128>}]} {
    %c0_i32 = arith.constant 0 : i32
    %0 = arith.cmpi eq, %arg1, %c0_i32 : i32
    %1 = arith.extui %0 : i1 to i32
    %c0_i32_0 = arith.constant 0 : i32
    %2 = arith.cmpi ne, %1, %c0_i32_0 : i32
    scf.if %2 {
      %c0_8 = arith.constant 0 : index
      %c0_9 = arith.constant 0 : index
      %11 = vector.load %arg2[%c0_8, %c0_9] : memref<24x32xf32, #tpu.memory_space<vmem>>, vector<24x32xf32>
      %cst_10 = arith.constant dense<0.000000e+00> : vector<24xf32>
      %12 = vector.multi_reduction <add>, %11, %cst_10 [1] : vector<24x32xf32> to vector<24xf32>
      %13 = vector.shape_cast %12 : vector<24xf32> to vector<24x1xf32>
      %cst_11 = arith.constant 3.200000e+01 : f32
      %14 = vector.broadcast %cst_11 : f32 to vector<24x1xf32>
      %15 = arith.divf %13, %14 : vector<24x1xf32>
      %16 = vector.broadcast %15 : vector<24x1xf32> to vector<24x32xf32>
      %17 = arith.subf %11, %16 : vector<24x32xf32>
      %18 = arith.mulf %17, %17 : vector<24x32xf32>
      %cst_12 = arith.constant dense<0.000000e+00> : vector<24xf32>
      %19 = vector.multi_reduction <add>, %18, %cst_12 [1] : vector<24x32xf32> to vector<24xf32>
      %20 = vector.shape_cast %19 : vector<24xf32> to vector<24x1xf32>
      %cst_13 = arith.constant 3.200000e+01 : f32
      %21 = vector.broadcast %cst_13 : f32 to vector<24x1xf32>
      %22 = arith.divf %20, %21 : vector<24x1xf32>
      %23 = vector.broadcast %15 : vector<24x1xf32> to vector<24x32xf32>
      %24 = arith.subf %11, %23 : vector<24x32xf32>
      %cst_14 = arith.constant 9.99999974E-6 : f32
      %25 = vector.broadcast %cst_14 : f32 to vector<24x1xf32>
      %26 = arith.addf %22, %25 : vector<24x1xf32>
      %27 = math.rsqrt %26 : vector<24x1xf32>
      %28 = vector.broadcast %27 : vector<24x1xf32> to vector<24x32xf32>
      %29 = arith.mulf %24, %28 : vector<24x32xf32>
      %c0_15 = arith.constant 0 : index
      %c0_16 = arith.constant 0 : index
      %30 = vector.load %arg3[%c0_15, %c0_16] : memref<1x32xf32, #tpu.memory_space<vmem>>, vector<1x32xf32>
      %31 = vector.broadcast %30 : vector<1x32xf32> to vector<24x32xf32>
      %32 = arith.mulf %29, %31 : vector<24x32xf32>
      %c0_17 = arith.constant 0 : index
      %c0_18 = arith.constant 0 : index
      %33 = vector.load %arg4[%c0_17, %c0_18] : memref<1x32xf32, #tpu.memory_space<vmem>>, vector<1x32xf32>
      %34 = vector.broadcast %33 : vector<1x32xf32> to vector<24x32xf32>
      %35 = arith.addf %32, %34 : vector<24x32xf32>
      %36 = arith.truncf %35 : vector<24x32xf32> to vector<24x32xbf16>
      %c0_19 = arith.constant 0 : index
      %c0_20 = arith.constant 0 : index
      %37 = vector.load %arg8[%c0_19, %c0_20] : memref<24x32xbf16, #tpu.memory_space<vmem>>, vector<24x32xbf16>
      tpu.vector_store %arg8[%c0_19, %c0_20], %36 {strides = array<i32>} : memref<24x32xbf16, #tpu.memory_space<vmem>>, vector<24x32xbf16>,
    } else {
    }
    %c0 = arith.constant 0 : index
    %c0_1 = arith.constant 0 : index
    %3 = vector.load %arg8[%c0, %c0_1] : memref<24x32xbf16, #tpu.memory_space<vmem>>, vector<24x32xbf16>
    %c0_2 = arith.constant 0 : index
    %c0_3 = arith.constant 0 : index
    %4 = vector.load %arg5[%c0_2, %c0_3] : memref<32x128xbf16, #tpu.memory_space<vmem>>, vector<32x128xbf16>
    %cst = arith.constant dense<0.000000e+00> : vector<24x128xf32>
    %5 = tpu.matmul %3, %4, %cst {dimension_numbers = #tpu.dot_dimension_numbers<[1], [0], [0], [1], [0, 0, 1, 1], [], []>} : vector<24x32xbf16>, vector<32x128xbf16>, vector<24x128xf32> -> vector<24x128xf32>
    %c0_4 = arith.constant 0 : index
    %c0_5 = arith.constant 0 : index
    %6 = vector.load %arg6[%c0_4, %c0_5] : memref<1x128xf32, #tpu.memory_space<vmem>>, vector<1x128xf32>
    %7 = vector.broadcast %6 : vector<1x128xf32> to vector<24x128xf32>
    %8 = arith.addf %5, %7 : vector<24x128xf32>
    %9 = arith.truncf %8 : vector<24x128xf32> to vector<24x128xbf16>
    %c0_6 = arith.constant 0 : index
    %c0_7 = arith.constant 0 : index
    %10 = vector.load %arg7[%c0_6, %c0_7] : memref<24x128xbf16, #tpu.memory_space<vmem>>, vector<24x128xbf16>
    tpu.vector_store %arg7[%c0_6, %c0_7], %9 {strides = array<i32>} : memref<24x128xbf16, #tpu.memory_space<vmem>>, vector<24x128xbf16>,
    return
  }
  func.func @transform_0(%arg0: i32, %arg1: i32) -> (i32, i32) {
    %c0_i32 = arith.constant 0 : i32
    %c0_i32_0 = arith.constant 0 : i32
    return %arg0, %c0_i32 : i32, i32
  }
  func.func @transform_1(%arg0: i32, %arg1: i32) -> (i32, i32) {
    %c0_i32 = arith.constant 0 : i32
    %c0_i32_0 = arith.constant 0 : i32
    %c0_i32_1 = arith.constant 0 : i32
    return %c0_i32, %c0_i32_0 : i32, i32
  }
  func.func @transform_2(%arg0: i32, %arg1: i32) -> (i32, i32) {
    %c0_i32 = arith.constant 0 : i32
    %c0_i32_0 = arith.constant 0 : i32
    %c0_i32_1 = arith.constant 0 : i32
    return %c0_i32, %c0_i32_0 : i32, i32
  }
  func.func @transform_3(%arg0: i32, %arg1: i32) -> (i32, i32) {
    %c0_i32 = arith.constant 0 : i32
    %c0_i32_0 = arith.constant 0 : i32
    return %c0_i32, %arg1 : i32, i32
  }
  func.func @transform_4(%arg0: i32, %arg1: i32) -> (i32, i32) {
    %c0_i32 = arith.constant 0 : i32
    %c0_i32_0 = arith.constant 0 : i32
    return %c0_i32, %arg1 : i32, i32
  }
  func.func @transform_5(%arg0: i32, %arg1: i32) -> (i32, i32) {
    %c0_i32 = arith.constant 0 : i32
    return %arg0, %arg1 : i32, i32
  }
}

module attributes {stable_mosaic.version = 11 : i64} {
  func.func @_attn_kernel(%arg0: i32, %arg1: memref<1x17x96xbf16, #tpu.memory_space<vmem>>, %arg2: memref<1x17x32xbf16, #tpu.memory_space<vmem>>) attributes {dimension_semantics = [#tpu.dimension_semantics<parallel>], iteration_bounds = array<i64: 2>, scalar_prefetch = 0 : i64, scratch_operands = 0 : i64, tpu.core_type = #tpu.core_type<tc>, window_params = [{transform_indices = @transform_0, window_bounds = array<i64: 1, 17, 96>}, {transform_indices = @transform_1, window_bounds = array<i64: 1, 17, 32>}]} {
    %c0 = arith.constant 0 : index
    %c0_0 = arith.constant 0 : index
    %c0_1 = arith.constant 0 : index
    %0 = vector.load %arg1[%c0, %c0_0, %c0_1] : memref<1x17x96xbf16, #tpu.memory_space<vmem>>, vector<1x17x96xbf16>
    %1 = vector.shape_cast %0 : vector<1x17x96xbf16> to vector<17x96xbf16>
    %2 = vector.extract_strided_slice %1 {offsets = [0, 0], sizes = [17, 8], strides = [1, 1]} : vector<17x96xbf16> to vector<17x8xbf16>
    %cst = arith.constant 3.535160e-01 : bf16
    %3 = vector.broadcast %cst : bf16 to vector<17x8xbf16>
    %4 = arith.mulf %2, %3 : vector<17x8xbf16>
    %5 = vector.extract_strided_slice %1 {offsets = [0, 32], sizes = [17, 8], strides = [1, 1]} : vector<17x96xbf16> to vector<17x8xbf16>
    %6 = vector.extract_strided_slice %1 {offsets = [0, 64], sizes = [17, 8], strides = [1, 1]} : vector<17x96xbf16> to vector<17x8xbf16>
    %cst_2 = arith.constant dense<0.000000e+00> : vector<17x17xf32>
    %7 = tpu.matmul %4, %5, %cst_2 {dimension_numbers = #tpu.dot_dimension_numbers<[1], [1], [0], [0], [0, 0, 1, 0], [], []>} : vector<17x8xbf16>, vector<17x8xbf16>, vector<17x17xf32> -> vector<17x17xf32>
    %cst_3 = arith.constant dense<0xFF800000> : vector<17xf32>
    %8 = vector.multi_reduction <maximumf>, %7, %cst_3 [1] : vector<17x17xf32> to vector<17xf32>
    %9 = vector.shape_cast %8 : vector<17xf32> to vector<17x1xf32>
    %10 = vector.broadcast %9 : vector<17x1xf32> to vector<17x17xf32>
    %11 = arith.subf %7, %10 : vector<17x17xf32>
    %12 = math.exp %11 : vector<17x17xf32>
    %cst_4 = arith.constant dense<0.000000e+00> : vector<17xf32>
    %13 = vector.multi_reduction <add>, %12, %cst_4 [1] : vector<17x17xf32> to vector<17xf32>
    %14 = vector.shape_cast %13 : vector<17xf32> to vector<17x1xf32>
    %15 = tpu.reciprocal %14 {approx = true} : vector<17x1xf32> -> vector<17x1xf32>
    %16 = vector.broadcast %15 : vector<17x1xf32> to vector<17x17xf32>
    %17 = arith.mulf %12, %16 : vector<17x17xf32>
    %18 = arith.truncf %17 : vector<17x17xf32> to vector<17x17xbf16>
    %cst_5 = arith.constant dense<0.000000e+00> : vector<17x8xf32>
    %19 = tpu.matmul %18, %6, %cst_5 {dimension_numbers = #tpu.dot_dimension_numbers<[1], [0], [0], [1], [0, 0, 1, 1], [], []>} : vector<17x17xbf16>, vector<17x8xbf16>, vector<17x8xf32> -> vector<17x8xf32>
    %20 = vector.extract_strided_slice %1 {offsets = [0, 8], sizes = [17, 8], strides = [1, 1]} : vector<17x96xbf16> to vector<17x8xbf16>
    %cst_6 = arith.constant 3.535160e-01 : bf16
    %21 = vector.broadcast %cst_6 : bf16 to vector<17x8xbf16>
    %22 = arith.mulf %20, %21 : vector<17x8xbf16>
    %23 = vector.extract_strided_slice %1 {offsets = [0, 40], sizes = [17, 8], strides = [1, 1]} : vector<17x96xbf16> to vector<17x8xbf16>
    %24 = vector.extract_strided_slice %1 {offsets = [0, 72], sizes = [17, 8], strides = [1, 1]} : vector<17x96xbf16> to vector<17x8xbf16>
    %cst_7 = arith.constant dense<0.000000e+00> : vector<17x17xf32>
    %25 = tpu.matmul %22, %23, %cst_7 {dimension_numbers = #tpu.dot_dimension_numbers<[1], [1], [0], [0], [0, 0, 1, 0], [], []>} : vector<17x8xbf16>, vector<17x8xbf16>, vector<17x17xf32> -> vector<17x17xf32>
    %cst_8 = arith.constant dense<0xFF800000> : vector<17xf32>
    %26 = vector.multi_reduction <maximumf>, %25, %cst_8 [1] : vector<17x17xf32> to vector<17xf32>
    %27 = vector.shape_cast %26 : vector<17xf32> to vector<17x1xf32>
    %28 = vector.broadcast %27 : vector<17x1xf32> to vector<17x17xf32>
    %29 = arith.subf %25, %28 : vector<17x17xf32>
    %30 = math.exp %29 : vector<17x17xf32>
    %cst_9 = arith.constant dense<0.000000e+00> : vector<17xf32>
    %31 = vector.multi_reduction <add>, %30, %cst_9 [1] : vector<17x17xf32> to vector<17xf32>
    %32 = vector.shape_cast %31 : vector<17xf32> to vector<17x1xf32>
    %33 = tpu.reciprocal %32 {approx = true} : vector<17x1xf32> -> vector<17x1xf32>
    %34 = vector.broadcast %33 : vector<17x1xf32> to vector<17x17xf32>
    %35 = arith.mulf %30, %34 : vector<17x17xf32>
    %36 = arith.truncf %35 : vector<17x17xf32> to vector<17x17xbf16>
    %cst_10 = arith.constant dense<0.000000e+00> : vector<17x8xf32>
    %37 = tpu.matmul %36, %24, %cst_10 {dimension_numbers = #tpu.dot_dimension_numbers<[1], [0], [0], [1], [0, 0, 1, 1], [], []>} : vector<17x17xbf16>, vector<17x8xbf16>, vector<17x8xf32> -> vector<17x8xf32>
    %38 = vector.extract_strided_slice %1 {offsets = [0, 16], sizes = [17, 8], strides = [1, 1]} : vector<17x96xbf16> to vector<17x8xbf16>
    %cst_11 = arith.constant 3.535160e-01 : bf16
    %39 = vector.broadcast %cst_11 : bf16 to vector<17x8xbf16>
    %40 = arith.mulf %38, %39 : vector<17x8xbf16>
    %41 = vector.extract_strided_slice %1 {offsets = [0, 48], sizes = [17, 8], strides = [1, 1]} : vector<17x96xbf16> to vector<17x8xbf16>
    %42 = vector.extract_strided_slice %1 {offsets = [0, 80], sizes = [17, 8], strides = [1, 1]} : vector<17x96xbf16> to vector<17x8xbf16>
    %cst_12 = arith.constant dense<0.000000e+00> : vector<17x17xf32>
    %43 = tpu.matmul %40, %41, %cst_12 {dimension_numbers = #tpu.dot_dimension_numbers<[1], [1], [0], [0], [0, 0, 1, 0], [], []>} : vector<17x8xbf16>, vector<17x8xbf16>, vector<17x17xf32> -> vector<17x17xf32>
    %cst_13 = arith.constant dense<0xFF800000> : vector<17xf32>
    %44 = vector.multi_reduction <maximumf>, %43, %cst_13 [1] : vector<17x17xf32> to vector<17xf32>
    %45 = vector.shape_cast %44 : vector<17xf32> to vector<17x1xf32>
    %46 = vector.broadcast %45 : vector<17x1xf32> to vector<17x17xf32>
    %47 = arith.subf %43, %46 : vector<17x17xf32>
    %48 = math.exp %47 : vector<17x17xf32>
    %cst_14 = arith.constant dense<0.000000e+00> : vector<17xf32>
    %49 = vector.multi_reduction <add>, %48, %cst_14 [1] : vector<17x17xf32> to vector<17xf32>
    %50 = vector.shape_cast %49 : vector<17xf32> to vector<17x1xf32>
    %51 = tpu.reciprocal %50 {approx = true} : vector<17x1xf32> -> vector<17x1xf32>
    %52 = vector.broadcast %51 : vector<17x1xf32> to vector<17x17xf32>
    %53 = arith.mulf %48, %52 : vector<17x17xf32>
    %54 = arith.truncf %53 : vector<17x17xf32> to vector<17x17xbf16>
    %cst_15 = arith.constant dense<0.000000e+00> : vector<17x8xf32>
    %55 = tpu.matmul %54, %42, %cst_15 {dimension_numbers = #tpu.dot_dimension_numbers<[1], [0], [0], [1], [0, 0, 1, 1], [], []>} : vector<17x17xbf16>, vector<17x8xbf16>, vector<17x8xf32> -> vector<17x8xf32>
    %56 = vector.extract_strided_slice %1 {offsets = [0, 24], sizes = [17, 8], strides = [1, 1]} : vector<17x96xbf16> to vector<17x8xbf16>
    %cst_16 = arith.constant 3.535160e-01 : bf16
    %57 = vector.broadcast %cst_16 : bf16 to vector<17x8xbf16>
    %58 = arith.mulf %56, %57 : vector<17x8xbf16>
    %59 = vector.extract_strided_slice %1 {offsets = [0, 56], sizes = [17, 8], strides = [1, 1]} : vector<17x96xbf16> to vector<17x8xbf16>
    %60 = vector.extract_strided_slice %1 {offsets = [0, 88], sizes = [17, 8], strides = [1, 1]} : vector<17x96xbf16> to vector<17x8xbf16>
    %cst_17 = arith.constant dense<0.000000e+00> : vector<17x17xf32>
    %61 = tpu.matmul %58, %59, %cst_17 {dimension_numbers = #tpu.dot_dimension_numbers<[1], [1], [0], [0], [0, 0, 1, 0], [], []>} : vector<17x8xbf16>, vector<17x8xbf16>, vector<17x17xf32> -> vector<17x17xf32>
    %cst_18 = arith.constant dense<0xFF800000> : vector<17xf32>
    %62 = vector.multi_reduction <maximumf>, %61, %cst_18 [1] : vector<17x17xf32> to vector<17xf32>
    %63 = vector.shape_cast %62 : vector<17xf32> to vector<17x1xf32>
    %64 = vector.broadcast %63 : vector<17x1xf32> to vector<17x17xf32>
    %65 = arith.subf %61, %64 : vector<17x17xf32>
    %66 = math.exp %65 : vector<17x17xf32>
    %cst_19 = arith.constant dense<0.000000e+00> : vector<17xf32>
    %67 = vector.multi_reduction <add>, %66, %cst_19 [1] : vector<17x17xf32> to vector<17xf32>
    %68 = vector.shape_cast %67 : vector<17xf32> to vector<17x1xf32>
    %69 = tpu.reciprocal %68 {approx = true} : vector<17x1xf32> -> vector<17x1xf32>
    %70 = vector.broadcast %69 : vector<17x1xf32> to vector<17x17xf32>
    %71 = arith.mulf %66, %70 : vector<17x17xf32>
    %72 = arith.truncf %71 : vector<17x17xf32> to vector<17x17xbf16>
    %cst_20 = arith.constant dense<0.000000e+00> : vector<17x8xf32>
    %73 = tpu.matmul %72, %60, %cst_20 {dimension_numbers = #tpu.dot_dimension_numbers<[1], [0], [0], [1], [0, 0, 1, 1], [], []>} : vector<17x17xbf16>, vector<17x8xbf16>, vector<17x8xf32> -> vector<17x8xf32>
    %74 = tpu.concatenate %19, %37, %55, %73 in 1 : vector<17x8xf32>, vector<17x8xf32>, vector<17x8xf32>, vector<17x8xf32> -> vector<17x32xf32>
    %75 = arith.truncf %74 : vector<17x32xf32> to vector<17x32xbf16>
    %c0_21 = arith.constant 0 : index
    %c0_22 = arith.constant 0 : index
    %c0_23 = arith.constant 0 : index
    %76 = vector.load %arg2[%c0_21, %c0_22, %c0_23] : memref<1x17x32xbf16, #tpu.memory_space<vmem>>, vector<1x17x32xbf16>
    %77 = vector.shape_cast %76 : vector<1x17x32xbf16> to vector<17x32xbf16>
    %78 = vector.shape_cast %75 : vector<17x32xbf16> to vector<1x17x32xbf16>
    tpu.vector_store %arg2[%c0_21, %c0_22, %c0_23], %78 {strides = array<i32>} : memref<1x17x32xbf16, #tpu.memory_space<vmem>>, vector<1x17x32xbf16>,
    return
  }
  func.func @transform_0(%arg0: i32) -> (i32, i32, i32) {
    %c0_i32 = arith.constant 0 : i32
    %c0_i32_0 = arith.constant 0 : i32
    %c0_i32_1 = arith.constant 0 : i32
    return %arg0, %c0_i32, %c0_i32_0 : i32, i32, i32
  }
  func.func @transform_1(%arg0: i32) -> (i32, i32, i32) {
    %c0_i32 = arith.constant 0 : i32
    %c0_i32_0 = arith.constant 0 : i32
    %c0_i32_1 = arith.constant 0 : i32
    return %arg0, %c0_i32, %c0_i32_0 : i32, i32, i32
  }
}

module attributes {stable_mosaic.version = 11 : i64} {
  func.func @_linear_res_kernel(%arg0: i32, %arg1: i32, %arg2: memref<24x32xbf16, #tpu.memory_space<vmem>>, %arg3: memref<32x128xbf16, #tpu.memory_space<vmem>>, %arg4: memref<1x128xf32, #tpu.memory_space<vmem>>, %arg5: memref<24x128xf32, #tpu.memory_space<vmem>>, %arg6: memref<24x128xf32, #tpu.memory_space<vmem>>) attributes {dimension_semantics = [#tpu.dimension_semantics<parallel>, #tpu.dimension_semantics<parallel>], iteration_bounds = array<i64: 2, 1>, scalar_prefetch = 0 : i64, scratch_operands = 0 : i64, tpu.core_type = #tpu.core_type<tc>, window_params = [{transform_indices = @transform_0, window_bounds = array<i64: 24, 32>}, {transform_indices = @transform_1, window_bounds = array<i64: 32, 128>}, {transform_indices = @transform_2, window_bounds = array<i64: 1, 128>}, {transform_indices = @transform_3, window_bounds = array<i64: 24, 128>}, {transform_indices = @transform_4, window_bounds = array<i64: 24, 128>}]} {
    %c0 = arith.constant 0 : index
    %c0_0 = arith.constant 0 : index
    %0 = vector.load %arg2[%c0, %c0_0] : memref<24x32xbf16, #tpu.memory_space<vmem>>, vector<24x32xbf16>
    %c0_1 = arith.constant 0 : index
    %c0_2 = arith.constant 0 : index
    %1 = vector.load %arg3[%c0_1, %c0_2] : memref<32x128xbf16, #tpu.memory_space<vmem>>, vector<32x128xbf16>
    %cst = arith.constant dense<0.000000e+00> : vector<24x128xf32>
    %2 = tpu.matmul %0, %1, %cst {dimension_numbers = #tpu.dot_dimension_numbers<[1], [0], [0], [1], [0, 0, 1, 1], [], []>} : vector<24x32xbf16>, vector<32x128xbf16>, vector<24x128xf32> -> vector<24x128xf32>
    %c0_3 = arith.constant 0 : index
    %c0_4 = arith.constant 0 : index
    %3 = vector.load %arg4[%c0_3, %c0_4] : memref<1x128xf32, #tpu.memory_space<vmem>>, vector<1x128xf32>
    %4 = vector.broadcast %3 : vector<1x128xf32> to vector<24x128xf32>
    %5 = arith.addf %2, %4 : vector<24x128xf32>
    %c0_5 = arith.constant 0 : index
    %c0_6 = arith.constant 0 : index
    %6 = vector.load %arg5[%c0_5, %c0_6] : memref<24x128xf32, #tpu.memory_space<vmem>>, vector<24x128xf32>
    %7 = arith.addf %5, %6 : vector<24x128xf32>
    %c0_7 = arith.constant 0 : index
    %c0_8 = arith.constant 0 : index
    %8 = vector.load %arg6[%c0_7, %c0_8] : memref<24x128xf32, #tpu.memory_space<vmem>>, vector<24x128xf32>
    tpu.vector_store %arg6[%c0_7, %c0_8], %7 {strides = array<i32>} : memref<24x128xf32, #tpu.memory_space<vmem>>, vector<24x128xf32>,
    return
  }
  func.func @transform_0(%arg0: i32, %arg1: i32) -> (i32, i32) {
    %c0_i32 = arith.constant 0 : i32
    %c0_i32_0 = arith.constant 0 : i32
    return %arg0, %c0_i32 : i32, i32
  }
  func.func @transform_1(%arg0: i32, %arg1: i32) -> (i32, i32) {
    %c0_i32 = arith.constant 0 : i32
    %c0_i32_0 = arith.constant 0 : i32
    return %c0_i32, %arg1 : i32, i32
  }
  func.func @transform_2(%arg0: i32, %arg1: i32) -> (i32, i32) {
    %c0_i32 = arith.constant 0 : i32
    %c0_i32_0 = arith.constant 0 : i32
    return %c0_i32, %arg1 : i32, i32
  }
  func.func @transform_3(%arg0: i32, %arg1: i32) -> (i32, i32) {
    %c0_i32 = arith.constant 0 : i32
    return %arg0, %arg1 : i32, i32
  }
  func.func @transform_4(%arg0: i32, %arg1: i32) -> (i32, i32) {
    %c0_i32 = arith.constant 0 : i32
    return %arg0, %arg1 : i32, i32
  }
}

module attributes {stable_mosaic.version = 11 : i64} {
  func.func @_ln_linear_kernel(%arg0: i32, %arg1: i32, %arg2: memref<24x32xf32, #tpu.memory_space<vmem>>, %arg3: memref<1x32xf32, #tpu.memory_space<vmem>>, %arg4: memref<1x32xf32, #tpu.memory_space<vmem>>, %arg5: memref<32x128xbf16, #tpu.memory_space<vmem>>, %arg6: memref<1x128xf32, #tpu.memory_space<vmem>>, %arg7: memref<24x128xbf16, #tpu.memory_space<vmem>>, %arg8: memref<24x32xbf16, #tpu.memory_space<vmem>>) attributes {dimension_semantics = [#tpu.dimension_semantics<parallel>, #tpu.dimension_semantics<arbitrary>], iteration_bounds = array<i64: 2, 1>, scalar_prefetch = 0 : i64, scratch_operands = 1 : i64, tpu.core_type = #tpu.core_type<tc>, window_params = [{transform_indices = @transform_0, window_bounds = array<i64: 24, 32>}, {pipeline_mode = #tpu.pipeline_mode<synchronous>, transform_indices = @transform_1, window_bounds = array<i64: 1, 32>}, {pipeline_mode = #tpu.pipeline_mode<synchronous>, transform_indices = @transform_2, window_bounds = array<i64: 1, 32>}, {transform_indices = @transform_3, window_bounds = array<i64: 32, 128>}, {transform_indices = @transform_4, window_bounds = array<i64: 1, 128>}, {transform_indices = @transform_5, window_bounds = array<i64: 24, 128>}]} {
    %c0_i32 = arith.constant 0 : i32
    %0 = arith.cmpi eq, %arg1, %c0_i32 : i32
    %1 = arith.extui %0 : i1 to i32
    %c0_i32_0 = arith.constant 0 : i32
    %2 = arith.cmpi ne, %1, %c0_i32_0 : i32
    scf.if %2 {
      %c0_23 = arith.constant 0 : index
      %c0_24 = arith.constant 0 : index
      %51 = vector.load %arg2[%c0_23, %c0_24] : memref<24x32xf32, #tpu.memory_space<vmem>>, vector<24x32xf32>
      %cst_25 = arith.constant dense<0.000000e+00> : vector<24xf32>
      %52 = vector.multi_reduction <add>, %51, %cst_25 [1] : vector<24x32xf32> to vector<24xf32>
      %53 = vector.shape_cast %52 : vector<24xf32> to vector<24x1xf32>
      %cst_26 = arith.constant 3.200000e+01 : f32
      %54 = vector.broadcast %cst_26 : f32 to vector<24x1xf32>
      %55 = arith.divf %53, %54 : vector<24x1xf32>
      %56 = vector.broadcast %55 : vector<24x1xf32> to vector<24x32xf32>
      %57 = arith.subf %51, %56 : vector<24x32xf32>
      %58 = arith.mulf %57, %57 : vector<24x32xf32>
      %cst_27 = arith.constant dense<0.000000e+00> : vector<24xf32>
      %59 = vector.multi_reduction <add>, %58, %cst_27 [1] : vector<24x32xf32> to vector<24xf32>
      %60 = vector.shape_cast %59 : vector<24xf32> to vector<24x1xf32>
      %cst_28 = arith.constant 3.200000e+01 : f32
      %61 = vector.broadcast %cst_28 : f32 to vector<24x1xf32>
      %62 = arith.divf %60, %61 : vector<24x1xf32>
      %63 = vector.broadcast %55 : vector<24x1xf32> to vector<24x32xf32>
      %64 = arith.subf %51, %63 : vector<24x32xf32>
      %cst_29 = arith.constant 9.99999974E-6 : f32
      %65 = vector.broadcast %cst_29 : f32 to vector<24x1xf32>
      %66 = arith.addf %62, %65 : vector<24x1xf32>
      %67 = math.rsqrt %66 : vector<24x1xf32>
      %68 = vector.broadcast %67 : vector<24x1xf32> to vector<24x32xf32>
      %69 = arith.mulf %64, %68 : vector<24x32xf32>
      %c0_30 = arith.constant 0 : index
      %c0_31 = arith.constant 0 : index
      %70 = vector.load %arg3[%c0_30, %c0_31] : memref<1x32xf32, #tpu.memory_space<vmem>>, vector<1x32xf32>
      %71 = vector.broadcast %70 : vector<1x32xf32> to vector<24x32xf32>
      %72 = arith.mulf %69, %71 : vector<24x32xf32>
      %c0_32 = arith.constant 0 : index
      %c0_33 = arith.constant 0 : index
      %73 = vector.load %arg4[%c0_32, %c0_33] : memref<1x32xf32, #tpu.memory_space<vmem>>, vector<1x32xf32>
      %74 = vector.broadcast %73 : vector<1x32xf32> to vector<24x32xf32>
      %75 = arith.addf %72, %74 : vector<24x32xf32>
      %76 = arith.truncf %75 : vector<24x32xf32> to vector<24x32xbf16>
      %c0_34 = arith.constant 0 : index
      %c0_35 = arith.constant 0 : index
      %77 = vector.load %arg8[%c0_34, %c0_35] : memref<24x32xbf16, #tpu.memory_space<vmem>>, vector<24x32xbf16>
      tpu.vector_store %arg8[%c0_34, %c0_35], %76 {strides = array<i32>} : memref<24x32xbf16, #tpu.memory_space<vmem>>, vector<24x32xbf16>,
    } else {
    }
    %c0 = arith.constant 0 : index
    %c0_1 = arith.constant 0 : index
    %3 = vector.load %arg8[%c0, %c0_1] : memref<24x32xbf16, #tpu.memory_space<vmem>>, vector<24x32xbf16>
    %c0_2 = arith.constant 0 : index
    %c0_3 = arith.constant 0 : index
    %4 = vector.load %arg5[%c0_2, %c0_3] : memref<32x128xbf16, #tpu.memory_space<vmem>>, vector<32x128xbf16>
    %cst = arith.constant dense<0.000000e+00> : vector<24x128xf32>
    %5 = tpu.matmul %3, %4, %cst {dimension_numbers = #tpu.dot_dimension_numbers<[1], [0], [0], [1], [0, 0, 1, 1], [], []>} : vector<24x32xbf16>, vector<32x128xbf16>, vector<24x128xf32> -> vector<24x128xf32>
    %c0_4 = arith.constant 0 : index
    %c0_5 = arith.constant 0 : index
    %6 = vector.load %arg6[%c0_4, %c0_5] : memref<1x128xf32, #tpu.memory_space<vmem>>, vector<1x128xf32>
    %7 = vector.broadcast %6 : vector<1x128xf32> to vector<24x128xf32>
    %8 = arith.addf %5, %7 : vector<24x128xf32>
    %cst_6 = arith.constant 0.707106769 : f32
    %9 = vector.broadcast %cst_6 : f32 to vector<24x128xf32>
    %10 = arith.mulf %8, %9 : vector<24x128xf32>
    %11 = math.absf %10 : vector<24x128xf32>
    %cst_7 = arith.constant 0.327591091 : f32
    %12 = vector.broadcast %cst_7 : f32 to vector<24x128xf32>
    %13 = arith.mulf %12, %11 : vector<24x128xf32>
    %cst_8 = arith.constant 1.000000e+00 : f32
    %14 = vector.broadcast %cst_8 : f32 to vector<24x128xf32>
    %15 = arith.addf %14, %13 : vector<24x128xf32>
    %cst_9 = arith.constant 1.000000e+00 : f32
    %16 = vector.broadcast %cst_9 : f32 to vector<24x128xf32>
    %17 = arith.divf %16, %15 : vector<24x128xf32>
    %cst_10 = arith.constant 1.06140542 : f32
    %18 = vector.broadcast %cst_10 : f32 to vector<24x128xf32>
    %19 = arith.mulf %17, %18 : vector<24x128xf32>
    %cst_11 = arith.constant -1.45315206 : f32
    %20 = vector.broadcast %cst_11 : f32 to vector<24x128xf32>
    %21 = arith.addf %20, %19 : vector<24x128xf32>
    %22 = arith.mulf %17, %21 : vector<24x128xf32>
    %cst_12 = arith.constant 1.42141378 : f32
    %23 = vector.broadcast %cst_12 : f32 to vector<24x128xf32>
    %24 = arith.addf %23, %22 : vector<24x128xf32>
    %25 = arith.mulf %17, %24 : vector<24x128xf32>
    %cst_13 = arith.constant -0.284496725 : f32
    %26 = vector.broadcast %cst_13 : f32 to vector<24x128xf32>
    %27 = arith.addf %26, %25 : vector<24x128xf32>
    %28 = arith.mulf %17, %27 : vector<24x128xf32>
    %cst_14 = arith.constant 0.254829586 : f32
    %29 = vector.broadcast %cst_14 : f32 to vector<24x128xf32>
    %30 = arith.addf %29, %28 : vector<24x128xf32>
    %31 = arith.mulf %17, %30 : vector<24x128xf32>
    %cst_15 = arith.constant 0.000000e+00 : f32
    %32 = vector.broadcast %cst_15 : f32 to vector<24x128xf32>
    %33 = arith.subf %32, %11 : vector<24x128xf32>
    %34 = arith.mulf %33, %11 : vector<24x128xf32>
    %35 = math.exp %34 : vector<24x128xf32>
    %36 = arith.mulf %31, %35 : vector<24x128xf32>
    %cst_16 = arith.constant 1.000000e+00 : f32
    %37 = vector.broadcast %cst_16 : f32 to vector<24x128xf32>
    %38 = arith.subf %37, %36 : vector<24x128xf32>
    %cst_17 = arith.constant 0.000000e+00 : f32
    %39 = vector.broadcast %cst_17 : f32 to vector<24x128xf32>
    %40 = arith.cmpf oge, %10, %39 : vector<24x128xf32>
    %cst_18 = arith.constant 0.000000e+00 : f32
    %41 = vector.broadcast %cst_18 : f32 to vector<24x128xf32>
    %42 = arith.subf %41, %38 : vector<24x128xf32>
    %43 = arith.select %40, %38, %42 : vector<24x128xi1>, vector<24x128xf32>
    %cst_19 = arith.constant 5.000000e-01 : f32
    %44 = vector.broadcast %cst_19 : f32 to vector<24x128xf32>
    %45 = arith.mulf %44, %8 : vector<24x128xf32>
    %cst_20 = arith.constant 1.000000e+00 : f32
    %46 = vector.broadcast %cst_20 : f32 to vector<24x128xf32>
    %47 = arith.addf %46, %43 : vector<24x128xf32>
    %48 = arith.mulf %45, %47 : vector<24x128xf32>
    %49 = arith.truncf %48 : vector<24x128xf32> to vector<24x128xbf16>
    %c0_21 = arith.constant 0 : index
    %c0_22 = arith.constant 0 : index
    %50 = vector.load %arg7[%c0_21, %c0_22] : memref<24x128xbf16, #tpu.memory_space<vmem>>, vector<24x128xbf16>
    tpu.vector_store %arg7[%c0_21, %c0_22], %49 {strides = array<i32>} : memref<24x128xbf16, #tpu.memory_space<vmem>>, vector<24x128xbf16>,
    return
  }
  func.func @transform_0(%arg0: i32, %arg1: i32) -> (i32, i32) {
    %c0_i32 = arith.constant 0 : i32
    %c0_i32_0 = arith.constant 0 : i32
    return %arg0, %c0_i32 : i32, i32
  }
  func.func @transform_1(%arg0: i32, %arg1: i32) -> (i32, i32) {
    %c0_i32 = arith.constant 0 : i32
    %c0_i32_0 = arith.constant 0 : i32
    %c0_i32_1 = arith.constant 0 : i32
    return %c0_i32, %c0_i32_0 : i32, i32
  }
  func.func @transform_2(%arg0: i32, %arg1: i32) -> (i32, i32) {
    %c0_i32 = arith.constant 0 : i32
    %c0_i32_0 = arith.constant 0 : i32
    %c0_i32_1 = arith.constant 0 : i32
    return %c0_i32, %c0_i32_0 : i32, i32
  }
  func.func @transform_3(%arg0: i32, %arg1: i32) -> (i32, i32) {
    %c0_i32 = arith.constant 0 : i32
    %c0_i32_0 = arith.constant 0 : i32
    return %c0_i32, %arg1 : i32, i32
  }
  func.func @transform_4(%arg0: i32, %arg1: i32) -> (i32, i32) {
    %c0_i32 = arith.constant 0 : i32
    %c0_i32_0 = arith.constant 0 : i32
    return %c0_i32, %arg1 : i32, i32
  }
  func.func @transform_5(%arg0: i32, %arg1: i32) -> (i32, i32) {
    %c0_i32 = arith.constant 0 : i32
    return %arg0, %arg1 : i32, i32
  }
}

module attributes {stable_mosaic.version = 11 : i64} {
  func.func @_linear_res_kernel(%arg0: i32, %arg1: i32, %arg2: memref<24x128xbf16, #tpu.memory_space<vmem>>, %arg3: memref<128x128xbf16, #tpu.memory_space<vmem>>, %arg4: memref<1x128xf32, #tpu.memory_space<vmem>>, %arg5: memref<24x128xf32, #tpu.memory_space<vmem>>, %arg6: memref<24x128xf32, #tpu.memory_space<vmem>>) attributes {dimension_semantics = [#tpu.dimension_semantics<parallel>, #tpu.dimension_semantics<parallel>], iteration_bounds = array<i64: 2, 1>, scalar_prefetch = 0 : i64, scratch_operands = 0 : i64, tpu.core_type = #tpu.core_type<tc>, window_params = [{transform_indices = @transform_0, window_bounds = array<i64: 24, 128>}, {transform_indices = @transform_1, window_bounds = array<i64: 128, 128>}, {transform_indices = @transform_2, window_bounds = array<i64: 1, 128>}, {transform_indices = @transform_3, window_bounds = array<i64: 24, 128>}, {transform_indices = @transform_4, window_bounds = array<i64: 24, 128>}]} {
    %c0 = arith.constant 0 : index
    %c0_0 = arith.constant 0 : index
    %0 = vector.load %arg2[%c0, %c0_0] : memref<24x128xbf16, #tpu.memory_space<vmem>>, vector<24x128xbf16>
    %c0_1 = arith.constant 0 : index
    %c0_2 = arith.constant 0 : index
    %1 = vector.load %arg3[%c0_1, %c0_2] : memref<128x128xbf16, #tpu.memory_space<vmem>>, vector<128x128xbf16>
    %cst = arith.constant dense<0.000000e+00> : vector<24x128xf32>
    %2 = tpu.matmul %0, %1, %cst {dimension_numbers = #tpu.dot_dimension_numbers<[1], [0], [0], [1], [0, 0, 1, 1], [], []>} : vector<24x128xbf16>, vector<128x128xbf16>, vector<24x128xf32> -> vector<24x128xf32>
    %c0_3 = arith.constant 0 : index
    %c0_4 = arith.constant 0 : index
    %3 = vector.load %arg4[%c0_3, %c0_4] : memref<1x128xf32, #tpu.memory_space<vmem>>, vector<1x128xf32>
    %4 = vector.broadcast %3 : vector<1x128xf32> to vector<24x128xf32>
    %5 = arith.addf %2, %4 : vector<24x128xf32>
    %c0_5 = arith.constant 0 : index
    %c0_6 = arith.constant 0 : index
    %6 = vector.load %arg5[%c0_5, %c0_6] : memref<24x128xf32, #tpu.memory_space<vmem>>, vector<24x128xf32>
    %7 = arith.addf %5, %6 : vector<24x128xf32>
    %c0_7 = arith.constant 0 : index
    %c0_8 = arith.constant 0 : index
    %8 = vector.load %arg6[%c0_7, %c0_8] : memref<24x128xf32, #tpu.memory_space<vmem>>, vector<24x128xf32>
    tpu.vector_store %arg6[%c0_7, %c0_8], %7 {strides = array<i32>} : memref<24x128xf32, #tpu.memory_space<vmem>>, vector<24x128xf32>,
    return
  }
  func.func @transform_0(%arg0: i32, %arg1: i32) -> (i32, i32) {
    %c0_i32 = arith.constant 0 : i32
    %c0_i32_0 = arith.constant 0 : i32
    return %arg0, %c0_i32 : i32, i32
  }
  func.func @transform_1(%arg0: i32, %arg1: i32) -> (i32, i32) {
    %c0_i32 = arith.constant 0 : i32
    %c0_i32_0 = arith.constant 0 : i32
    return %c0_i32, %arg1 : i32, i32
  }
  func.func @transform_2(%arg0: i32, %arg1: i32) -> (i32, i32) {
    %c0_i32 = arith.constant 0 : i32
    %c0_i32_0 = arith.constant 0 : i32
    return %c0_i32, %arg1 : i32, i32
  }
  func.func @transform_3(%arg0: i32, %arg1: i32) -> (i32, i32) {
    %c0_i32 = arith.constant 0 : i32
    return %arg0, %arg1 : i32, i32
  }
  func.func @transform_4(%arg0: i32, %arg1: i32) -> (i32, i32) {
    %c0_i32 = arith.constant 0 : i32
    return %arg0, %arg1 : i32, i32
  }
}

module attributes {stable_mosaic.version = 11 : i64} {
  func.func @_ln_linear_kernel(%arg0: i32, %arg1: i32, %arg2: memref<24x32xf32, #tpu.memory_space<vmem>>, %arg3: memref<1x32xf32, #tpu.memory_space<vmem>>, %arg4: memref<1x32xf32, #tpu.memory_space<vmem>>, %arg5: memref<32x256xbf16, #tpu.memory_space<vmem>>, %arg6: memref<1x256xf32, #tpu.memory_space<vmem>>, %arg7: memref<24x256xf32, #tpu.memory_space<vmem>>, %arg8: memref<24x32xbf16, #tpu.memory_space<vmem>>) attributes {dimension_semantics = [#tpu.dimension_semantics<parallel>, #tpu.dimension_semantics<arbitrary>], iteration_bounds = array<i64: 2, 1>, scalar_prefetch = 0 : i64, scratch_operands = 1 : i64, tpu.core_type = #tpu.core_type<tc>, window_params = [{transform_indices = @transform_0, window_bounds = array<i64: 24, 32>}, {pipeline_mode = #tpu.pipeline_mode<synchronous>, transform_indices = @transform_1, window_bounds = array<i64: 1, 32>}, {pipeline_mode = #tpu.pipeline_mode<synchronous>, transform_indices = @transform_2, window_bounds = array<i64: 1, 32>}, {transform_indices = @transform_3, window_bounds = array<i64: 32, 256>}, {transform_indices = @transform_4, window_bounds = array<i64: 1, 256>}, {transform_indices = @transform_5, window_bounds = array<i64: 24, 256>}]} {
    %c0_i32 = arith.constant 0 : i32
    %0 = arith.cmpi eq, %arg1, %c0_i32 : i32
    %1 = arith.extui %0 : i1 to i32
    %c0_i32_0 = arith.constant 0 : i32
    %2 = arith.cmpi ne, %1, %c0_i32_0 : i32
    scf.if %2 {
      %c0_8 = arith.constant 0 : index
      %c0_9 = arith.constant 0 : index
      %10 = vector.load %arg2[%c0_8, %c0_9] : memref<24x32xf32, #tpu.memory_space<vmem>>, vector<24x32xf32>
      %cst_10 = arith.constant dense<0.000000e+00> : vector<24xf32>
      %11 = vector.multi_reduction <add>, %10, %cst_10 [1] : vector<24x32xf32> to vector<24xf32>
      %12 = vector.shape_cast %11 : vector<24xf32> to vector<24x1xf32>
      %cst_11 = arith.constant 3.200000e+01 : f32
      %13 = vector.broadcast %cst_11 : f32 to vector<24x1xf32>
      %14 = arith.divf %12, %13 : vector<24x1xf32>
      %15 = vector.broadcast %14 : vector<24x1xf32> to vector<24x32xf32>
      %16 = arith.subf %10, %15 : vector<24x32xf32>
      %17 = arith.mulf %16, %16 : vector<24x32xf32>
      %cst_12 = arith.constant dense<0.000000e+00> : vector<24xf32>
      %18 = vector.multi_reduction <add>, %17, %cst_12 [1] : vector<24x32xf32> to vector<24xf32>
      %19 = vector.shape_cast %18 : vector<24xf32> to vector<24x1xf32>
      %cst_13 = arith.constant 3.200000e+01 : f32
      %20 = vector.broadcast %cst_13 : f32 to vector<24x1xf32>
      %21 = arith.divf %19, %20 : vector<24x1xf32>
      %22 = vector.broadcast %14 : vector<24x1xf32> to vector<24x32xf32>
      %23 = arith.subf %10, %22 : vector<24x32xf32>
      %cst_14 = arith.constant 9.99999974E-6 : f32
      %24 = vector.broadcast %cst_14 : f32 to vector<24x1xf32>
      %25 = arith.addf %21, %24 : vector<24x1xf32>
      %26 = math.rsqrt %25 : vector<24x1xf32>
      %27 = vector.broadcast %26 : vector<24x1xf32> to vector<24x32xf32>
      %28 = arith.mulf %23, %27 : vector<24x32xf32>
      %c0_15 = arith.constant 0 : index
      %c0_16 = arith.constant 0 : index
      %29 = vector.load %arg3[%c0_15, %c0_16] : memref<1x32xf32, #tpu.memory_space<vmem>>, vector<1x32xf32>
      %30 = vector.broadcast %29 : vector<1x32xf32> to vector<24x32xf32>
      %31 = arith.mulf %28, %30 : vector<24x32xf32>
      %c0_17 = arith.constant 0 : index
      %c0_18 = arith.constant 0 : index
      %32 = vector.load %arg4[%c0_17, %c0_18] : memref<1x32xf32, #tpu.memory_space<vmem>>, vector<1x32xf32>
      %33 = vector.broadcast %32 : vector<1x32xf32> to vector<24x32xf32>
      %34 = arith.addf %31, %33 : vector<24x32xf32>
      %35 = arith.truncf %34 : vector<24x32xf32> to vector<24x32xbf16>
      %c0_19 = arith.constant 0 : index
      %c0_20 = arith.constant 0 : index
      %36 = vector.load %arg8[%c0_19, %c0_20] : memref<24x32xbf16, #tpu.memory_space<vmem>>, vector<24x32xbf16>
      tpu.vector_store %arg8[%c0_19, %c0_20], %35 {strides = array<i32>} : memref<24x32xbf16, #tpu.memory_space<vmem>>, vector<24x32xbf16>,
    } else {
    }
    %c0 = arith.constant 0 : index
    %c0_1 = arith.constant 0 : index
    %3 = vector.load %arg8[%c0, %c0_1] : memref<24x32xbf16, #tpu.memory_space<vmem>>, vector<24x32xbf16>
    %c0_2 = arith.constant 0 : index
    %c0_3 = arith.constant 0 : index
    %4 = vector.load %arg5[%c0_2, %c0_3] : memref<32x256xbf16, #tpu.memory_space<vmem>>, vector<32x256xbf16>
    %cst = arith.constant dense<0.000000e+00> : vector<24x256xf32>
    %5 = tpu.matmul %3, %4, %cst {dimension_numbers = #tpu.dot_dimension_numbers<[1], [0], [0], [1], [0, 0, 1, 1], [], []>} : vector<24x32xbf16>, vector<32x256xbf16>, vector<24x256xf32> -> vector<24x256xf32>
    %c0_4 = arith.constant 0 : index
    %c0_5 = arith.constant 0 : index
    %6 = vector.load %arg6[%c0_4, %c0_5] : memref<1x256xf32, #tpu.memory_space<vmem>>, vector<1x256xf32>
    %7 = vector.broadcast %6 : vector<1x256xf32> to vector<24x256xf32>
    %8 = arith.addf %5, %7 : vector<24x256xf32>
    %c0_6 = arith.constant 0 : index
    %c0_7 = arith.constant 0 : index
    %9 = vector.load %arg7[%c0_6, %c0_7] : memref<24x256xf32, #tpu.memory_space<vmem>>, vector<24x256xf32>
    tpu.vector_store %arg7[%c0_6, %c0_7], %8 {strides = array<i32>} : memref<24x256xf32, #tpu.memory_space<vmem>>, vector<24x256xf32>,
    return
  }
  func.func @transform_0(%arg0: i32, %arg1: i32) -> (i32, i32) {
    %c0_i32 = arith.constant 0 : i32
    %c0_i32_0 = arith.constant 0 : i32
    return %arg0, %c0_i32 : i32, i32
  }
  func.func @transform_1(%arg0: i32, %arg1: i32) -> (i32, i32) {
    %c0_i32 = arith.constant 0 : i32
    %c0_i32_0 = arith.constant 0 : i32
    %c0_i32_1 = arith.constant 0 : i32
    return %c0_i32, %c0_i32_0 : i32, i32
  }
  func.func @transform_2(%arg0: i32, %arg1: i32) -> (i32, i32) {
    %c0_i32 = arith.constant 0 : i32
    %c0_i32_0 = arith.constant 0 : i32
    %c0_i32_1 = arith.constant 0 : i32
    return %c0_i32, %c0_i32_0 : i32, i32
  }
  func.func @transform_3(%arg0: i32, %arg1: i32) -> (i32, i32) {
    %c0_i32 = arith.constant 0 : i32
    %c0_i32_0 = arith.constant 0 : i32
    return %c0_i32, %arg1 : i32, i32
  }
  func.func @transform_4(%arg0: i32, %arg1: i32) -> (i32, i32) {
    %c0_i32 = arith.constant 0 : i32
    %c0_i32_0 = arith.constant 0 : i32
    return %c0_i32, %arg1 : i32, i32
  }
  func.func @transform_5(%arg0: i32, %arg1: i32) -> (i32, i32) {
    %c0_i32 = arith.constant 0 : i32
    return %arg0, %arg1 : i32, i32
  }
}

module attributes {stable_mosaic.version = 11 : i64} {
  func.func @_masked_mse_kernel(%arg0: i32, %arg1: memref<32x192xf32, #tpu.memory_space<vmem>>, %arg2: memref<32x192xf32, #tpu.memory_space<vmem>>, %arg3: memref<32x1xf32, #tpu.memory_space<vmem>>, %arg4: memref<1x1xf32, #tpu.memory_space<vmem>>, %arg5: memref<1x192xf32, #tpu.memory_space<vmem>>) attributes {dimension_semantics = [#tpu.dimension_semantics<arbitrary>], iteration_bounds = array<i64: 1>, scalar_prefetch = 0 : i64, scratch_operands = 1 : i64, tpu.core_type = #tpu.core_type<tc>, window_params = [{transform_indices = @transform_0, window_bounds = array<i64: 32, 192>}, {transform_indices = @transform_1, window_bounds = array<i64: 32, 192>}, {transform_indices = @transform_2, window_bounds = array<i64: 32, 1>}, {pipeline_mode = #tpu.pipeline_mode<synchronous>, transform_indices = @transform_3, window_bounds = array<i64: 1, 1>}]} {
    %c0_i32 = arith.constant 0 : i32
    %0 = arith.cmpi eq, %arg0, %c0_i32 : i32
    %1 = arith.extui %0 : i1 to i32
    %c0_i32_0 = arith.constant 0 : i32
    %2 = arith.cmpi ne, %1, %c0_i32_0 : i32
    scf.if %2 {
      %cst_12 = arith.constant 0.000000e+00 : f32
      %18 = vector.broadcast %cst_12 : f32 to vector<1x192xf32>
      %c0_13 = arith.constant 0 : index
      %c0_14 = arith.constant 0 : index
      %19 = vector.load %arg5[%c0_13, %c0_14] : memref<1x192xf32, #tpu.memory_space<vmem>>, vector<1x192xf32>
      tpu.vector_store %arg5[%c0_13, %c0_14], %18 {strides = array<i32>} : memref<1x192xf32, #tpu.memory_space<vmem>>, vector<1x192xf32>,
    } else {
    }
    %c0 = arith.constant 0 : index
    %c0_1 = arith.constant 0 : index
    %3 = vector.load %arg1[%c0, %c0_1] : memref<32x192xf32, #tpu.memory_space<vmem>>, vector<32x192xf32>
    %c0_2 = arith.constant 0 : index
    %c0_3 = arith.constant 0 : index
    %4 = vector.load %arg2[%c0_2, %c0_3] : memref<32x192xf32, #tpu.memory_space<vmem>>, vector<32x192xf32>
    %5 = arith.subf %3, %4 : vector<32x192xf32>
    %c0_4 = arith.constant 0 : index
    %c0_5 = arith.constant 0 : index
    %6 = vector.load %arg5[%c0_4, %c0_5] : memref<1x192xf32, #tpu.memory_space<vmem>>, vector<1x192xf32>
    %7 = arith.mulf %5, %5 : vector<32x192xf32>
    %c0_6 = arith.constant 0 : index
    %c0_7 = arith.constant 0 : index
    %8 = vector.load %arg3[%c0_6, %c0_7] : memref<32x1xf32, #tpu.memory_space<vmem>>, vector<32x1xf32>
    %9 = vector.broadcast %8 : vector<32x1xf32> to vector<32x192xf32>
    %10 = arith.mulf %7, %9 : vector<32x192xf32>
    %cst = arith.constant dense<0.000000e+00> : vector<192xf32>
    %11 = vector.multi_reduction <add>, %10, %cst [0] : vector<32x192xf32> to vector<192xf32>
    %12 = vector.shape_cast %11 : vector<192xf32> to vector<1x192xf32>
    %13 = arith.addf %6, %12 : vector<1x192xf32>
    %c0_8 = arith.constant 0 : index
    %c0_9 = arith.constant 0 : index
    %14 = vector.load %arg5[%c0_8, %c0_9] : memref<1x192xf32, #tpu.memory_space<vmem>>, vector<1x192xf32>
    tpu.vector_store %arg5[%c0_8, %c0_9], %13 {strides = array<i32>} : memref<1x192xf32, #tpu.memory_space<vmem>>, vector<1x192xf32>,
    %c0_i32_10 = arith.constant 0 : i32
    %15 = arith.cmpi eq, %arg0, %c0_i32_10 : i32
    %16 = arith.extui %15 : i1 to i32
    %c0_i32_11 = arith.constant 0 : i32
    %17 = arith.cmpi ne, %16, %c0_i32_11 : i32
    scf.if %17 {
      %c0_12 = arith.constant 0 : index
      %c0_13 = arith.constant 0 : index
      %18 = vector.load %arg5[%c0_12, %c0_13] : memref<1x192xf32, #tpu.memory_space<vmem>>, vector<1x192xf32>
      %cst_14 = arith.constant dense<0.000000e+00> : vector<1xf32>
      %19 = vector.multi_reduction <add>, %18, %cst_14 [1] : vector<1x192xf32> to vector<1xf32>
      %20 = vector.shape_cast %19 : vector<1xf32> to vector<1x1xf32>
      %cst_15 = arith.constant 0.00520833349 : f32
      %21 = vector.broadcast %cst_15 : f32 to vector<1x1xf32>
      %22 = arith.mulf %20, %21 : vector<1x1xf32>
      %c0_16 = arith.constant 0 : index
      %c0_17 = arith.constant 0 : index
      %23 = vector.load %arg4[%c0_16, %c0_17] : memref<1x1xf32, #tpu.memory_space<vmem>>, vector<1x1xf32>
      tpu.vector_store %arg4[%c0_16, %c0_17], %22 {strides = array<i32>} : memref<1x1xf32, #tpu.memory_space<vmem>>, vector<1x1xf32>,
    } else {
    }
    return
  }
  func.func @transform_0(%arg0: i32) -> (i32, i32) {
    %c0_i32 = arith.constant 0 : i32
    %c0_i32_0 = arith.constant 0 : i32
    return %arg0, %c0_i32 : i32, i32
  }
  func.func @transform_1(%arg0: i32) -> (i32, i32) {
    %c0_i32 = arith.constant 0 : i32
    %c0_i32_0 = arith.constant 0 : i32
    return %arg0, %c0_i32 : i32, i32
  }
  func.func @transform_2(%arg0: i32) -> (i32, i32) {
    %c0_i32 = arith.constant 0 : i32
    %c0_i32_0 = arith.constant 0 : i32
    return %arg0, %c0_i32 : i32, i32
  }
  func.func @transform_3(%arg0: i32) -> (i32, i32) {
    %c0_i32 = arith.constant 0 : i32
    %c0_i32_0 = arith.constant 0 : i32
    %c0_i32_1 = arith.constant 0 : i32
    return %c0_i32, %c0_i32_0 : i32, i32
  }
}

</mosaic_0001>

<bundles_post_ra>
// kernel: _forward_core.19
= control target key start
LH: loop header
LB: loop body
LE: loop exit
PB: predicated region body
PF: predicated region fallthrough
CT: control target
= control target key end

     0   :  { %s631_s12 = smov 0   ;;  %s633_s13 = smov 0   ;;  %s710_s0 = inlined_call_operand.vmem [shape: bf16[32,192], index: 0, kind: input, shape index: {}]   ;;  %s711_s1 = inlined_call_operand.vmem [shape: bf16[192,128], index: 1, kind: input, shape index: {}]   ;;  %s712_s2 = inlined_call_operand.vmem [shape: f32[1,128], index: 2, kind: input, shape index: {}]   ;;  %s713_s3 = inlined_call_operand.vmem [shape: f32[32,128], index: 3, kind: output, shape index: {}]  }
   0x1   :  { %s635_s14 = smov 0  }
   0x2 LB: > { %s25_s15 = sadd.s32 1, %s605_s13  ;;  %p482_p0 = scmp.ge.s32.totalorder %s609_s14, 1  ;;  %s609_s14 = sphi %s635_s14, %s13_s14   ;;  %s605_s13 = sphi %s633_s13, %s715_s13   ;;  %s601_s12 = sphi %s631_s12, %s714_s12  }
   0x3   : > { %p27_p1 = scmp.ge.s32.totalorder %s25_s15, 2  ;;  %p170_p2 = scmp.lt.s32.totalorder %s609_s14, 3 }
   0x5   : > { %s717_s15 = smov (%p27_p1, %s25_s15), 0  ;;  %p171_p3 = pnand %p482_p0, %p170_p2 }
   0x6   : > { %s483_s18 = sshll.u32 (!%p171_p3), %s601_s12, 1 }
   0x7   : > { %174 = sbr.rel (%p171_p3) target bundleno = 183 (0xb7), region = 32  ;;  %p206_p4 = scmp.lt.s32.totalorder (!%p171_p3), %s483_s18, 3 }
   0xc   : > { %v557_v0 = vld [vmem:[%s711_s1 + $0x38] sm:$0xff]  ;;  %v556_v2 = vld [vmem:[%s711_s1 + $0x30] sm:$0xff]  ;;  %s719_s18 = smov (!%p206_p4, %s483_s18), 3  ;;  %v555_v4 = vld [vmem:[%s711_s1 + $0x28] sm:$0xff]  ;;  %vm340_vm0 = vcmask 523264  }
   0xd   : > { %v561_v1 = vld [vmem:[%s711_s1 + $0x58] sm:$0xff]  ;;  %344 = vmatpush.bf16.msra.mxu0 %v557_v0  ;;  %v560_v3 = vld [vmem:[%s711_s1 + $0x50] sm:$0xff]  ;;  %s547_s25 = sshll.u32 %s719_s18, 3  ;;  %v559_v5 = vld [vmem:[%s711_s1 + $0x48] sm:$0xff] }
   0xe   : > { %362 = vmatpush.bf16.msra.mxu1 %v561_v1  ;;  %s210_s5 = scalar_lea.vmem %s710_s0, %s547_s25  ;;  %v554_v6 = vld [vmem:[%s711_s1 + $0x20] sm:$0xff]  ;;  %v553_v10 = vld [vmem:[%s711_s1 + $0x18] sm:$0xff]  ;;  %v552_v12 = vld [vmem:[%s711_s1 + $0x10] sm:$0xff]  ;;  %s226_s27 = scalar_lea.vmem %s713_s3, %s547_s25 }
   0xf   : > { %v558_v7 = vld [vmem:[%s711_s1 + $0x40] sm:$0xff]  ;;  %v492_v9 = vld [vmem:[%s210_s5 + $0x8] sm:$0xf0]  ;;  %v549_v16 = vld [vmem:[%s210_s5 + $0x4] sm:$0xf0] }
  0x10   : > { %v548_v8 = vld [vmem:[%s210_s5 + $0x4] sm:$0xf]  ;;  %v551_v13 = vld [vmem:[%s711_s1 + $0x8] sm:$0xff]  ;;  %v490_v15 = vld [vmem:[%s210_s5] sm:$0xf] }
  0x11   : > { %345 = vmatpush.bf16.msra.mxu0 %v556_v2  ;;  %v495_v11 = vor.u32 %v548_v8, %v492_v9  ;;  %v550_v14 = vld [vmem:[%s711_s1] sm:$0xff]  ;;  %v491_v17 = vor.u32 %v549_v16, %v490_v15 }
  0x12   : > { %363 = vmatpush.bf16.msra.mxu1 %v560_v3  ;;  %v586_v18 = vld [vmem:[%s712_s2] ss:$0 sm:$0xff] }
  0x15   : > { %346 = vmatpush.bf16.msra.mxu0 %v555_v4 }
  0x16   : > { %364 = vmatpush.bf16.msra.mxu1 %v559_v5 }
  0x19   : > { %347 = vmatpush.bf16.msra.mxu0 %v554_v6 }
  0x1a   : > { %365 = vmatpush.bf16.msra.mxu1 %v558_v7 }
  0x1d   : > { %348 = vmatpush.bf16.msra.mxu0 %v553_v10  ;;  %544 = vmatmul.msk.bf16.vlgmr.msra.gmra.mxu1 %vm340_vm0, %v495_v11 }
  0x21   : > { %349 = vmatpush.bf16.msra.mxu0 %v552_v12 }
  0x25   : > { %350 = vmatpush.bf16.msra.mxu0 %v551_v13 }
  0x29   : > { %351 = vmatpush.bf16.msra.mxu0 %v550_v14 }
  0x2c   : > { %352 = vmatmul.bf16.vlgmr.msra.gmra.mxu0 %v491_v17 }
  0x9a   : > { %v367_v19 = vpop.f32.mrf.mxu1 }
  0xa2   : > { %v369_v25 = vpop.f32.mrf.mxu1 }
  0xa9   : > { %v353_v20 = vpop.f32.mrf.mxu0 }
  0xaa   : > { %v354_v21 = vadd.f32 %v586_v18, %v353_v20 }
  0xac   : > { %v368_v22 = vadd.f32 %v367_v19, %v354_v21 }
  0xae   : > { %372 = vst [vmem:[%s226_s27] sm:$0xff] %v368_v22 }
  0xb1   : > { %v355_v23 = vpop.f32.mrf.mxu0 }
  0xb2   : > { %v356_v24 = vadd.f32 %v586_v18, %v355_v23 }
  0xb4   : > { %v370_v26 = vadd.f32 %v369_v25, %v356_v24 }
  0xb6   : > { %373 = vst [vmem:[%s226_s27 + $0x8] sm:$0xff] %v370_v26 }
  0xb7 PF: > { %s13_s14 = sadd.s32 1, %s609_s14   ;;  %s714_s12 = smov %s605_s13 }
  0xb8   : > { %p10_p5 = scmp.ge.s32.totalorder %s13_s14, 4   ;;  %s715_s13 = smov %s717_s15 }
  0xba   :  { %12 = sbr.rel (!%p10_p5) target bundleno = 2 (0x2), region = 68 }

// kernel: _forward_core.21
= control target key start
LH: loop header
LB: loop body
LE: loop exit
PB: predicated region body
PF: predicated region fallthrough
CT: control target
= control target key end

     0   :  { %s497_s6 = smov 0   ;;  %s564_s0 = inlined_call_operand.vmem [shape: bf16[2,8,192], index: 0, kind: input, shape index: {}]   ;;  %s565_s1 = inlined_call_operand.vmem [shape: bf16[2,8,64], index: 1, kind: output, shape index: {}]  }
   0x1 LB: > { %s422_s7 = sadd.s32 4294967295, %s478_s6   ;;  %p426_p0 = scmp.ge.s32.totalorder %s478_s6, 1  ;;  %s478_s6 = sphi %s497_s6, %s11_s6  }
   0x2   : > { %p87_p1 = scmp.lt.s32.totalorder %s478_s6, 3 }
   0x4   : > { %p88_p2 = pnand %p426_p0, %p87_p1 }
   0x5   : > { %p106_p3 = scmp.lt.s32.totalorder (!%p88_p2), %s422_s7, 1  ;;  %s480_s12 = smov (!%p88_p2), 64  }
   0x6   : > { %91 = sbr.rel (%p88_p2) target bundleno = 1185 (0x4a1), region = 24  ;;  %s481_s13 = smov (!%p88_p2), 48  }
   0x7   : > { %s482_s14 = smov (!%p88_p2), 112   ;;  %s483_s15 = smov (!%p88_p2), 32  }
   0x8   : > { %s484_s16 = smov (!%p88_p2), 16   ;;  %s485_s17 = smov (!%p88_p2), 96  }
   0x9   : > { %s486_s18 = smov (!%p88_p2), 80  }
   0xb   : > { %s567_s7 = smov (!%p106_p3, %s422_s7), 1  ;;  %vm125_vm0 = vcmask 130048   ;;  %vm145_vm1 = vcmask 64512   ;;  %vm163_vm2 = vcmask 1043456   ;;  %vm362_vm3 = vcmask 261120  }
   0xc   : > { %s440_s8 = sshll.u32 %s567_s7, 3  ;;  %s429_s19 = sshll.u32 %s567_s7, 2  ;;  %vm364_vm4 = vcmask 392192   ;;  %vm367_vm5 = vcmask 519168  }
   0xd   : > { %s110_s11 = scalar_lea.vmem %s564_s0, %s440_s8  ;;  %s114_s22 = scalar_lea.vmem %s565_s1, %s429_s19 }
   0xe   : > { %v116_v0 = vld [vmem:[%s110_s11] sm:$0xff] }
   0xf   : > { %v121_v1 = vunpack.c.l.b16 %v116_v0  ;;  %v117_v3 = vunpack.c.l.bf16 %v116_v0  ;;  %v158_v16 = vunpack.c.h.b16 %v116_v0 }
  0x11   : > { %v122_v2 = vpack.c.b16 %v121_v1, %v121_v1  ;;  %v118_v6 = vmul.f32 0.25, %v117_v3  ;;  %v523_v18 = vpack.c.b16 %v158_v16, %v158_v16 }
  0x13   : > { %123 = vrot.lane.b32.xlu0 %v122_v2, %s480_s12  ;;  %183 = vrot.lane.b32.xlu1 %v122_v2, %s481_s13  ;;  %v119_v7 = vpack.c.bf16 %v118_v6, %v118_v6  ;;  %v165_v20 = vsel %vm163_vm2, %v523_v18, 0 }
  0x14   : > { %174 = vmatpush.bf16.msra.mxu1 %v165_v20 }
  0x15   : > { %181 = vrot.lane.b32.xlu2 %v119_v7, %s482_s14 }
  0x1d   : > { %239 = vrot.lane.b32.xlu2 %v122_v2, %s483_s15 }
  0x25   : > { %295 = vrot.lane.b32.xlu2 %v122_v2, %s484_s16 }
  0x2d   : > { %237 = vrot.lane.b32.xlu2 %v119_v7, %s485_s17 }
  0x35   : > { %293 = vrot.lane.b32.xlu2 %v119_v7, %s486_s18 }
  0x6f   : > { %v182_v10 = vpop.permute.xlu2 %181 }
  0x77   : > { %v240_v14 = vpop.permute.xlu2 %239 }
  0x78   : > { %v245_v19 = vsel %vm125_vm0, %v240_v14, 0 }
  0x79   : > { %254 = vmatpush.bf16.xpose.msrb.mxu1 %v245_v19 }
  0x7f   : > { %v296_v15 = vpop.permute.xlu2 %295 }
  0x80   : > { %v301_v17 = vsel %vm125_vm0, %v296_v15, 0 }
  0x85   : > { %v124_v4 = vpop.permute.xlu0 %123  ;;  %v184_v8 = vpop.permute.xlu1 %183 }
  0x86   : > { %v130_v5 = vsel %vm125_vm0, %v124_v4, 0  ;;  %v189_v9 = vsel %vm125_vm0, %v184_v8, 0 }
  0x87   : > { %139 = vmatpush.bf16.xpose.msra.mxu0 %v130_v5  ;;  %198 = vmatpush.bf16.xpose.msra.mxu2 %v189_v9  ;;  %v238_v21 = vpop.permute.xlu2 %237 }
  0x8e   : > { %430 = vmatmul.msk.bf16.vlgmr.msra.gmra.mxu0 %vm125_vm0, %v119_v7  ;;  %432 = vmatmul.msk.bf16.vlgmr.msra.gmra.mxu2 %vm125_vm0, %v182_v10 }
  0x8f   : > { %310 = vmatpush.bf16.xpose.msrb.mxu0 %v301_v17  ;;  %v294_v22 = vpop.permute.xlu2 %293 }
  0x9e   : > { %436 = vmatmul.msk.bf16.vlgmr.msrb.gmra.mxu0 %vm125_vm0, %v294_v22 }
 0x10b   : > { %v141_v11 = vpop.f32.mrf.mxu0 }
 0x10c   : > { %v146_v12 = vsel %vm145_vm1, %v141_v11, -inf }
 0x10d   : > { %147 = vmax.xlane.f32.xlu0 %v146_v12 }
 0x111   : > { %v200_v28 = vpop.f32.mrf.mxu2 }
 0x112   : > { %v204_v29 = vsel %vm145_vm1, %v200_v28, -inf }
 0x113   : > { %v143_v13 = vpop.f32.mrf.mxu0  ;;  %205 = vmax.xlane.f32.xlu2 %v204_v29 }
 0x119   : > { %v202_v30 = vpop.f32.mrf.mxu2 }
 0x11b   : > { %v312_v31 = vpop.f32.mrf.mxu0 }
 0x11c   : > { %v316_v32 = vsel %vm145_vm1, %v312_v31, -inf }
 0x123   : > { %v314_v34 = vpop.f32.mrf.mxu0 }
 0x12b   : > { %272 = vrot.lane.b32.xlu2 %v523_v18, %s485_s17 }
 0x180   : > { %v148_v23 = vpop.xlane.xlu0 %147 }
 0x181   : > { %v149_v24 = vsub.f32 %v141_v11, %v148_v23 }
 0x183   : > { %v150_v25 = vmul.f32 1.442695, %v149_v24 }
 0x185   : > { %456 = vpow2.f32 %v150_v25 }
 0x186   : > { %v206_v39 = vpop.xlane.xlu2 %205 }
 0x187   : > { %v207_v40 = vsub.f32 %v200_v28, %v206_v39 }
 0x189   : > { %v208_v42 = vmul.f32 1.442695, %v207_v40 }
 0x18b   : > { %v457_v26 = vpop.eup %456 }
 0x18c   : > { %v152_v27 = vsel %vm145_vm1, %v457_v26, 0.0 }
 0x18d   : > { %153 = vadd.xlane.f32.xlu1 %v152_v27 }
 0x18e   : > { %v273_v0 = vpop.permute.xlu2 %272 }
 0x18f   : > { %v278_v1 = vsel %vm163_vm2, %v273_v0, 0 }
 0x195   : > { %317 = vmax.xlane.f32.xlu1 %v316_v32 }
 0x1ae   : > { %216 = vrot.lane.b32.xlu1 %v523_v18, %s482_s14 }
 0x200   : > { %v154_v33 = vpop.xlane.xlu1 %153 }
 0x201   : > { %458 = vrcp.f32 %v154_v33 }
 0x202   : > { %460 = vpow2.f32 %v208_v42 }
 0x207   : > { %v459_v35 = vpop.eup %458 }
 0x208   : > { %v156_v36 = vmul.f32 %v459_v35, %v457_v26  ;;  %v318_v43 = vpop.xlane.xlu1 %317  ;;  %v461_v48 = vpop.eup %460 }
 0x209   : > { %v319_v44 = vsub.f32 %v312_v31, %v318_v43  ;;  %v210_v50 = vsel %vm145_vm1, %v461_v48, 0.0 }
 0x20a   : > { %v157_v37 = vpack.c.bf16 %v156_v36, %v156_v36 }
 0x20b   : > { %v320_v47 = vmul.f32 1.442695, %v319_v44 }
 0x20c   : > { %431 = vmatmul.msk.bf16.vlgmr.msra.gmra.mxu1 %vm145_vm1, %v157_v37 }
 0x20d   : > { %462 = vpow2.f32 %v320_v47 }
 0x213   : > { %v463_v51 = vpop.eup %462 }
 0x214   : > { %v322_v52 = vsel %vm145_vm1, %v463_v51, 0.0 }
 0x21c   : > { %434 = vmatmul.msk.bf16.vlgmr.msrb.gmra.mxu1 %vm125_vm0, %v238_v21 }
 0x220   : > { %v217_v53 = vpop.permute.xlu1 %216 }
 0x221   : > { %v222_v54 = vsel %vm163_vm2, %v217_v53, 0 }
 0x222   : > { %231 = vmatpush.bf16.msra.mxu3 %v222_v54 }
 0x226   : > { %287 = vmatpush.bf16.msrb.mxu3 %v278_v1 }
 0x289   : > { %v538_v38 = vpop.f32.mrf.mxu1 }
 0x291   : > { %v178_v41 = vpop.f32.mrf.mxu1 }
 0x299   : > { %v256_v45 = vpop.f32.mrf.mxu1 }
 0x29a   : > { %v260_v46 = vsel %vm145_vm1, %v256_v45, -inf }
 0x29b   : > { %261 = vmax.xlane.f32.xlu0 %v260_v46 }
 0x2a1   : > { %v258_v49 = vpop.f32.mrf.mxu1 }
 0x2a3   : > { %211 = vadd.xlane.f32.xlu0 %v210_v50 }
 0x2ab   : > { %323 = vadd.xlane.f32.xlu0 %v322_v52 }
 0x30e   : > { %v262_v55 = vpop.xlane.xlu0 %261 }
 0x30f   : > { %v263_v56 = vsub.f32 %v256_v45, %v262_v55 }
 0x311   : > { %v264_v57 = vmul.f32 1.442695, %v263_v56 }
 0x313   : > { %464 = vpow2.f32 %v264_v57 }
 0x316   : > { %v212_v58 = vpop.xlane.xlu0 %211 }
 0x317   : > { %466 = vrcp.f32 %v212_v58 }
 0x319   : > { %v465_v59 = vpop.eup %464 }
 0x31a   : > { %v266_v60 = vsel %vm145_vm1, %v465_v59, 0.0 }
 0x31b   : > { %267 = vadd.xlane.f32.xlu0 %v266_v60 }
 0x31d   : > { %v467_v61 = vpop.eup %466 }
 0x31e   : > { %v214_v62 = vmul.f32 %v467_v61, %v461_v48  ;;  %v324_v2 = vpop.xlane.xlu0 %323 }
 0x320   : > { %v215_v63 = vpack.c.bf16 %v214_v62, %v214_v62 }
 0x322   : > { %433 = vmatmul.msk.bf16.vlgmr.msra.gmra.mxu3 %vm145_vm1, %v215_v63 }
 0x32f   : > { %328 = vrot.lane.b32.xlu0 %v523_v18, %s486_s18 }
 0x38e   : > { %v268_v3 = vpop.xlane.xlu0 %267 }
 0x38f   : > { %468 = vrcp.f32 %v268_v3 }
 0x390   : > { %470 = vrcp.f32 %v324_v2 }
 0x395   : > { %v469_v4 = vpop.eup %468 }
 0x396   : > { %v270_v5 = vmul.f32 %v469_v4, %v465_v59  ;;  %v471_v7 = vpop.eup %470 }
 0x397   : > { %v326_v8 = vmul.f32 %v471_v7, %v463_v51 }
 0x398   : > { %v271_v6 = vpack.c.bf16 %v270_v5, %v270_v5 }
 0x399   : > { %v327_v11 = vpack.c.bf16 %v326_v8, %v326_v8 }
 0x39a   : > { %435 = vmatmul.msk.bf16.vlgmr.msrb.gmra.mxu3 %vm145_vm1, %v271_v6 }
 0x3a1   : > { %v329_v9 = vpop.permute.xlu0 %328 }
 0x3a2   : > { %v334_v10 = vsel %vm163_vm2, %v329_v9, 0 }
 0x3a3   : > { %343 = vmatpush.bf16.msrb.mxu2 %v334_v10 }
 0x3a5   : > { %v233_v12 = vpop.f32.mrf.mxu3 }
 0x3a6   : > { %437 = vmatmul.msk.bf16.vlgmr.msrb.gmra.mxu2 %vm145_vm1, %v327_v11  ;;  %350 = vrot.lane.b32.xlu1 %v233_v12, %s484_s16 }
 0x3ad   : > { %v235_v13 = vpop.f32.mrf.mxu3 }
 0x418   : > { %v351_v18 = vpop.permute.xlu1 %350 }
 0x419   : > { %v361_v20 = vsel %vm125_vm0, %v538_v38, %v351_v18 }
 0x41d   : > { %v289_v14 = vpop.f32.mrf.mxu3 }
 0x41e   : > { %354 = vrot.lane.b32.xlu1 %v289_v14, %s483_s15 }
 0x425   : > { %v291_v15 = vpop.f32.mrf.mxu3 }
 0x429   : > { %v345_v16 = vpop.f32.mrf.mxu2 }
 0x42a   : > { %358 = vrot.lane.b32.xlu1 %v345_v16, %s481_s13 }
 0x431   : > { %v347_v17 = vpop.f32.mrf.mxu2 }
 0x490   : > { %v355_v19 = vpop.permute.xlu1 %354 }
 0x491   : > { %v363_v21 = vsel %vm362_vm3, %v361_v20, %v355_v19 }
 0x49c   : > { %v359_v22 = vpop.permute.xlu1 %358 }
 0x49d   : > { %v365_v23 = vsel %vm364_vm4, %v363_v21, %v359_v22 }
 0x49e   : > { %v366_v24 = vpack.c.bf16 %v365_v23, %v365_v23 }
 0x4a0   : > { %368 = vst.msk [vmem:[%s114_s22] sm:$0xf] %vm367_vm5, %v366_v24 }
 0x4a1 PF: > { %s11_s6 = sadd.s32 1, %s478_s6  }
 0x4a2   : > { %p8_p4 = scmp.ge.s32.totalorder %s11_s6, 4  }
 0x4a4   :  { %10 = sbr.rel (!%p8_p4) target bundleno = 1 (0x1), region = 54 }

// kernel: _forward_core.22
= control target key start
LH: loop header
LB: loop body
LE: loop exit
PB: predicated region body
PF: predicated region fallthrough
CT: control target
= control target key end

     0   :  { %s551_s15 = smov 0   ;;  %s553_s16 = smov 0   ;;  %s602_s0 = inlined_call_operand.vmem [shape: bf16[16,64], index: 0, kind: input, shape index: {}]   ;;  %s603_s1 = inlined_call_operand.vmem [shape: bf16[64,128], index: 1, kind: input, shape index: {}]   ;;  %s604_s2 = inlined_call_operand.vmem [shape: f32[1,128], index: 2, kind: input, shape index: {}]   ;;  %s605_s3 = inlined_call_operand.vmem [shape: f32[16,128], index: 3, kind: input, shape index: {}]   ;;  %s606_s4 = inlined_call_operand.vmem [shape: f32[16,128], index: 4, kind: output, shape index: {}]  }
   0x1   :  { %s555_s17 = smov 0  }
   0x2 LB: > { %s26_s18 = sadd.s32 1, %s520_s16  ;;  %p450_p0 = scmp.ge.s32.totalorder %s524_s17, 1  ;;  %s524_s17 = sphi %s555_s17, %s14_s17   ;;  %s520_s16 = sphi %s553_s16, %s608_s16   ;;  %s516_s15 = sphi %s551_s15, %s607_s15  }
   0x3   : > { %p28_p1 = scmp.ge.s32.totalorder %s26_s18, 2  ;;  %p206_p2 = scmp.lt.s32.totalorder %s524_s17, 3 }
   0x5   : > { %s610_s18 = smov (%p28_p1, %s26_s18), 0  ;;  %p207_p3 = pnand %p450_p0, %p206_p2 }
   0x6   : > { %p247_p4 = scmp.lt.s32.totalorder (!%p207_p3), %s516_s15, 1 }
   0x7   : > { %210 = sbr.rel (%p207_p3) target bundleno = 162 (0xa2), region = 36 }
   0xc   : > { %v476_v0 = vld [vmem:[%s603_s1 + $0x18] sm:$0xff]  ;;  %v475_v1 = vld [vmem:[%s603_s1 + $0x10] sm:$0xff]  ;;  %s612_s15 = smov (!%p247_p4, %s516_s15), 1  ;;  %v474_v2 = vld [vmem:[%s603_s1 + $0x8] sm:$0xff]  ;;  %vm310_vm0 = vcmask 523264  }
   0xd   : > { %318 = vmatpush.bf16.msra.mxu0 %v476_v0  ;;  %s451_s25 = sshll.u32 %s612_s15, 2  ;;  %v473_v3 = vld [vmem:[%s603_s1] sm:$0xff]  ;;  %s452_s5 = sshll.u32 %s612_s15, 3 }
   0xe   : > { %s250_s30 = scalar_lea.vmem %s602_s0, %s451_s25  ;;  %s264_s8 = scalar_lea.vmem %s605_s3, %s452_s5  ;;  %v501_v5 = vld [vmem:[%s604_s2] ss:$0 sm:$0xff] }
   0xf   : > { %v273_v4 = vld [vmem:[%s250_s30] sm:$0xf]  ;;  %s271_s13 = scalar_lea.vmem %s606_s4, %s452_s5 }
  0x10   : > { %v327_v7 = vld [vmem:[%s264_s8] sm:$0xff] }
  0x11   : > { %319 = vmatpush.bf16.msra.mxu0 %v475_v1 }
  0x15   : > { %320 = vmatpush.bf16.msra.mxu0 %v474_v2 }
  0x19   : > { %321 = vmatpush.bf16.msra.mxu0 %v473_v3 }
  0x1c   : > { %470 = vmatmul.msk.bf16.vlgmr.msra.gmra.mxu0 %vm310_vm0, %v273_v4 }
  0x99   : > { %v323_v6 = vpop.f32.mrf.mxu0 }
  0x9a   : > { %v324_v8 = vadd.f32 %v501_v5, %v323_v6 }
  0x9c   : > { %v328_v9 = vadd.f32 %v327_v7, %v324_v8 }
  0x9e   : > { %329 = vst [vmem:[%s271_s13] sm:$0xff] %v328_v9 }
  0xa1   : > { %v325_v10 = vpop.f32.mrf.mxu0 }
  0xa2 PF: > { %s14_s17 = sadd.s32 1, %s524_s17   ;;  %s607_s15 = smov %s520_s16 }
  0xa3   : > { %p11_p5 = scmp.ge.s32.totalorder %s14_s17, 4   ;;  %s608_s16 = smov %s610_s18 }
  0xa5   :  { %13 = sbr.rel (!%p11_p5) target bundleno = 2 (0x2), region = 75 }

// kernel: _forward_core.20
= control target key start
LH: loop header
LB: loop body
LE: loop exit
PB: predicated region body
PF: predicated region fallthrough
CT: control target
= control target key end

     0   :  { %s671_s18 = smov 0   ;;  %s673_s19 = smov 0   ;;  %s772_s0 = inlined_call_operand.vmem [shape: f32[16,64], index: 0, kind: input, shape index: {}]   ;;  %s773_s1 = inlined_call_operand.vmem [shape: f32[1,64], index: 1, kind: input, shape index: {}]   ;;  %s774_s2 = inlined_call_operand.vmem [shape: f32[1,64], index: 2, kind: input, shape index: {}]   ;;  %s775_s3 = inlined_call_operand.vmem [shape: bf16[64,256], index: 3, kind: input, shape index: {}]   ;;  %s776_s4 = inlined_call_operand.vmem [shape: f32[1,256], index: 4, kind: input, shape index: {}]   ;;  %s777_s5 = inlined_call_operand.vmem [shape: bf16[16,256], index: 5, kind: output, shape index: {}]  }
   0x1   :  { %s675_s20 = smov 0  }
   0x2 LB: > { %s27_s21 = sadd.s32 1, %s634_s19  ;;  %p536_p0 = scmp.ge.s32.totalorder %s638_s20, 1  ;;  %s638_s20 = sphi %s675_s20, %s15_s20   ;;  %s634_s19 = sphi %s673_s19, %s779_s19   ;;  %s630_s18 = sphi %s671_s18, %s778_s18  }
   0x3   : > { %p29_p1 = scmp.ge.s32.totalorder %s27_s21, 2  ;;  %p221_p2 = scmp.lt.s32.totalorder %s638_s20, 3 }
   0x5   : > { %s781_s21 = smov (%p29_p1, %s27_s21), 0  ;;  %p222_p3 = pnand %p536_p0, %p221_p2 }
   0x6   : > { %p261_p4 = scmp.lt.s32.totalorder (!%p222_p3), %s630_s18, 1 }
   0x7   : > { %225 = sbr.rel (%p222_p3) target bundleno = 428 (0x1ac), region = 40 }
   0xc   : > { %s783_s18 = smov (!%p261_p4, %s630_s18), 1  ;;  %vm292_vm0 = vcmask 523264   ;;  %v640_v2 = vmov 64.0   ;;  %v566_v14 = vld [vmem:[%s775_s3 + $0x30] sm:$0xf]  ;;  %vm333_vm5 = vcmask 519168  }
   0xd   : > { %s537_s22 = sshll.u32 %s783_s18, 3  ;;  %612 = vrcp.f32 %v640_v2  ;;  %v584_v15 = vld [vmem:[%s775_s3 + $0x34] sm:$0xf0]  ;;  %v583_v16 = vld [vmem:[%s775_s3 + $0x34] sm:$0xf] }
   0xe   : > { %s264_s25 = scalar_lea.vmem %s772_s0, %s537_s22  ;;  %v567_v17 = vor.u32 %v584_v15, %v566_v14  ;;  %v568_v18 = vld [vmem:[%s775_s3 + $0x38] sm:$0xf0]  ;;  %v558_v20 = vld [vmem:[%s775_s3 + $0x20] sm:$0xf]  ;;  %v582_v21 = vld [vmem:[%s775_s3 + $0x24] sm:$0xf0]  ;;  %s284_s26 = scalar_lea.vmem %s777_s5, %s537_s22 }
   0xf   : > { %v291_v0 = vld [vmem:[%s264_s25] sm:$0xff]  ;;  %v571_v19 = vor.u32 %v583_v16, %v568_v18  ;;  %v559_v23 = vor.u32 %v582_v21, %v558_v20  ;;  %v560_v24 = vld [vmem:[%s775_s3 + $0x28] sm:$0xf0]  ;;  %v550_v26 = vld [vmem:[%s775_s3 + $0x10] sm:$0xf] }
  0x10   : > { %v293_v1 = vsel %vm292_vm0, %v291_v0, 0.0  ;;  %398 = vmatpush.bf16.msra.mxu0 %v567_v17  ;;  %v581_v22 = vld [vmem:[%s775_s3 + $0x24] sm:$0xf]  ;;  %v580_v27 = vld [vmem:[%s775_s3 + $0x14] sm:$0xf0] }
  0x11   : > { %294 = vadd.xlane.f32.xlu0 %v293_v1  ;;  %411 = vmatpush.bf16.msra.mxu1 %v571_v19  ;;  %v563_v25 = vor.u32 %v581_v22, %v560_v24  ;;  %v579_v28 = vld [vmem:[%s775_s3 + $0x14] sm:$0xf]  ;;  %v551_v29 = vor.u32 %v580_v27, %v550_v26  ;;  %v552_v30 = vld [vmem:[%s775_s3 + $0x18] sm:$0xf0]  ;;  %v542_v32 = vld [vmem:[%s775_s3] sm:$0xf] }
  0x12   : > { %v555_v31 = vor.u32 %v579_v28, %v552_v30  ;;  %v578_v33 = vld [vmem:[%s775_s3 + $0x4] sm:$0xf0]  ;;  %v577_v34 = vld [vmem:[%s775_s3 + $0x4] sm:$0xf]  ;;  %v544_v37 = vld [vmem:[%s775_s3 + $0x8] sm:$0xf0] }
  0x13   : > { %v613_v3 = vpop.eup %612  ;;  %v543_v36 = vor.u32 %v578_v33, %v542_v32  ;;  %v547_v39 = vor.u32 %v577_v34, %v544_v37  ;;  %v610_v47 = vld [vmem:[%s773_s1] ss:$0 sm:$0xff] }
  0x14   : > { %v297_v4 = vmul.f32 64.0, %v613_v3  ;;  %vm301_vm1 = vweird.f32 %v613_v3  ;;  %399 = vmatpush.bf16.msra.mxu0 %v559_v23  ;;  %v611_v49 = vld [vmem:[%s774_s2] ss:$0 sm:$0xff] }
  0x15   : > { %412 = vmatpush.bf16.msra.mxu1 %v563_v25  ;;  %v344_v55 = vld [vmem:[%s776_s4] sm:$0x3] }
  0x16   : > { %v298_v5 = vsub.f32 1.0, %v297_v4  ;;  %v346_v56 = vperm.slane %v344_v55, 0  ;;  %v347_v57 = vperm.slane %v344_v55, 1 }
  0x18   : > { %v299_v6 = vmul.f32 %v613_v3, %v298_v5  ;;  %400 = vmatpush.bf16.msra.mxu0 %v551_v29 }
  0x19   : > { %413 = vmatpush.bf16.msra.mxu1 %v555_v31 }
  0x1a   : > { %v300_v7 = vadd.f32 %v613_v3, %v299_v6 }
  0x1c   : > { %v302_v8 = vsel %vm301_vm1, %v613_v3, %v300_v7  ;;  %401 = vmatpush.bf16.msra.mxu0 %v543_v36 }
  0x1d   : > { %414 = vmatpush.bf16.msra.mxu1 %v547_v39 }
  0x84   : > { %v295_v9 = vpop.xlane.xlu0 %294 }
  0x85   : > { %v303_v10 = vmul.f32 %v302_v8, %v295_v9 }
  0x87   : > { %v304_v11 = vsub.f32 %v291_v0, %v303_v10 }
  0x89   : > { %v305_v12 = vmul.f32 %v304_v11, %v304_v11 }
  0x8b   : > { %v306_v13 = vsel %vm292_vm0, %v305_v12, 0.0 }
  0x8c   : > { %307 = vadd.xlane.f32.xlu0 %v306_v13 }
  0xff   : > { %v308_v35 = vpop.xlane.xlu0 %307 }
 0x100   : > { %v309_v38 = vmul.f32 %v308_v35, %v302_v8 }
 0x102   : > { %v310_v40 = vadd.f32 1e-05, %v309_v38 }
 0x104   : > { %614 = vrsqrt.f32 %v310_v40  ;;  %vm317_vm3 = vweird.f32 %v310_v40 }
 0x10a   : > { %v615_v41 = vpop.eup %614 }
 0x10b   : > { %v312_v42 = vmul.f32 %v615_v41, %v310_v40  ;;  %vm318_vm2 = vweird.f32 %v615_v41 }
 0x10c   : > { %vm319_vm4 = vmor %vm317_vm3, %vm318_vm2 }
 0x10d   : > { %v313_v43 = vmul.f32 %v615_v41, %v312_v42 }
 0x10f   : > { %v314_v44 = vmul.f32 0.5, %v313_v43 }
 0x111   : > { %v315_v45 = vsub.f32 1.5, %v314_v44 }
 0x113   : > { %v316_v46 = vmul.f32 %v615_v41, %v315_v45 }
 0x115   : > { %v320_v48 = vsel %vm319_vm4, %v615_v41, %v316_v46 }
 0x116   : > { %v321_v50 = vmul.f32 %v320_v48, %v304_v11 }
 0x118   : > { %v326_v51 = vmul.f32 %v610_v47, %v321_v50 }
 0x11a   : > { %v331_v52 = vadd.f32 %v611_v49, %v326_v51 }
 0x11c   : > { %v332_v53 = vpack.c.bf16 %v331_v52, %v331_v52 }
 0x11e   : > { %334 = vst.msk [vmem:[#allocation2] sm:$0xf] %vm333_vm5, %v332_v53 }
 0x125   : > { %v335_v54 = vld [vmem:[#allocation2] sm:$0xf] }
 0x126   : > { %572 = vmatmul.msk.bf16.vlgmr.msra.gmra.mxu0 %vm292_vm0, %v335_v54  ;;  %573 = vmatmul.msk.bf16.vlgmr.msra.gmra.mxu1 %vm292_vm0, %v335_v54 }
 0x1a3   : > { %v403_v58 = vpop.f32.mrf.mxu0  ;;  %v416_v59 = vpop.f32.mrf.mxu1 }
 0x1a4   : > { %v404_v60 = vadd.f32 %v403_v58, %v346_v56  ;;  %v417_v61 = vadd.f32 %v416_v59, %v347_v57 }
 0x1a6   : > { %v420_v62 = vpack.c.bf16 %v417_v61, %v404_v60 }
 0x1a8   : > { %421 = vst [vmem:[%s284_s26] sm:$0xff] %v420_v62 }
 0x1ab   : > { %v405_v63 = vpop.f32.mrf.mxu0  ;;  %v418_v0 = vpop.f32.mrf.mxu1 }
 0x1ac PF: > { %s15_s20 = sadd.s32 1, %s638_s20   ;;  %s778_s18 = smov %s634_s19 }
 0x1ad   : > { %p12_p5 = scmp.ge.s32.totalorder %s15_s20, 4   ;;  %s779_s19 = smov %s781_s21 }
 0x1af   :  { %14 = sbr.rel (!%p12_p5) target bundleno = 2 (0x2), region = 80 }

// kernel: _forward_core.24
= control target key start
LH: loop header
LB: loop body
LE: loop exit
PB: predicated region body
PF: predicated region fallthrough
CT: control target
= control target key end

     0   :  { %s726_s15 = smov 0   ;;  %s728_s16 = smov 0   ;;  %s818_s0 = inlined_call_operand.vmem [shape: bf16[16,256], index: 0, kind: input, shape index: {}]   ;;  %s819_s1 = inlined_call_operand.vmem [shape: bf16[256,128], index: 1, kind: input, shape index: {}]   ;;  %s820_s2 = inlined_call_operand.vmem [shape: f32[1,128], index: 2, kind: input, shape index: {}]   ;;  %s821_s3 = inlined_call_operand.vmem [shape: f32[16,128], index: 3, kind: input, shape index: {}]   ;;  %s822_s4 = inlined_call_operand.vmem [shape: f32[16,128], index: 4, kind: output, shape index: {}]  }
   0x1   :  { %s730_s17 = smov 0  }
   0x2 LB: > { %s26_s18 = sadd.s32 1, %s695_s16  ;;  %p564_p0 = scmp.ge.s32.totalorder %s699_s17, 1  ;;  %s699_s17 = sphi %s730_s17, %s14_s17   ;;  %s695_s16 = sphi %s728_s16, %s824_s16   ;;  %s691_s15 = sphi %s726_s15, %s823_s15  }
   0x3   : > { %p28_p1 = scmp.ge.s32.totalorder %s26_s18, 2  ;;  %p207_p2 = scmp.lt.s32.totalorder %s699_s17, 3 }
   0x5   : > { %s826_s18 = smov (%p28_p1, %s26_s18), 0  ;;  %p208_p3 = pnand %p564_p0, %p207_p2 }
   0x6   : > { %p249_p4 = scmp.lt.s32.totalorder (!%p208_p3), %s691_s15, 1 }
   0x7   : > { %211 = sbr.rel (%p208_p3) target bundleno = 179 (0xb3), region = 36 }
   0xc   : > { %v643_v0 = vld [vmem:[%s819_s1 + $0x38] sm:$0xff]  ;;  %v642_v2 = vld [vmem:[%s819_s1 + $0x30] sm:$0xff]  ;;  %v641_v4 = vld [vmem:[%s819_s1 + $0x28] sm:$0xff]  ;;  %s828_s15 = smov (!%p249_p4, %s691_s15), 1 }
   0xd   : > { %v651_v1 = vld [vmem:[%s819_s1 + $0x78] sm:$0xff]  ;;  %415 = vmatpush.bf16.msra.mxu0 %v643_v0  ;;  %v650_v3 = vld [vmem:[%s819_s1 + $0x70] sm:$0xff]  ;;  %v649_v5 = vld [vmem:[%s819_s1 + $0x68] sm:$0xff]  ;;  %s774_s13 = sshll.u32 %s828_s15, 3 }
   0xe   : > { %428 = vmatpush.bf16.msra.mxu1 %v651_v1  ;;  %v640_v6 = vld [vmem:[%s819_s1 + $0x20] sm:$0xff]  ;;  %v639_v8 = vld [vmem:[%s819_s1 + $0x18] sm:$0xff]  ;;  %v638_v10 = vld [vmem:[%s819_s1 + $0x10] sm:$0xff]  ;;  %s253_s24 = scalar_lea.vmem %s818_s0, %s774_s13  ;;  %s267_s10 = scalar_lea.vmem %s821_s3, %s774_s13 }
   0xf   : > { %v648_v7 = vld [vmem:[%s819_s1 + $0x60] sm:$0xff]  ;;  %v647_v9 = vld [vmem:[%s819_s1 + $0x58] sm:$0xff]  ;;  %v646_v11 = vld [vmem:[%s819_s1 + $0x50] sm:$0xff]  ;;  %s274_s14 = scalar_lea.vmem %s822_s4, %s774_s13 }
  0x10   : > { %v637_v12 = vld [vmem:[%s819_s1 + $0x8] sm:$0xff]  ;;  %v275_v14 = vld [vmem:[%s253_s24] sm:$0xff] }
  0x11   : > { %416 = vmatpush.bf16.msra.mxu0 %v642_v2  ;;  %v645_v13 = vld [vmem:[%s819_s1 + $0x48] sm:$0xff]  ;;  %v313_v15 = vunpack.c.l.b16 %v275_v14  ;;  %v314_v16 = vunpack.c.h.b16 %v275_v14  ;;  %v636_v17 = vld [vmem:[%s819_s1] sm:$0xff] }
  0x12   : > { %429 = vmatpush.bf16.msra.mxu1 %v650_v3  ;;  %v644_v18 = vld [vmem:[%s819_s1 + $0x40] sm:$0xff] }
  0x13   : > { %v315_v19 = vpack.c.b16 %v313_v15, %v313_v15  ;;  %v316_v20 = vpack.c.b16 %v314_v16, %v314_v16  ;;  %v676_v21 = vld [vmem:[%s820_s2] ss:$0 sm:$0xff] }
  0x14   : > { %v441_v25 = vld [vmem:[%s267_s10] sm:$0xff] }
  0x15   : > { %417 = vmatpush.bf16.msra.mxu0 %v641_v4 }
  0x16   : > { %430 = vmatpush.bf16.msra.mxu1 %v649_v5 }
  0x19   : > { %418 = vmatpush.bf16.msra.mxu0 %v640_v6 }
  0x1a   : > { %431 = vmatpush.bf16.msra.mxu1 %v648_v7 }
  0x1d   : > { %419 = vmatpush.bf16.msra.mxu0 %v639_v8 }
  0x1e   : > { %432 = vmatpush.bf16.msra.mxu1 %v647_v9 }
  0x21   : > { %420 = vmatpush.bf16.msra.mxu0 %v638_v10 }
  0x22   : > { %433 = vmatpush.bf16.msra.mxu1 %v646_v11 }
  0x25   : > { %421 = vmatpush.bf16.msra.mxu0 %v637_v12 }
  0x26   : > { %434 = vmatpush.bf16.msra.mxu1 %v645_v13 }
  0x29   : > { %422 = vmatpush.bf16.msra.mxu0 %v636_v17 }
  0x2a   : > { %435 = vmatpush.bf16.msra.mxu1 %v644_v18 }
  0x2c   : > { %423 = vmatmul.bf16.vlgmr.msra.gmra.mxu0 %v315_v19 }
  0x2d   : > { %436 = vmatmul.bf16.vlgmr.msra.gmra.mxu1 %v316_v20 }
  0xa9   : > { %v424_v22 = vpop.f32.mrf.mxu0 }
  0xaa   : > { %v437_v23 = vpop.f32.mrf.mxu1  ;;  %v425_v24 = vadd.f32 %v676_v21, %v424_v22 }
  0xac   : > { %v438_v26 = vadd.f32 %v437_v23, %v425_v24 }
  0xae   : > { %v442_v27 = vadd.f32 %v441_v25, %v438_v26 }
  0xb0   : > { %443 = vst [vmem:[%s274_s14] sm:$0xff] %v442_v27 }
  0xb1   : > { %v426_v28 = vpop.f32.mrf.mxu0 }
  0xb2   : > { %v439_v29 = vpop.f32.mrf.mxu1 }
  0xb3 PF: > { %s14_s17 = sadd.s32 1, %s699_s17   ;;  %s823_s15 = smov %s695_s16 }
  0xb4   : > { %p11_p5 = scmp.ge.s32.totalorder %s14_s17, 4   ;;  %s824_s16 = smov %s826_s18 }
  0xb6   :  { %13 = sbr.rel (!%p11_p5) target bundleno = 2 (0x2), region = 75 }

// kernel: _forward_core.23
= control target key start
LH: loop header
LB: loop body
LE: loop exit
PB: predicated region body
PF: predicated region fallthrough
CT: control target
= control target key end

     0   :  { %s759_s18 = smov 0   ;;  %s761_s19 = smov 0   ;;  %s876_s0 = inlined_call_operand.vmem [shape: f32[16,64], index: 0, kind: input, shape index: {}]   ;;  %s877_s1 = inlined_call_operand.vmem [shape: f32[1,64], index: 1, kind: input, shape index: {}]   ;;  %s878_s2 = inlined_call_operand.vmem [shape: f32[1,64], index: 2, kind: input, shape index: {}]   ;;  %s879_s3 = inlined_call_operand.vmem [shape: bf16[64,256], index: 3, kind: input, shape index: {}]   ;;  %s880_s4 = inlined_call_operand.vmem [shape: f32[1,256], index: 4, kind: input, shape index: {}]   ;;  %s881_s5 = inlined_call_operand.vmem [shape: bf16[16,256], index: 5, kind: output, shape index: {}]  }
   0x1   :  { %s763_s20 = smov 0  }
   0x2 LB: > { %s27_s21 = sadd.s32 1, %s722_s19  ;;  %p616_p0 = scmp.ge.s32.totalorder %s726_s20, 1  ;;  %s726_s20 = sphi %s763_s20, %s15_s20   ;;  %s722_s19 = sphi %s761_s19, %s883_s19   ;;  %s718_s18 = sphi %s759_s18, %s882_s18  }
   0x3   : > { %p29_p1 = scmp.ge.s32.totalorder %s27_s21, 2  ;;  %p221_p2 = scmp.lt.s32.totalorder %s726_s20, 3 }
   0x5   : > { %s885_s21 = smov (%p29_p1, %s27_s21), 0  ;;  %p222_p3 = pnand %p616_p0, %p221_p2 }
   0x6   : > { %p261_p4 = scmp.lt.s32.totalorder (!%p222_p3), %s718_s18, 1 }
   0x7   : > { %225 = sbr.rel (%p222_p3) target bundleno = 480 (0x1e0), region = 40 }
   0xc   : > { %s887_s18 = smov (!%p261_p4, %s718_s18), 1  ;;  %vm292_vm0 = vcmask 523264   ;;  %v728_v2 = vmov 64.0   ;;  %v646_v14 = vld [vmem:[%s879_s3 + $0x30] sm:$0xf]  ;;  %vm333_vm5 = vcmask 519168  }
   0xd   : > { %s617_s22 = sshll.u32 %s887_s18, 3  ;;  %692 = vrcp.f32 %v728_v2  ;;  %v664_v15 = vld [vmem:[%s879_s3 + $0x34] sm:$0xf0]  ;;  %v663_v16 = vld [vmem:[%s879_s3 + $0x34] sm:$0xf] }
   0xe   : > { %s264_s25 = scalar_lea.vmem %s876_s0, %s617_s22  ;;  %v647_v17 = vor.u32 %v664_v15, %v646_v14  ;;  %v648_v18 = vld [vmem:[%s879_s3 + $0x38] sm:$0xf0]  ;;  %v638_v20 = vld [vmem:[%s879_s3 + $0x20] sm:$0xf]  ;;  %v662_v21 = vld [vmem:[%s879_s3 + $0x24] sm:$0xf0]  ;;  %s284_s26 = scalar_lea.vmem %s881_s5, %s617_s22 }
   0xf   : > { %v291_v0 = vld [vmem:[%s264_s25] sm:$0xff]  ;;  %v651_v19 = vor.u32 %v663_v16, %v648_v18  ;;  %v639_v23 = vor.u32 %v662_v21, %v638_v20  ;;  %v640_v24 = vld [vmem:[%s879_s3 + $0x28] sm:$0xf0]  ;;  %v630_v26 = vld [vmem:[%s879_s3 + $0x10] sm:$0xf] }
  0x10   : > { %v293_v1 = vsel %vm292_vm0, %v291_v0, 0.0  ;;  %398 = vmatpush.bf16.msra.mxu0 %v647_v17  ;;  %v661_v22 = vld [vmem:[%s879_s3 + $0x24] sm:$0xf]  ;;  %v660_v27 = vld [vmem:[%s879_s3 + $0x14] sm:$0xf0] }
  0x11   : > { %294 = vadd.xlane.f32.xlu0 %v293_v1  ;;  %411 = vmatpush.bf16.msra.mxu1 %v651_v19  ;;  %v643_v25 = vor.u32 %v661_v22, %v640_v24  ;;  %v659_v28 = vld [vmem:[%s879_s3 + $0x14] sm:$0xf]  ;;  %v631_v29 = vor.u32 %v660_v27, %v630_v26  ;;  %v632_v30 = vld [vmem:[%s879_s3 + $0x18] sm:$0xf0]  ;;  %v622_v32 = vld [vmem:[%s879_s3] sm:$0xf] }
  0x12   : > { %v635_v31 = vor.u32 %v659_v28, %v632_v30  ;;  %v658_v33 = vld [vmem:[%s879_s3 + $0x4] sm:$0xf0]  ;;  %v657_v34 = vld [vmem:[%s879_s3 + $0x4] sm:$0xf]  ;;  %v624_v37 = vld [vmem:[%s879_s3 + $0x8] sm:$0xf0] }
  0x13   : > { %v693_v3 = vpop.eup %692  ;;  %v623_v36 = vor.u32 %v658_v33, %v622_v32  ;;  %v627_v39 = vor.u32 %v657_v34, %v624_v37  ;;  %v690_v47 = vld [vmem:[%s877_s1] ss:$0 sm:$0xff] }
  0x14   : > { %v297_v4 = vmul.f32 64.0, %v693_v3  ;;  %vm301_vm1 = vweird.f32 %v693_v3  ;;  %399 = vmatpush.bf16.msra.mxu0 %v639_v23  ;;  %v691_v49 = vld [vmem:[%s878_s2] ss:$0 sm:$0xff] }
  0x15   : > { %412 = vmatpush.bf16.msra.mxu1 %v643_v25  ;;  %v344_v55 = vld [vmem:[%s880_s4] sm:$0x3] }
  0x16   : > { %v298_v5 = vsub.f32 1.0, %v297_v4  ;;  %v346_v56 = vperm.slane %v344_v55, 0  ;;  %v347_v57 = vperm.slane %v344_v55, 1 }
  0x18   : > { %v299_v6 = vmul.f32 %v693_v3, %v298_v5  ;;  %400 = vmatpush.bf16.msra.mxu0 %v631_v29 }
  0x19   : > { %413 = vmatpush.bf16.msra.mxu1 %v635_v31 }
  0x1a   : > { %v300_v7 = vadd.f32 %v693_v3, %v299_v6 }
  0x1c   : > { %v302_v8 = vsel %vm301_vm1, %v693_v3, %v300_v7  ;;  %401 = vmatpush.bf16.msra.mxu0 %v623_v36 }
  0x1d   : > { %414 = vmatpush.bf16.msra.mxu1 %v627_v39 }
  0x84   : > { %v295_v9 = vpop.xlane.xlu0 %294 }
  0x85   : > { %v303_v10 = vmul.f32 %v302_v8, %v295_v9 }
  0x87   : > { %v304_v11 = vsub.f32 %v291_v0, %v303_v10 }
  0x89   : > { %v305_v12 = vmul.f32 %v304_v11, %v304_v11 }
  0x8b   : > { %v306_v13 = vsel %vm292_vm0, %v305_v12, 0.0 }
  0x8c   : > { %307 = vadd.xlane.f32.xlu0 %v306_v13 }
  0xff   : > { %v308_v35 = vpop.xlane.xlu0 %307 }
 0x100   : > { %v309_v38 = vmul.f32 %v308_v35, %v302_v8 }
 0x102   : > { %v310_v40 = vadd.f32 1e-05, %v309_v38 }
 0x104   : > { %694 = vrsqrt.f32 %v310_v40  ;;  %vm317_vm3 = vweird.f32 %v310_v40 }
 0x10a   : > { %v695_v41 = vpop.eup %694 }
 0x10b   : > { %v312_v42 = vmul.f32 %v695_v41, %v310_v40  ;;  %vm318_vm2 = vweird.f32 %v695_v41 }
 0x10c   : > { %vm319_vm4 = vmor %vm317_vm3, %vm318_vm2 }
 0x10d   : > { %v313_v43 = vmul.f32 %v695_v41, %v312_v42 }
 0x10f   : > { %v314_v44 = vmul.f32 0.5, %v313_v43 }
 0x111   : > { %v315_v45 = vsub.f32 1.5, %v314_v44 }
 0x113   : > { %v316_v46 = vmul.f32 %v695_v41, %v315_v45 }
 0x115   : > { %v320_v48 = vsel %vm319_vm4, %v695_v41, %v316_v46 }
 0x116   : > { %v321_v50 = vmul.f32 %v320_v48, %v304_v11 }
 0x118   : > { %v326_v51 = vmul.f32 %v690_v47, %v321_v50 }
 0x11a   : > { %v331_v52 = vadd.f32 %v691_v49, %v326_v51 }
 0x11c   : > { %v332_v53 = vpack.c.bf16 %v331_v52, %v331_v52 }
 0x11e   : > { %334 = vst.msk [vmem:[#allocation2] sm:$0xf] %vm333_vm5, %v332_v53 }
 0x125   : > { %v335_v54 = vld [vmem:[#allocation2] sm:$0xf] }
 0x126   : > { %652 = vmatmul.msk.bf16.vlgmr.msra.gmra.mxu0 %vm292_vm0, %v335_v54  ;;  %653 = vmatmul.msk.bf16.vlgmr.msra.gmra.mxu1 %vm292_vm0, %v335_v54 }
 0x1a3   : > { %v403_v58 = vpop.f32.mrf.mxu0  ;;  %v416_v59 = vpop.f32.mrf.mxu1 }
 0x1a4   : > { %v846_v60 = vadd.f32 %v403_v58, %v346_v56  ;;  %v848_v61 = vadd.f32 %v416_v59, %v347_v57 }
 0x1a6   : > { %v851_v62 = vmul.f32 0.70710677, %v846_v60  ;;  %v854_v63 = vmul.f32 0.70710677, %v848_v61 }
 0x1a8   : > { %v422_v0 = vand.u32 2147483647, %v851_v62  ;;  %v423_v1 = vand.u32 2147483647, %v854_v63  ;;  %vm488_vm14 = vcmp.ge.f32.partialorder %v851_v62, 0.0  ;;  %vm489_vm15 = vcmp.ge.f32.partialorder %v854_v63, 0.0 }
 0x1aa   : > { %v424_v2 = vmul.f32 0.3275911, %v422_v0  ;;  %v425_v3 = vmul.f32 0.3275911, %v423_v1  ;;  %v476_v26 = vsub.f32 0.0, %v422_v0  ;;  %v477_v30 = vsub.f32 0.0, %v423_v1 }
 0x1ab   : > { %v405_v4 = vpop.f32.mrf.mxu0  ;;  %v418_v5 = vpop.f32.mrf.mxu1 }
 0x1ac   : > { %v426_v6 = vadd.f32 1.0, %v424_v2  ;;  %v427_v7 = vadd.f32 1.0, %v425_v3  ;;  %v478_v33 = vmul.f32 %v476_v26, %v422_v0  ;;  %v479_v36 = vmul.f32 %v477_v30, %v423_v1 }
 0x1ad   : > { %v494_v1 = vmul.f32 0.5, %v846_v60  ;;  %v495_v4 = vmul.f32 0.5, %v848_v61 }
 0x1ae   : > { %696 = vrcp.f32 %v426_v6  ;;  %v439_v13 = vand.u32 2147483648, %v426_v6  ;;  %v437_v16 = vand.u32 2147483647, %v426_v6  ;;  %v454_v17 = vand.u32 2147483648, %v427_v7 }
 0x1af   : > { %698 = vrcp.f32 %v427_v7  ;;  %v452_v19 = vand.u32 2147483647, %v427_v7  ;;  %vm433_vm8 = vweird.f32 %v426_v6  ;;  %vm448_vm10 = vweird.f32 %v427_v7 }
 0x1b0   : > { %v440_v21 = vor.u32 1.1754944e-38, %v439_v13  ;;  %vm438_vm11 = vcmp.eq.f32.partialorder %v437_v16, 8.507059e+37  ;;  %v455_v24 = vor.u32 1.1754944e-38, %v454_v17  ;;  %v480_v39 = vmul.f32 1.442695, %v478_v33 }
 0x1b1   : > { %vm453_vm13 = vcmp.eq.f32.partialorder %v452_v19, 8.507059e+37  ;;  %v482_v42 = vmul.f32 1.442695, %v479_v36 }
 0x1b2   : > { %700 = vpow2.f32 %v480_v39 }
 0x1b3   : > { %702 = vpow2.f32 %v482_v42 }
 0x1b4   : > { %v697_v8 = vpop.eup %696 }
 0x1b5   : > { %v699_v9 = vpop.eup %698  ;;  %v429_v10 = vmul.f32 %v697_v8, %v426_v6  ;;  %vm434_vm6 = vweird.f32 %v697_v8 }
 0x1b6   : > { %v444_v11 = vmul.f32 %v699_v9, %v427_v7  ;;  %vm449_vm7 = vweird.f32 %v699_v9  ;;  %vm435_vm9 = vmor %vm433_vm8, %vm434_vm6 }
 0x1b7   : > { %v430_v12 = vsub.f32 1.0, %v429_v10  ;;  %vm450_vm12 = vmor %vm448_vm10, %vm449_vm7 }
 0x1b8   : > { %v445_v14 = vsub.f32 1.0, %v444_v11  ;;  %v701_v51 = vpop.eup %700 }
 0x1b9   : > { %v431_v15 = vmul.f32 %v697_v8, %v430_v12  ;;  %v703_v53 = vpop.eup %702 }
 0x1ba   : > { %v446_v18 = vmul.f32 %v699_v9, %v445_v14 }
 0x1bb   : > { %v432_v20 = vadd.f32 %v697_v8, %v431_v15 }
 0x1bc   : > { %v447_v22 = vadd.f32 %v699_v9, %v446_v18 }
 0x1bd   : > { %v436_v23 = vsel %vm435_vm9, %v697_v8, %v432_v20 }
 0x1be   : > { %v441_v25 = vsel %vm438_vm11, %v440_v21, %v436_v23  ;;  %v451_v27 = vsel %vm450_vm12, %v699_v9, %v447_v22 }
 0x1bf   : > { %v458_v28 = vmul.f32 1.0614054, %v441_v25  ;;  %v456_v29 = vsel %vm453_vm13, %v455_v24, %v451_v27 }
 0x1c0   : > { %v459_v31 = vmul.f32 1.0614054, %v456_v29 }
 0x1c1   : > { %v460_v32 = vadd.f32 -1.4531521, %v458_v28 }
 0x1c2   : > { %v461_v34 = vadd.f32 -1.4531521, %v459_v31 }
 0x1c3   : > { %v462_v35 = vmul.f32 %v460_v32, %v441_v25 }
 0x1c4   : > { %v463_v37 = vmul.f32 %v461_v34, %v456_v29 }
 0x1c5   : > { %v464_v38 = vadd.f32 1.4214138, %v462_v35 }
 0x1c6   : > { %v465_v40 = vadd.f32 1.4214138, %v463_v37 }
 0x1c7   : > { %v466_v41 = vmul.f32 %v464_v38, %v441_v25 }
 0x1c8   : > { %v467_v43 = vmul.f32 %v465_v40, %v456_v29 }
 0x1c9   : > { %v468_v44 = vadd.f32 -0.28449672, %v466_v41 }
 0x1ca   : > { %v469_v45 = vadd.f32 -0.28449672, %v467_v43 }
 0x1cb   : > { %v470_v46 = vmul.f32 %v468_v44, %v441_v25 }
 0x1cc   : > { %v471_v47 = vmul.f32 %v469_v45, %v456_v29 }
 0x1cd   : > { %v472_v48 = vadd.f32 0.2548296, %v470_v46 }
 0x1ce   : > { %v473_v49 = vadd.f32 0.2548296, %v471_v47 }
 0x1cf   : > { %v474_v50 = vmul.f32 %v472_v48, %v441_v25 }
 0x1d0   : > { %v475_v52 = vmul.f32 %v473_v49, %v456_v29 }
 0x1d1   : > { %v484_v54 = vmul.f32 %v701_v51, %v474_v50 }
 0x1d2   : > { %v485_v55 = vmul.f32 %v703_v53, %v475_v52 }
 0x1d3   : > { %v486_v56 = vsub.f32 1.0, %v484_v54 }
 0x1d4   : > { %v487_v57 = vsub.f32 1.0, %v485_v55 }
 0x1d5   : > { %v490_v58 = vsub.f32 0.0, %v486_v56 }
 0x1d6   : > { %v491_v59 = vsub.f32 0.0, %v487_v57 }
 0x1d7   : > { %v492_v0 = vsel %vm488_vm14, %v486_v56, %v490_v58 }
 0x1d8   : > { %v496_v2 = vadd.f32 1.0, %v492_v0  ;;  %v493_v3 = vsel %vm489_vm15, %v487_v57, %v491_v59 }
 0x1d9   : > { %v497_v5 = vadd.f32 1.0, %v493_v3 }
 0x1da   : > { %v498_v6 = vmul.f32 %v496_v2, %v494_v1 }
 0x1db   : > { %v499_v7 = vmul.f32 %v497_v5, %v495_v4 }
 0x1dd   : > { %v500_v8 = vpack.c.bf16 %v499_v7, %v498_v6 }
 0x1df   : > { %501 = vst [vmem:[%s284_s26] sm:$0xff] %v500_v8 }
 0x1e0 PF: > { %s15_s20 = sadd.s32 1, %s726_s20   ;;  %s882_s18 = smov %s722_s19 }
 0x1e1   : > { %p12_p5 = scmp.ge.s32.totalorder %s15_s20, 4   ;;  %s883_s19 = smov %s885_s21 }
 0x1e3   :  { %14 = sbr.rel (!%p12_p5) target bundleno = 2 (0x2), region = 80 }

// kernel: _forward_core.30
= control target key start
LH: loop header
LB: loop body
LE: loop exit
PB: predicated region body
PF: predicated region fallthrough
CT: control target
= control target key end

     0   :  { %s593_s18 = smov 0   ;;  %s595_s19 = smov 0   ;;  %s657_s0 = inlined_call_operand.vmem [shape: f32[16,64], index: 0, kind: input, shape index: {}]   ;;  %s658_s1 = inlined_call_operand.vmem [shape: f32[1,64], index: 1, kind: input, shape index: {}]   ;;  %s659_s2 = inlined_call_operand.vmem [shape: f32[1,64], index: 2, kind: input, shape index: {}]   ;;  %s660_s3 = inlined_call_operand.vmem [shape: bf16[64,128], index: 3, kind: input, shape index: {}]   ;;  %s661_s4 = inlined_call_operand.vmem [shape: f32[1,128], index: 4, kind: input, shape index: {}]   ;;  %s662_s5 = inlined_call_operand.vmem [shape: f32[16,128], index: 5, kind: output, shape index: {}]  }
   0x1   :  { %s597_s20 = smov 0  }
   0x2 LB: > { %s27_s21 = sadd.s32 1, %s556_s19  ;;  %p480_p0 = scmp.ge.s32.totalorder %s560_s20, 1  ;;  %s560_s20 = sphi %s597_s20, %s15_s20   ;;  %s556_s19 = sphi %s595_s19, %s664_s19   ;;  %s552_s18 = sphi %s593_s18, %s663_s18  }
   0x3   : > { %p29_p1 = scmp.ge.s32.totalorder %s27_s21, 2  ;;  %p217_p2 = scmp.lt.s32.totalorder %s560_s20, 3 }
   0x5   : > { %s666_s21 = smov (%p29_p1, %s27_s21), 0  ;;  %p218_p3 = pnand %p480_p0, %p217_p2 }
   0x6   : > { %p253_p4 = scmp.lt.s32.totalorder (!%p218_p3), %s552_s18, 1 }
   0x7   : > { %221 = sbr.rel (%p218_p3) target bundleno = 428 (0x1ac), region = 40 }
   0xc   : > { %s668_s18 = smov (!%p253_p4, %s552_s18), 1  ;;  %vm277_vm0 = vcmask 523264   ;;  %v562_v2 = vmov 64.0   ;;  %v505_v14 = vld [vmem:[%s660_s3 + $0x18] sm:$0xff]  ;;  %v504_v15 = vld [vmem:[%s660_s3 + $0x10] sm:$0xff]  ;;  %v503_v16 = vld [vmem:[%s660_s3 + $0x8] sm:$0xff] }
   0xd   : > { %s481_s22 = sshll.u32 %s668_s18, 3  ;;  %534 = vrcp.f32 %v562_v2  ;;  %365 = vmatpush.bf16.msra.mxu0 %v505_v14  ;;  %v502_v18 = vld [vmem:[%s660_s3] sm:$0xff]  ;;  %vm318_vm5 = vcmask 519168  }
   0xe   : > { %s256_s25 = scalar_lea.vmem %s657_s0, %s481_s22  ;;  %v531_v27 = vld [vmem:[%s658_s1] ss:$0 sm:$0xff]  ;;  %s270_s17 = scalar_lea.vmem %s662_s5, %s481_s22 }
   0xf   : > { %v276_v0 = vld [vmem:[%s256_s25] sm:$0xff] }
  0x10   : > { %v278_v1 = vsel %vm277_vm0, %v276_v0, 0.0  ;;  %v532_v29 = vld [vmem:[%s659_s2] ss:$0 sm:$0xff] }
  0x11   : > { %279 = vadd.xlane.f32.xlu0 %v278_v1  ;;  %366 = vmatpush.bf16.msra.mxu0 %v504_v15  ;;  %v533_v35 = vld [vmem:[%s661_s4] ss:$0 sm:$0xff] }
  0x13   : > { %v535_v3 = vpop.eup %534 }
  0x14   : > { %v282_v4 = vmul.f32 64.0, %v535_v3  ;;  %vm286_vm1 = vweird.f32 %v535_v3 }
  0x15   : > { %367 = vmatpush.bf16.msra.mxu0 %v503_v16 }
  0x16   : > { %v283_v5 = vsub.f32 1.0, %v282_v4 }
  0x18   : > { %v284_v6 = vmul.f32 %v535_v3, %v283_v5 }
  0x19   : > { %368 = vmatpush.bf16.msra.mxu0 %v502_v18 }
  0x1a   : > { %v285_v7 = vadd.f32 %v535_v3, %v284_v6 }
  0x1c   : > { %v287_v8 = vsel %vm286_vm1, %v535_v3, %v285_v7 }
  0x84   : > { %v280_v9 = vpop.xlane.xlu0 %279 }
  0x85   : > { %v288_v10 = vmul.f32 %v287_v8, %v280_v9 }
  0x87   : > { %v289_v11 = vsub.f32 %v276_v0, %v288_v10 }
  0x89   : > { %v290_v12 = vmul.f32 %v289_v11, %v289_v11 }
  0x8b   : > { %v291_v13 = vsel %vm277_vm0, %v290_v12, 0.0 }
  0x8c   : > { %292 = vadd.xlane.f32.xlu0 %v291_v13 }
  0xff   : > { %v293_v17 = vpop.xlane.xlu0 %292 }
 0x100   : > { %v294_v19 = vmul.f32 %v293_v17, %v287_v8 }
 0x102   : > { %v295_v20 = vadd.f32 1e-05, %v294_v19 }
 0x104   : > { %536 = vrsqrt.f32 %v295_v20  ;;  %vm302_vm3 = vweird.f32 %v295_v20 }
 0x10a   : > { %v537_v21 = vpop.eup %536 }
 0x10b   : > { %v297_v22 = vmul.f32 %v537_v21, %v295_v20  ;;  %vm303_vm2 = vweird.f32 %v537_v21 }
 0x10c   : > { %vm304_vm4 = vmor %vm302_vm3, %vm303_vm2 }
 0x10d   : > { %v298_v23 = vmul.f32 %v537_v21, %v297_v22 }
 0x10f   : > { %v299_v24 = vmul.f32 0.5, %v298_v23 }
 0x111   : > { %v300_v25 = vsub.f32 1.5, %v299_v24 }
 0x113   : > { %v301_v26 = vmul.f32 %v537_v21, %v300_v25 }
 0x115   : > { %v305_v28 = vsel %vm304_vm4, %v537_v21, %v301_v26 }
 0x116   : > { %v306_v30 = vmul.f32 %v305_v28, %v289_v11 }
 0x118   : > { %v311_v31 = vmul.f32 %v531_v27, %v306_v30 }
 0x11a   : > { %v316_v32 = vadd.f32 %v532_v29, %v311_v31 }
 0x11c   : > { %v317_v33 = vpack.c.bf16 %v316_v32, %v316_v32 }
 0x11e   : > { %319 = vst.msk [vmem:[#allocation2] sm:$0xf] %vm318_vm5, %v317_v33 }
 0x125   : > { %v320_v34 = vld [vmem:[#allocation2] sm:$0xf] }
 0x126   : > { %499 = vmatmul.msk.bf16.vlgmr.msra.gmra.mxu0 %vm277_vm0, %v320_v34 }
 0x1a3   : > { %v370_v36 = vpop.f32.mrf.mxu0 }
 0x1a4   : > { %v371_v37 = vadd.f32 %v533_v35, %v370_v36 }
 0x1a6   : > { %374 = vst [vmem:[%s270_s17] sm:$0xff] %v371_v37 }
 0x1ab   : > { %v372_v38 = vpop.f32.mrf.mxu0 }
 0x1ac PF: > { %s15_s20 = sadd.s32 1, %s560_s20   ;;  %s663_s18 = smov %s556_s19 }
 0x1ad   : > { %p12_p5 = scmp.ge.s32.totalorder %s15_s20, 4   ;;  %s664_s19 = smov %s666_s21 }
 0x1af   :  { %14 = sbr.rel (!%p12_p5) target bundleno = 2 (0x2), region = 80 }

// kernel: _forward_core.31
= control target key start
LH: loop header
LB: loop body
LE: loop exit
PB: predicated region body
PF: predicated region fallthrough
CT: control target
= control target key end

     0   :  { %s672_s18 = smov 0   ;;  %s674_s19 = smov 0   ;;  %s740_s0 = inlined_call_operand.vmem [shape: f32[48,32], index: 0, kind: input, shape index: {}]   ;;  %s741_s1 = inlined_call_operand.vmem [shape: f32[1,32], index: 1, kind: input, shape index: {}]   ;;  %s742_s2 = inlined_call_operand.vmem [shape: f32[1,32], index: 2, kind: input, shape index: {}]   ;;  %s743_s3 = inlined_call_operand.vmem [shape: bf16[32,128], index: 3, kind: input, shape index: {}]   ;;  %s744_s4 = inlined_call_operand.vmem [shape: f32[1,128], index: 4, kind: input, shape index: {}]   ;;  %s745_s5 = inlined_call_operand.vmem [shape: bf16[48,128], index: 5, kind: output, shape index: {}]  }
   0x1   :  { %s676_s20 = smov 0  }
   0x2 LB: > { %s27_s21 = sadd.s32 1, %s635_s19  ;;  %p552_p0 = scmp.ge.s32.totalorder %s639_s20, 1  ;;  %s639_s20 = sphi %s676_s20, %s15_s20   ;;  %s635_s19 = sphi %s674_s19, %s747_s19   ;;  %s631_s18 = sphi %s672_s18, %s746_s18  }
   0x3   : > { %p29_p1 = scmp.ge.s32.totalorder %s27_s21, 2  ;;  %p219_p2 = scmp.lt.s32.totalorder %s639_s20, 3 }
   0x5   : > { %s749_s21 = smov (%p29_p1, %s27_s21), 0  ;;  %p220_p3 = pnand %p552_p0, %p219_p2 }
   0x6   : > { %s257_s22 = smul.u32 (!%p220_p3), 3, %s631_s18 }
   0x7   : > { %223 = sbr.rel (%p220_p3) target bundleno = 448 (0x1c0), region = 40 }
   0x8   : > { %p258_p4 = scmp.lt.s32.totalorder (!%p220_p3), %s257_s22, 5 }
   0xc   : > { %s751_s22 = smov (!%p258_p4, %s257_s22), 5  ;;  %vm287_vm0 = vcmask 261120   ;;  %v641_v6 = vmov 32.0   ;;  %v573_v31 = vld [vmem:[%s743_s3 + $0x8] sm:$0xff]  ;;  %v572_v36 = vld [vmem:[%s743_s3] sm:$0xff]  ;;  %vm378_vm6 = vcmask 257024  }
   0xd   : > { %s553_s23 = sshll.u32 %s751_s22, 3  ;;  %609 = vrcp.f32 %v641_v6  ;;  %426 = vmatpush.bf16.msra.mxu0 %v573_v31  ;;  %579 = vmatpush.bf16.msra.mxu1 %v573_v31  ;;  %v606_v47 = vld [vmem:[%s741_s1] ss:$0 sm:$0xff]  ;;  %s554_s12 = sshll.u32 %s751_s22, 2 }
   0xe   : > { %s261_s26 = scalar_lea.vmem %s740_s0, %s553_s23  ;;  %v607_v50 = vld [vmem:[%s742_s2] ss:$0 sm:$0xff]  ;;  %s277_s15 = scalar_lea.vmem %s745_s5, %s554_s12 }
   0xf   : > { %v284_v0 = vld [vmem:[%s261_s26] sm:$0xff]  ;;  %v286_v1 = vld [vmem:[%s261_s26 + $0x10] sm:$0xff]  ;;  %v285_v4 = vld [vmem:[%s261_s26 + $0x8] sm:$0xff] }
  0x10   : > { %v288_v2 = vsel %vm287_vm0, %v284_v0, 0.0  ;;  %v294_v3 = vsel %vm287_vm0, %v286_v1, 0.0  ;;  %v291_v5 = vsel %vm287_vm0, %v285_v4, 0.0 }
  0x11   : > { %289 = vadd.xlane.f32.xlu0 %v288_v2  ;;  %295 = vadd.xlane.f32.xlu1 %v294_v3 }
  0x12   : > { %427 = vmatpush.bf16.msra.mxu0 %v572_v36  ;;  %580 = vmatpush.bf16.msra.mxu1 %v572_v36 }
  0x13   : > { %v610_v7 = vpop.eup %609 }
  0x14   : > { %v298_v8 = vmul.f32 32.0, %v610_v7  ;;  %vm302_vm1 = vweird.f32 %v610_v7 }
  0x16   : > { %v299_v9 = vsub.f32 1.0, %v298_v8 }
  0x18   : > { %v300_v10 = vmul.f32 %v610_v7, %v299_v9 }
  0x19   : > { %292 = vadd.xlane.f32.xlu0 %v291_v5 }
  0x1a   : > { %v301_v11 = vadd.f32 %v610_v7, %v300_v10 }
  0x1c   : > { %v303_v12 = vsel %vm302_vm1, %v610_v7, %v301_v11 }
  0x84   : > { %v290_v13 = vpop.xlane.xlu0 %289  ;;  %v296_v17 = vpop.xlane.xlu1 %295 }
  0x85   : > { %v304_v14 = vmul.f32 %v303_v12, %v290_v13  ;;  %v306_v21 = vmul.f32 %v303_v12, %v296_v17 }
  0x87   : > { %v307_v15 = vsub.f32 %v284_v0, %v304_v14  ;;  %v700_v23 = vsub.f32 %v286_v1, %v306_v21 }
  0x89   : > { %v310_v16 = vmul.f32 %v307_v15, %v307_v15  ;;  %v312_v26 = vmul.f32 %v700_v23, %v700_v23 }
  0x8b   : > { %v313_v18 = vsel %vm287_vm0, %v310_v16, 0.0  ;;  %v319_v27 = vsel %vm287_vm0, %v312_v26, 0.0 }
  0x8c   : > { %314 = vadd.xlane.f32.xlu1 %v313_v18  ;;  %v293_v19 = vpop.xlane.xlu0 %292 }
  0x8d   : > { %v305_v20 = vmul.f32 %v303_v12, %v293_v19 }
  0x8f   : > { %v308_v22 = vsub.f32 %v285_v4, %v305_v20 }
  0x91   : > { %v311_v24 = vmul.f32 %v308_v22, %v308_v22 }
  0x93   : > { %v316_v25 = vsel %vm287_vm0, %v311_v24, 0.0 }
  0x94   : > { %317 = vadd.xlane.f32.xlu2 %v316_v25 }
  0x9c   : > { %320 = vadd.xlane.f32.xlu2 %v319_v27 }
  0xff   : > { %v315_v28 = vpop.xlane.xlu1 %314 }
 0x100   : > { %v322_v29 = vmul.f32 %v315_v28, %v303_v12 }
 0x102   : > { %v325_v30 = vadd.f32 1e-05, %v322_v29 }
 0x104   : > { %611 = vrsqrt.f32 %v325_v30  ;;  %vm334_vm3 = vweird.f32 %v325_v30 }
 0x107   : > { %v318_v32 = vpop.xlane.xlu2 %317 }
 0x108   : > { %v323_v33 = vmul.f32 %v318_v32, %v303_v12 }
 0x10a   : > { %v612_v34 = vpop.eup %611  ;;  %v326_v35 = vadd.f32 1e-05, %v323_v33 }
 0x10b   : > { %v329_v37 = vmul.f32 %v612_v34, %v325_v30  ;;  %vm335_vm2 = vweird.f32 %v612_v34 }
 0x10c   : > { %613 = vrsqrt.f32 %v326_v35  ;;  %vm336_vm4 = vmor %vm334_vm3, %vm335_vm2  ;;  %vm344_vm7 = vweird.f32 %v326_v35 }
 0x10d   : > { %v330_v38 = vmul.f32 %v612_v34, %v329_v37 }
 0x10f   : > { %v331_v39 = vmul.f32 0.5, %v330_v38  ;;  %v321_v40 = vpop.xlane.xlu2 %320 }
 0x110   : > { %v324_v41 = vmul.f32 %v321_v40, %v303_v12 }
 0x111   : > { %v332_v42 = vsub.f32 1.5, %v331_v39 }
 0x112   : > { %v614_v43 = vpop.eup %613  ;;  %v327_v44 = vadd.f32 1e-05, %v324_v41 }
 0x113   : > { %v333_v45 = vmul.f32 %v612_v34, %v332_v42  ;;  %v339_v46 = vmul.f32 %v614_v43, %v326_v35  ;;  %vm345_vm5 = vweird.f32 %v614_v43 }
 0x114   : > { %615 = vrsqrt.f32 %v327_v44  ;;  %vm346_vm8 = vmor %vm344_vm7, %vm345_vm5  ;;  %vm354_vm10 = vweird.f32 %v327_v44 }
 0x115   : > { %v337_v48 = vsel %vm336_vm4, %v612_v34, %v333_v45  ;;  %v340_v49 = vmul.f32 %v614_v43, %v339_v46 }
 0x116   : > { %v358_v51 = vmul.f32 %v337_v48, %v307_v15  ;;  %v608_v15 = vld [vmem:[%s744_s4] ss:$0 sm:$0xff] }
 0x117   : > { %v341_v52 = vmul.f32 0.5, %v340_v49 }
 0x118   : > { %v365_v53 = vmul.f32 %v606_v47, %v358_v51 }
 0x119   : > { %v342_v54 = vsub.f32 1.5, %v341_v52 }
 0x11a   : > { %v616_v55 = vpop.eup %615  ;;  %v372_v56 = vadd.f32 %v607_v50, %v365_v53 }
 0x11b   : > { %v343_v57 = vmul.f32 %v614_v43, %v342_v54  ;;  %v349_v58 = vmul.f32 %v616_v55, %v327_v44  ;;  %vm355_vm9 = vweird.f32 %v616_v55 }
 0x11c   : > { %v375_v59 = vpack.c.bf16 %v372_v56, %v372_v56  ;;  %vm356_vm11 = vmor %vm354_vm10, %vm355_vm9 }
 0x11d   : > { %v347_v60 = vsel %vm346_vm8, %v614_v43, %v343_v57  ;;  %v350_v61 = vmul.f32 %v616_v55, %v349_v58 }
 0x11e   : > { %379 = vst.msk [vmem:[#allocation2] sm:$0xf] %vm378_vm6, %v375_v59  ;;  %v359_v62 = vmul.f32 %v347_v60, %v308_v22 }
 0x11f   : > { %v351_v63 = vmul.f32 0.5, %v350_v61 }
 0x120   : > { %v366_v0 = vmul.f32 %v606_v47, %v359_v62 }
 0x121   : > { %v352_v1 = vsub.f32 1.5, %v351_v63 }
 0x122   : > { %v373_v2 = vadd.f32 %v607_v50, %v366_v0 }
 0x123   : > { %v353_v3 = vmul.f32 %v616_v55, %v352_v1 }
 0x124   : > { %v376_v4 = vpack.c.bf16 %v373_v2, %v373_v2 }
 0x125   : > { %v357_v5 = vsel %vm356_vm11, %v616_v55, %v353_v3 }
 0x126   : > { %380 = vst.msk [vmem:[#allocation2 + $0x4] sm:$0xf] %vm378_vm6, %v376_v4  ;;  %v360_v6 = vmul.f32 %v357_v5, %v700_v23 }
 0x128   : > { %v367_v7 = vmul.f32 %v606_v47, %v360_v6 }
 0x12a   : > { %v374_v8 = vadd.f32 %v607_v50, %v367_v7 }
 0x12c   : > { %v377_v9 = vpack.c.bf16 %v374_v8, %v374_v8 }
 0x12d   : > { %v571_v10 = vld [vmem:[#allocation2] sm:$0xff] }
 0x12e   : > { %381 = vst.msk [vmem:[#allocation2 + $0x8] sm:$0xf] %vm378_vm6, %v377_v9  ;;  %567 = vmatmul.msk.bf16.vlgmr.msra.gmra.mxu0 %vm287_vm0, %v571_v10 }
 0x135   : > { %v384_v11 = vld [vmem:[#allocation2 + $0x8] sm:$0xf] }
 0x136   : > { %v398_v12 = vunpack.c.l.b16 %v384_v11 }
 0x138   : > { %v400_v13 = vpack.c.b16 %v398_v12, %v398_v12 }
 0x13a   : > { %568 = vmatmul.msk.bf16.vlgmr.msra.gmra.mxu1 %vm287_vm0, %v400_v13 }
 0x1ab   : > { %v429_v14 = vpop.f32.mrf.mxu0 }
 0x1ac   : > { %v430_v17 = vadd.f32 %v608_v15, %v429_v14 }
 0x1b3   : > { %v431_v16 = vpop.f32.mrf.mxu0 }
 0x1b4   : > { %v432_v18 = vadd.f32 %v608_v15, %v431_v16 }
 0x1b6   : > { %v577_v19 = vpack.c.bf16 %v432_v18, %v430_v17 }
 0x1b7   : > { %v434_v20 = vpop.f32.mrf.mxu1 }
 0x1b8   : > { %v435_v21 = vadd.f32 %v608_v15, %v434_v20  ;;  %578 = vst [vmem:[%s277_s15] sm:$0xff] %v577_v19  }
 0x1ba   : > { %v440_v22 = vpack.c.bf16 %v435_v21, %v435_v21 }
 0x1bc   : > { %443 = vst [vmem:[%s277_s15 + $0x8] sm:$0xf] %v440_v22 }
 0x1bf   : > { %v436_v23 = vpop.f32.mrf.mxu1 }
 0x1c0 PF: > { %s15_s20 = sadd.s32 1, %s639_s20   ;;  %s746_s18 = smov %s635_s19 }
 0x1c1   : > { %p12_p5 = scmp.ge.s32.totalorder %s15_s20, 4   ;;  %s747_s19 = smov %s749_s21 }
 0x1c3   :  { %14 = sbr.rel (!%p12_p5) target bundleno = 2 (0x2), region = 80 }

// kernel: _forward_core.32
= control target key start
LH: loop header
LB: loop body
LE: loop exit
PB: predicated region body
PF: predicated region fallthrough
CT: control target
= control target key end

     0   :  { %s825_s6 = smov 0   ;;  %s995_s0 = inlined_call_operand.vmem [shape: bf16[2,17,96], index: 0, kind: input, shape index: {}]   ;;  %s996_s1 = inlined_call_operand.vmem [shape: bf16[2,17,32], index: 1, kind: output, shape index: {}]  }
   0x1 LB: > { %s675_s7 = sadd.s32 4294967295, %s798_s6   ;;  %p679_p0 = scmp.ge.s32.totalorder %s798_s6, 1  ;;  %s798_s6 = sphi %s825_s6, %s11_s6  }
   0x2   : > { %p87_p1 = scmp.lt.s32.totalorder %s798_s6, 3 }
   0x4   : > { %p88_p2 = pnand %p679_p0, %p87_p1 }
   0x5   : > { %p107_p3 = scmp.lt.s32.totalorder (!%p88_p2), %s675_s7, 1  ;;  %s800_s12 = smov (!%p88_p2), 96  }
   0x6   : > { %91 = sbr.rel (%p88_p2) target bundleno = 1388 (0x56c), region = 24  ;;  %s801_s13 = smov (!%p88_p2), 88  }
   0x7   : > { %s802_s14 = smov (!%p88_p2), 120   ;;  %s803_s15 = smov (!%p88_p2), 64  }
   0x8   : > { %s804_s16 = smov (!%p88_p2), 80   ;;  %s805_s17 = smov (!%p88_p2), 72  }
   0x9   : > { %s807_s18 = smov (!%p88_p2), 104   ;;  %s808_s19 = smov (!%p88_p2), 112  }
   0xa   : > { %s809_s20 = smov (!%p88_p2), 56   ;;  %s810_s21 = smov (!%p88_p2), 48  }
   0xb   : > { %s998_s7 = smov (!%p107_p3, %s675_s7), 1  ;;  %vm141_vm0 = vcmask 64512   ;;  %vm172_vm1 = vcmask 138240   ;;  %vm179_vm2 = vcmask 131072   ;;  %vm220_vm3 = vcmask 1040384   ;;  %s811_s22 = smov 40  }
   0xc   : > { %s705_s8 = smul.u32 12, %s998_s7  ;;  %v806_v45 = vmov 0   ;;  %s812_s23 = smov 8   ;;  %vm600_vm4 = vcmask 130048   ;;  %vm604_vm5 = vcmask 195584   ;;  %vm611_vm6 = vcmask 257024  }
   0xd   : > { %v875_v46 = vsel %vm220_vm3, 65535, %v806_v45  ;;  %s813_s24 = smov 24   ;;  %s814_s25 = smov 16   ;;  %vm614_vm7 = vcmask 253952   ;;  %vm615_vm8 = vsmask.f32 256 }
   0xe   : > { %s111_s11 = scalar_lea.vmem %s995_s0, %s705_s8  ;;  %s116_s28 = scalar_lea.vmem %s996_s1, %s705_s8  ;;  %vm616_vm9 = vmand %vm614_vm7, %vm615_vm8 }
   0xf   : > { %v120_v0 = vld [vmem:[%s111_s11 + $0x8] sm:$0x1]  ;;  %v844_v3 = vld [vmem:[%s111_s11] sm:$0xff] }
  0x10   : > { %v134_v1 = vunpack.c.l.b16 %v120_v0  ;;  %v118_v4 = vld [vmem:[%s111_s11] sm:$0xff]   ;;  %v123_v14 = vunpack.c.l.bf16 %v120_v0 }
  0x11   : > { %v121_v5 = vunpack.c.l.bf16 %v118_v4  ;;  %v122_v6 = vunpack.c.h.bf16 %v118_v4 }
  0x12   : > { %v841_v2 = vpack.c.b16 %v134_v1, %v134_v1  ;;  %v126_v15 = vmul.f32 0.35351563, %v123_v14 }
  0x13   : > { %v124_v7 = vmul.f32 0.35351563, %v121_v5  ;;  %v125_v8 = vmul.f32 0.35351563, %v122_v6 }
  0x14   : > { %139 = vrot.lane.b32.xlu0 %v841_v2, %s800_s12  ;;  %252 = vrot.lane.b32.xlu2 %v841_v2, %s801_s13  ;;  %v857_v16 = vpack.c.bf16 %v126_v15, %v126_v15 }
  0x15   : > { %v849_v9 = vpack.c.bf16 %v125_v8, %v124_v7 }
  0x1c   : > { %137 = vrot.lane.b32.xlu0 %v844_v3, %s800_s12  ;;  %246 = vrot.lane.b32.xlu2 %v849_v9, %s802_s14 }
  0x24   : > { %250 = vrot.lane.b32.xlu0 %v844_v3, %s801_s13 }
  0x6e   : > { %v253_v17 = vpop.permute.xlu2 %252 }
  0x6f   : > { %v264_v18 = vsel %vm141_vm0, %v253_v17, 0 }
  0x70   : > { %272 = vmatpush.bf16.xpose.msra.mxu2 %v264_v18 }
  0x76   : > { %v247_v22 = vpop.permute.xlu2 %246 }
  0x86   : > { %v140_v10 = vpop.permute.xlu0 %139 }
  0x87   : > { %v152_v11 = vsel %vm141_vm0, %v140_v10, 0 }
  0x88   : > { %160 = vmatpush.bf16.xpose.msra.mxu0 %v152_v11 }
  0x8e   : > { %v138_v12 = vpop.permute.xlu0 %137 }
  0x8f   : > { %v149_v13 = vsel %vm141_vm0, %v138_v12, 0 }
  0x90   : > { %161 = vmatpush.bf16.xpose.msra.mxu0 %v149_v13 }
  0x96   : > { %v251_v19 = vpop.permute.xlu0 %250 }
  0x97   : > { %686 = vmatmul.msk.bf16.vlgmr.msra.gmra.mxu0 %vm141_vm0, %v849_v9  ;;  %v261_v20 = vsel %vm141_vm0, %v251_v19, 0 }
  0x98   : > { %273 = vmatpush.bf16.xpose.msra.mxu2 %v261_v20 }
  0x9f   : > { %690 = vmatmul.msk.bf16.vlgmr.msra.gmra.mxu2 %vm141_vm0, %v247_v22 }
  0xa7   : > { %687 = vmatmul.msk.bf16.gmra.mxu0 %vm141_vm0, %v857_v16 }
 0x114   : > { %v163_v21 = vpop.f32.mrf.mxu0 }
 0x115   : > { %v173_v23 = vsel %vm172_vm1, %v163_v21, -inf }
 0x116   : > { %174 = vmax.xlane.f32.xlu1 %v173_v23 }
 0x11c   : > { %v165_v24 = vpop.f32.mrf.mxu0 }
 0x11d   : > { %v176_v25 = vsel %vm172_vm1, %v165_v24, -inf }
 0x11e   : > { %177 = vmax.xlane.f32.xlu1 %v176_v25 }
 0x122   : > { %v885_v48 = vpop.f32.mrf.mxu2 }
 0x123   : > { %v284_v49 = vsel %vm172_vm1, %v885_v48, -inf }
 0x124   : > { %v168_v26 = vpop.f32.mrf.mxu0 }
 0x125   : > { %v180_v27 = vsel %vm179_vm2, %v168_v26, -inf }
 0x126   : > { %181 = vmax.xlane.f32.xlu2 %v180_v27 }
 0x12a   : > { %v277_v51 = vpop.f32.mrf.mxu2 }
 0x12b   : > { %v287_v52 = vsel %vm172_vm1, %v277_v51, -inf }
 0x12c   : > { %v170_v28 = vpop.f32.mrf.mxu0 }
 0x137   : > { %211 = vrot.lane.b32.xlu1 %v841_v2, %s803_s15 }
 0x13e   : > { %209 = vrot.lane.b32.xlu2 %v844_v3, %s803_s15 }
 0x189   : > { %v175_v29 = vpop.xlane.xlu1 %174 }
 0x18a   : > { %v183_v30 = vsub.f32 %v163_v21, %v175_v29 }
 0x18c   : > { %v186_v31 = vmul.f32 1.442695, %v183_v30 }
 0x18e   : > { %744 = vpow2.f32 %v186_v31 }
 0x191   : > { %v178_v32 = vpop.xlane.xlu1 %177 }
 0x192   : > { %v184_v33 = vsub.f32 %v165_v24, %v178_v32 }
 0x194   : > { %v745_v34 = vpop.eup %744  ;;  %v188_v35 = vmul.f32 1.442695, %v184_v33 }
 0x195   : > { %v192_v36 = vsel %vm172_vm1, %v745_v34, 0.0 }
 0x196   : > { %746 = vpow2.f32 %v188_v35  ;;  %193 = vadd.xlane.f32.xlu1 %v192_v36 }
 0x199   : > { %v182_v37 = vpop.xlane.xlu2 %181 }
 0x19a   : > { %v185_v38 = vsub.f32 %v168_v26, %v182_v37 }
 0x19c   : > { %v747_v39 = vpop.eup %746  ;;  %v190_v40 = vmul.f32 1.442695, %v185_v38 }
 0x19d   : > { %v195_v41 = vsel %vm172_vm1, %v747_v39, 0.0 }
 0x19e   : > { %748 = vpow2.f32 %v190_v40  ;;  %196 = vadd.xlane.f32.xlu0 %v195_v41 }
 0x1a1   : > { %v210_v50 = vpop.permute.xlu2 %209 }
 0x1a4   : > { %v749_v42 = vpop.eup %748 }
 0x1a5   : > { %v198_v43 = vsel %vm179_vm2, %v749_v42, 0.0 }
 0x1a6   : > { %199 = vadd.xlane.f32.xlu2 %v198_v43 }
 0x1a9   : > { %v212_v44 = vpop.permute.xlu1 %211 }
 0x1aa   : > { %v224_v47 = vand.u32 %v875_v46, %v212_v44 }
 0x1ac   : > { %232 = vmatpush.bf16.msra.mxu1 %v224_v47 }
 0x1af   : > { %357 = vrot.lane.b32.xlu1 %v841_v2, %s804_s16 }
 0x1b0   : > { %233 = vmatpush.bf16.msra.mxu1 %v210_v50 }
 0x1b2   : > { %355 = vrot.lane.b32.xlu0 %v844_v3, %s804_s16 }
 0x1b7   : > { %462 = vrot.lane.b32.xlu1 %v841_v2, %s805_s17 }
 0x1ba   : > { %456 = vrot.lane.b32.xlu0 %v849_v9, %s807_s18 }
 0x1be   : > { %458 = vrot.lane.b32.xlu2 %v857_v16, %s807_s18 }
 0x1bf   : > { %248 = vrot.lane.b32.xlu1 %v857_v16, %s802_s14 }
 0x1c7   : > { %460 = vrot.lane.b32.xlu1 %v844_v3, %s805_s17 }
 0x1cf   : > { %351 = vrot.lane.b32.xlu1 %v849_v9, %s808_s19 }
 0x1d7   : > { %353 = vrot.lane.b32.xlu1 %v857_v16, %s808_s19 }
 0x1e4   : > { %285 = vmax.xlane.f32.xlu0 %v284_v49 }
 0x201   : > { %288 = vmax.xlane.f32.xlu1 %v287_v52 }
 0x209   : > { %v194_v53 = vpop.xlane.xlu1 %193 }
 0x20a   : > { %750 = vrcp.f32 %v194_v53 }
 0x210   : > { %v751_v55 = vpop.eup %750 }
 0x211   : > { %v197_v54 = vpop.xlane.xlu0 %196  ;;  %v204_v57 = vmul.f32 %v751_v55, %v745_v34 }
 0x212   : > { %752 = vrcp.f32 %v197_v54 }
 0x218   : > { %v753_v56 = vpop.eup %752 }
 0x219   : > { %v205_v58 = vmul.f32 %v753_v56, %v747_v39  ;;  %v200_v59 = vpop.xlane.xlu2 %199 }
 0x21a   : > { %754 = vrcp.f32 %v200_v59 }
 0x21b   : > { %v207_v60 = vpack.c.bf16 %v205_v58, %v204_v57 }
 0x21d   : > { %688 = vmatmul.msk.bf16.vlgmr.msra.gmra.mxu1 %vm172_vm1, %v207_v60 }
 0x220   : > { %v755_v63 = vpop.eup %754 }
 0x221   : > { %v358_v61 = vpop.permute.xlu1 %357  ;;  %v206_v0 = vmul.f32 %v755_v63, %v749_v42  ;;  %v459_v13 = vpop.permute.xlu2 %458 }
 0x222   : > { %v369_v62 = vsel %vm141_vm0, %v358_v61, 0 }
 0x223   : > { %377 = vmatpush.bf16.xpose.msrb.mxu1 %v369_v62  ;;  %v208_v7 = vpack.c.bf16 %v206_v0, %v206_v0 }
 0x224   : > { %v356_v1 = vpop.permute.xlu0 %355 }
 0x225   : > { %v366_v4 = vsel %vm141_vm0, %v356_v1, 0 }
 0x229   : > { %v463_v5 = vpop.permute.xlu1 %462 }
 0x22a   : > { %v474_v6 = vsel %vm141_vm0, %v463_v5, 0 }
 0x22b   : > { %482 = vmatpush.bf16.xpose.msrb.mxu0 %v474_v6  ;;  %378 = vmatpush.bf16.xpose.msrb.mxu1 %v366_v4 }
 0x22c   : > { %v457_v11 = vpop.permute.xlu0 %456 }
 0x22d   : > { %689 = vmatmul.msk.bf16.gmra.mxu1 %vm172_vm1, %v208_v7 }
 0x231   : > { %v249_v8 = vpop.permute.xlu1 %248 }
 0x232   : > { %691 = vmatmul.msk.bf16.gmra.mxu2 %vm141_vm0, %v249_v8 }
 0x239   : > { %v461_v9 = vpop.permute.xlu1 %460 }
 0x23a   : > { %v471_v10 = vsel %vm141_vm0, %v461_v9, 0 }
 0x23b   : > { %483 = vmatpush.bf16.xpose.msrb.mxu0 %v471_v10 }
 0x241   : > { %v352_v12 = vpop.permute.xlu1 %351 }
 0x242   : > { %698 = vmatmul.msk.bf16.vlgmr.msrb.gmra.mxu0 %vm141_vm0, %v457_v11  ;;  %694 = vmatmul.msk.bf16.vlgmr.msrb.gmra.mxu1 %vm141_vm0, %v352_v12 }
 0x249   : > { %v354_v14 = vpop.permute.xlu1 %353 }
 0x252   : > { %699 = vmatmul.msk.bf16.gmra.mxu0 %vm141_vm0, %v459_v13  ;;  %695 = vmatmul.msk.bf16.gmra.mxu1 %vm141_vm0, %v354_v14 }
 0x257   : > { %v286_v24 = vpop.xlane.xlu0 %285 }
 0x258   : > { %v293_v26 = vsub.f32 %v885_v48, %v286_v24 }
 0x25a   : > { %v296_v29 = vmul.f32 1.442695, %v293_v26 }
 0x274   : > { %v289_v19 = vpop.xlane.xlu1 %288 }
 0x275   : > { %v294_v22 = vsub.f32 %v277_v51, %v289_v19 }
 0x277   : > { %v298_v23 = vmul.f32 1.442695, %v294_v22 }
 0x279   : > { %756 = vpow2.f32 %v298_v23 }
 0x27a   : > { %758 = vpow2.f32 %v296_v29 }
 0x27f   : > { %v910_v30 = vpop.eup %756 }
 0x280   : > { %v305_v32 = vsel %vm172_vm1, %v910_v30, 0.0  ;;  %v759_v35 = vpop.eup %758 }
 0x281   : > { %v302_v38 = vsel %vm172_vm1, %v759_v35, 0.0 }
 0x29a   : > { %v901_v15 = vpop.f32.mrf.mxu1 }
 0x2a2   : > { %v903_v16 = vpop.f32.mrf.mxu1 }
 0x2aa   : > { %v905_v17 = vpop.f32.mrf.mxu1 }
 0x2b2   : > { %v242_v18 = vpop.f32.mrf.mxu1 }
 0x2b5   : > { %v280_v20 = vpop.f32.mrf.mxu2 }
 0x2b6   : > { %v290_v21 = vsel %vm179_vm2, %v280_v20, -inf }
 0x2b7   : > { %291 = vmax.xlane.f32.xlu2 %v290_v21 }
 0x2bd   : > { %v282_v25 = vpop.f32.mrf.mxu2 }
 0x2bf   : > { %v485_v27 = vpop.f32.mrf.mxu0  ;;  %v915_v34 = vpop.f32.mrf.mxu1 }
 0x2c0   : > { %v494_v28 = vsel %vm172_vm1, %v485_v27, -inf  ;;  %v389_v36 = vsel %vm172_vm1, %v915_v34, -inf }
 0x2c1   : > { %495 = vmax.xlane.f32.xlu0 %v494_v28 }
 0x2c7   : > { %v487_v31 = vpop.f32.mrf.mxu0  ;;  %v921_v40 = vpop.f32.mrf.mxu1 }
 0x2c8   : > { %v497_v33 = vsel %vm172_vm1, %v487_v31, -inf  ;;  %v392_v41 = vsel %vm172_vm1, %v921_v40, -inf }
 0x2c9   : > { %306 = vadd.xlane.f32.xlu0 %v305_v32  ;;  %498 = vmax.xlane.f32.xlu1 %v497_v33 }
 0x2cf   : > { %v490_v37 = vpop.f32.mrf.mxu0  ;;  %v935_v58 = vpop.f32.mrf.mxu1 }
 0x2d0   : > { %v500_v39 = vsel %vm179_vm2, %v490_v37, -inf  ;;  %v395_v21 = vsel %vm179_vm2, %v935_v58, -inf }
 0x2d1   : > { %390 = vmax.xlane.f32.xlu0 %v389_v36  ;;  %303 = vadd.xlane.f32.xlu1 %v302_v38 }
 0x2d2   : > { %501 = vmax.xlane.f32.xlu2 %v500_v39 }
 0x2d7   : > { %v492_v42 = vpop.f32.mrf.mxu0  ;;  %v387_v0 = vpop.f32.mrf.mxu1 }
 0x2d9   : > { %393 = vmax.xlane.f32.xlu1 %v392_v41 }
 0x2ea   : > { %321 = vrot.lane.b32.xlu2 %v841_v2, %s809_s20 }
 0x2f2   : > { %319 = vrot.lane.b32.xlu1 %v844_v3, %s809_s20 }
 0x32a   : > { %v292_v43 = vpop.xlane.xlu2 %291 }
 0x32b   : > { %v295_v44 = vsub.f32 %v280_v20, %v292_v43 }
 0x32d   : > { %v300_v45 = vmul.f32 1.442695, %v295_v44 }
 0x32f   : > { %760 = vpow2.f32 %v300_v45 }
 0x334   : > { %v496_v47 = vpop.xlane.xlu0 %495 }
 0x335   : > { %v927_v48 = vpop.eup %760  ;;  %v503_v49 = vsub.f32 %v485_v27, %v496_v47 }
 0x336   : > { %v308_v50 = vsel %vm179_vm2, %v927_v48, 0.0 }
 0x337   : > { %v506_v51 = vmul.f32 1.442695, %v503_v49  ;;  %309 = vadd.xlane.f32.xlu0 %v308_v50 }
 0x339   : > { %762 = vpow2.f32 %v506_v51 }
 0x33c   : > { %v499_v52 = vpop.xlane.xlu1 %498  ;;  %v307_v7 = vpop.xlane.xlu0 %306 }
 0x33d   : > { %v504_v53 = vsub.f32 %v487_v31, %v499_v52 }
 0x33f   : > { %v931_v54 = vpop.eup %762  ;;  %v508_v55 = vmul.f32 1.442695, %v504_v53 }
 0x340   : > { %v512_v56 = vsel %vm172_vm1, %v931_v54, 0.0 }
 0x341   : > { %764 = vpow2.f32 %v508_v55  ;;  %513 = vadd.xlane.f32.xlu2 %v512_v56 }
 0x344   : > { %v304_v6 = vpop.xlane.xlu1 %303  ;;  %v391_v18 = vpop.xlane.xlu0 %390 }
 0x345   : > { %v502_v57 = vpop.xlane.xlu2 %501  ;;  %v398_v19 = vsub.f32 %v915_v34, %v391_v18 }
 0x346   : > { %v505_v59 = vsub.f32 %v490_v37, %v502_v57 }
 0x347   : > { %v937_v60 = vpop.eup %764 }
 0x348   : > { %v510_v61 = vmul.f32 1.442695, %v505_v59  ;;  %v515_v62 = vsel %vm172_vm1, %v937_v60, 0.0 }
 0x349   : > { %516 = vadd.xlane.f32.xlu1 %v515_v62 }
 0x34a   : > { %766 = vpow2.f32 %v510_v61 }
 0x34b   : > { %426 = vrot.lane.b32.xlu0 %v841_v2, %s810_s21  ;;  %768 = vrcp.f32 %v304_v6 }
 0x34c   : > { %770 = vrcp.f32 %v307_v7  ;;  %v394_v8 = vpop.xlane.xlu1 %393 }
 0x34d   : > { %v322_v63 = vpop.permute.xlu2 %321  ;;  %v399_v20 = vsub.f32 %v921_v40, %v394_v8 }
 0x34e   : > { %v331_v1 = vand.u32 %v322_v63, %v875_v46 }
 0x34f   : > { %v403_v22 = vmul.f32 1.442695, %v399_v20 }
 0x350   : > { %v944_v4 = vpop.eup %766  ;;  %339 = vmatpush.bf16.msra.mxu3 %v331_v1 }
 0x351   : > { %v518_v5 = vsel %vm179_vm2, %v944_v4, 0.0  ;;  %v769_v9 = vpop.eup %768 }
 0x352   : > { %519 = vadd.xlane.f32.xlu1 %v518_v5  ;;  %v771_v10 = vpop.eup %770  ;;  %v314_v11 = vmul.f32 %v769_v9, %v759_v35 }
 0x353   : > { %531 = vrot.lane.b32.xlu0 %v841_v2, %s811_s22  ;;  %v315_v13 = vmul.f32 %v771_v10, %v910_v30  ;;  %v401_v2 = vmul.f32 1.442695, %v398_v19 }
 0x355   : > { %v317_v14 = vpack.c.bf16 %v315_v13, %v314_v11  ;;  %772 = vpow2.f32 %v401_v2 }
 0x356   : > { %774 = vpow2.f32 %v403_v22 }
 0x359   : > { %529 = vrot.lane.b32.xlu2 %v844_v3, %s811_s22 }
 0x35b   : > { %v773_v23 = vpop.eup %772 }
 0x35c   : > { %v407_v24 = vsel %vm172_vm1, %v773_v23, 0.0  ;;  %v775_v25 = vpop.eup %774 }
 0x35d   : > { %v410_v26 = vsel %vm172_vm1, %v775_v25, 0.0 }
 0x364   : > { %v320_v12 = vpop.permute.xlu1 %319 }
 0x365   : > { %340 = vmatpush.bf16.msra.mxu3 %v320_v12 }
 0x368   : > { %692 = vmatmul.msk.bf16.vlgmr.msra.gmra.mxu3 %vm172_vm1, %v317_v14 }
 0x37d   : > { %396 = vmax.xlane.f32.xlu0 %v395_v21 }
 0x385   : > { %408 = vadd.xlane.f32.xlu0 %v407_v24 }
 0x38d   : > { %411 = vadd.xlane.f32.xlu0 %v410_v26 }
 0x3a1   : > { %424 = vrot.lane.b32.xlu0 %v844_v3, %s810_s21 }
 0x3aa   : > { %v310_v27 = vpop.xlane.xlu0 %309 }
 0x3ab   : > { %776 = vrcp.f32 %v310_v27 }
 0x3b1   : > { %v777_v28 = vpop.eup %776 }
 0x3b2   : > { %v316_v29 = vmul.f32 %v777_v28, %v927_v48 }
 0x3b4   : > { %v318_v30 = vpack.c.bf16 %v316_v29, %v316_v29  ;;  %v514_v34 = vpop.xlane.xlu2 %513 }
 0x3b6   : > { %693 = vmatmul.msk.bf16.gmra.mxu3 %vm172_vm1, %v318_v30 }
 0x3bc   : > { %v517_v31 = vpop.xlane.xlu1 %516  ;;  %v530_v39 = vpop.permute.xlu2 %529 }
 0x3bd   : > { %v427_v32 = vpop.permute.xlu0 %426  ;;  %778 = vrcp.f32 %v517_v31 }
 0x3be   : > { %v436_v33 = vand.u32 %v427_v32, %v875_v46  ;;  %780 = vrcp.f32 %v514_v34 }
 0x3c0   : > { %444 = vmatpush.bf16.msrb.mxu3 %v436_v33 }
 0x3c3   : > { %v779_v36 = vpop.eup %778 }
 0x3c4   : > { %v781_v37 = vpop.eup %780  ;;  %v525_v38 = vmul.f32 %v779_v36, %v937_v60 }
 0x3c5   : > { %v532_v35 = vpop.permute.xlu0 %531  ;;  %v524_v40 = vmul.f32 %v781_v37, %v931_v54  ;;  %v520_v41 = vpop.xlane.xlu1 %519 }
 0x3c6   : > { %v541_v3 = vand.u32 %v532_v35, %v875_v46  ;;  %782 = vrcp.f32 %v520_v41 }
 0x3c7   : > { %v527_v42 = vpack.c.bf16 %v525_v38, %v524_v40 }
 0x3c8   : > { %549 = vmatpush.bf16.msrb.mxu2 %v541_v3  ;;  %v617_v3 = vld [vmem:[%s116_s28 + $0x8] sm:$0x1] }
 0x3cc   : > { %550 = vmatpush.bf16.msrb.mxu2 %v530_v39  ;;  %v783_v43 = vpop.eup %782 }
 0x3cd   : > { %v526_v44 = vmul.f32 %v783_v43, %v944_v4 }
 0x3cf   : > { %700 = vmatmul.msk.bf16.vlgmr.msrb.gmra.mxu2 %vm172_vm1, %v527_v42  ;;  %v528_v45 = vpack.c.bf16 %v526_v44, %v526_v44 }
 0x3df   : > { %701 = vmatmul.msk.bf16.gmra.mxu2 %vm172_vm1, %v528_v45 }
 0x3eb   : > { %v342_v46 = vpop.f32.mrf.mxu3 }
 0x3f0   : > { %v397_v47 = vpop.xlane.xlu0 %396 }
 0x3f1   : > { %v400_v48 = vsub.f32 %v935_v58, %v397_v47 }
 0x3f3   : > { %v405_v49 = vmul.f32 1.442695, %v400_v48  ;;  %v344_v50 = vpop.f32.mrf.mxu3 }
 0x3f4   : > { %566 = vrot.lane.b32.xlu2 %v344_v50, %s812_s23 }
 0x3f5   : > { %784 = vpow2.f32 %v405_v49 }
 0x3f8   : > { %v409_v52 = vpop.xlane.xlu0 %408 }
 0x3fb   : > { %v785_v51 = vpop.eup %784 }
 0x3fc   : > { %v413_v53 = vsel %vm179_vm2, %v785_v51, 0.0 }
 0x3fd   : > { %414 = vadd.xlane.f32.xlu0 %v413_v53 }
 0x400   : > { %v412_v54 = vpop.xlane.xlu0 %411 }
 0x401   : > { %786 = vrcp.f32 %v412_v54 }
 0x402   : > { %788 = vrcp.f32 %v409_v52 }
 0x407   : > { %v787_v55 = vpop.eup %786 }
 0x408   : > { %v789_v56 = vpop.eup %788  ;;  %v420_v57 = vmul.f32 %v787_v55, %v775_v25 }
 0x409   : > { %v419_v59 = vmul.f32 %v789_v56, %v773_v23 }
 0x40b   : > { %v422_v58 = vpack.c.bf16 %v420_v57, %v419_v59 }
 0x413   : > { %v425_v60 = vpop.permute.xlu0 %424 }
 0x414   : > { %445 = vmatpush.bf16.msrb.mxu3 %v425_v60 }
 0x417   : > { %696 = vmatmul.msk.bf16.vlgmr.msrb.gmra.mxu3 %vm172_vm1, %v422_v58 }
 0x439   : > { %v347_v61 = vpop.f32.mrf.mxu3 }
 0x43a   : > { %v729_v62 = vpack.i.bf16 %v342_v46, %v347_v61 }
 0x43c   : > { %730 = vrot.lane.b32.xlu1 %v729_v62, %s812_s23 }
 0x441   : > { %v349_v63 = vpop.f32.mrf.mxu3 }
 0x44e   : > { %v567_v2 = vpop.permute.xlu2 %566 }
 0x44f   : > { %v598_v20 = vsel %vm141_vm0, %v903_v16, %v567_v2 }
 0x452   : > { %v552_v0 = vpop.f32.mrf.mxu2 }
 0x45a   : > { %v554_v1 = vpop.f32.mrf.mxu2 }
 0x45b   : > { %590 = vrot.lane.b32.xlu0 %v554_v1, %s813_s24 }
 0x462   : > { %v557_v4 = vpop.f32.mrf.mxu2 }
 0x463   : > { %v739_v5 = vpack.i.bf16 %v552_v0, %v557_v4 }
 0x46a   : > { %v559_v6 = vpop.f32.mrf.mxu2 }
 0x470   : > { %v415_v7 = vpop.xlane.xlu0 %414 }
 0x471   : > { %790 = vrcp.f32 %v415_v7 }
 0x477   : > { %v791_v8 = vpop.eup %790 }
 0x478   : > { %v421_v9 = vmul.f32 %v791_v8, %v785_v51 }
 0x47a   : > { %v423_v10 = vpack.c.bf16 %v421_v9, %v421_v9 }
 0x47c   : > { %697 = vmatmul.msk.bf16.gmra.mxu3 %vm172_vm1, %v423_v10 }
 0x49a   : > { %v447_v11 = vpop.f32.mrf.mxu3 }
 0x4a2   : > { %v449_v12 = vpop.f32.mrf.mxu3 }
 0x4a3   : > { %578 = vrot.lane.b32.xlu1 %v449_v12, %s814_s25 }
 0x4ae   : > { %v731_v19 = vpop.permute.xlu1 %730 }
 0x4af   : > { %v733_v27 = vunpack.i.h.bf16 %v731_v19  ;;  %v732_v28 = vunpack.i.l.bf16 %v731_v19 }
 0x4b1   : > { %v597_v31 = vsel %vm141_vm0, %v901_v15, %v733_v27  ;;  %v599_v32 = vsel %vm141_vm0, %v905_v17, %v732_v28 }
 0x4cd   : > { %v591_v22 = vpop.permute.xlu0 %590 }
 0x4ff   : > { %v452_v13 = vpop.f32.mrf.mxu3 }
 0x500   : > { %v734_v14 = vpack.i.bf16 %v447_v11, %v452_v13 }
 0x502   : > { %735 = vrot.lane.b32.xlu2 %v734_v14, %s814_s25 }
 0x507   : > { %v454_v18 = vpop.f32.mrf.mxu3 }
 0x50a   : > { %740 = vrot.lane.b32.xlu2 %v739_v5, %s813_s24 }
 0x515   : > { %v579_v21 = vpop.permute.xlu1 %578 }
 0x516   : > { %v602_v23 = vsel %vm600_vm4, %v598_v20, %v579_v21 }
 0x517   : > { %v606_v24 = vsel %vm604_vm5, %v602_v23, %v591_v22 }
 0x518   : > { %v609_v25 = vpack.c.bf16 %v606_v24, %v606_v24 }
 0x51a   : > { %613 = vst.msk [vmem:[%s116_s28 + $0x4] sm:$0xf] %vm611_vm6, %v609_v25 }
 0x55c   : > { %v736_v26 = vpop.permute.xlu2 %735 }
 0x55d   : > { %v738_v29 = vunpack.i.h.bf16 %v736_v26  ;;  %v737_v16 = vunpack.i.l.bf16 %v736_v26 }
 0x55f   : > { %v601_v35 = vsel %vm600_vm4, %v597_v31, %v738_v29  ;;  %v603_v36 = vsel %vm600_vm4, %v599_v32, %v737_v16 }
 0x564   : > { %v741_v30 = vpop.permute.xlu2 %740 }
 0x565   : > { %v743_v33 = vunpack.i.h.bf16 %v741_v30  ;;  %v742_v34 = vunpack.i.l.bf16 %v741_v30 }
 0x567   : > { %v605_v37 = vsel %vm604_vm5, %v601_v35, %v743_v33  ;;  %v607_v38 = vsel %vm604_vm5, %v603_v36, %v742_v34 }
 0x568   : > { %v608_v39 = vpack.c.bf16 %v605_v37, %v605_v37  ;;  %v610_v40 = vpack.c.bf16 %v607_v38, %v607_v38 }
 0x56a   : > { %612 = vst.msk [vmem:[%s116_s28] sm:$0xf] %vm611_vm6, %v608_v39  ;;  %v618_v15 = vsel %vm616_vm9, %v610_v40, %v617_v3 }
 0x56b   : > { %619 = vst [vmem:[%s116_s28 + $0x8] sm:$0x1] %v618_v15 }
 0x56c PF: > { %s11_s6 = sadd.s32 1, %s798_s6  }
 0x56d   : > { %p8_p4 = scmp.ge.s32.totalorder %s11_s6, 4  }
 0x56f   :  { %10 = sbr.rel (!%p8_p4) target bundleno = 1 (0x1), region = 54 }

// kernel: _forward_core.33
= control target key start
LH: loop header
LB: loop body
LE: loop exit
PB: predicated region body
PF: predicated region fallthrough
CT: control target
= control target key end

     0   :  { %s573_s15 = smov 0   ;;  %s575_s16 = smov 0   ;;  %s618_s0 = inlined_call_operand.vmem [shape: bf16[48,32], index: 0, kind: input, shape index: {}]   ;;  %s619_s1 = inlined_call_operand.vmem [shape: bf16[32,128], index: 1, kind: input, shape index: {}]   ;;  %s620_s2 = inlined_call_operand.vmem [shape: f32[1,128], index: 2, kind: input, shape index: {}]   ;;  %s621_s3 = inlined_call_operand.vmem [shape: f32[48,128], index: 3, kind: input, shape index: {}]   ;;  %s622_s4 = inlined_call_operand.vmem [shape: f32[48,128], index: 4, kind: output, shape index: {}]  }
   0x1   :  { %s577_s17 = smov 0  }
   0x2 LB: > { %s26_s18 = sadd.s32 1, %s542_s16  ;;  %p474_p0 = scmp.ge.s32.totalorder %s546_s17, 1  ;;  %s546_s17 = sphi %s577_s17, %s14_s17   ;;  %s542_s16 = sphi %s575_s16, %s624_s16   ;;  %s538_s15 = sphi %s573_s15, %s623_s15  }
   0x3   : > { %p28_p1 = scmp.ge.s32.totalorder %s26_s18, 2  ;;  %p210_p2 = scmp.lt.s32.totalorder %s546_s17, 3 }
   0x5   : > { %s626_s18 = smov (%p28_p1, %s26_s18), 0  ;;  %p211_p3 = pnand %p474_p0, %p210_p2 }
   0x6   : > { %s254_s21 = smul.u32 (!%p211_p3), 3, %s538_s15 }
   0x7   : > { %214 = sbr.rel (%p211_p3) target bundleno = 159 (0x9f), region = 36 }
   0x8   : > { %p255_p4 = scmp.lt.s32.totalorder (!%p211_p3), %s254_s21, 5 }
   0xc   : > { %v496_v0 = vld [vmem:[%s619_s1 + $0x8] sm:$0xff]  ;;  %v495_v1 = vld [vmem:[%s619_s1] sm:$0xff]  ;;  %s628_s21 = smov (!%p255_p4, %s254_s21), 5  ;;  %vm317_vm0 = vcmask 261120  }
   0xd   : > { %330 = vmatpush.bf16.msra.mxu0 %v496_v0  ;;  %497 = vmatpush.bf16.msra.mxu1 %v496_v0  ;;  %s475_s24 = sshll.u32 %s628_s21, 2  ;;  %s476_s28 = sshll.u32 %s628_s21, 3  ;;  %v523_v6 = vld [vmem:[%s620_s2] ss:$0 sm:$0xff] }
   0xe   : > { %s258_s27 = scalar_lea.vmem %s618_s0, %s475_s24  ;;  %s274_s5 = scalar_lea.vmem %s621_s3, %s476_s28 }
   0xf   : > { %v494_v2 = vld [vmem:[%s258_s27] sm:$0xff]  ;;  %v288_v3 = vld [vmem:[%s258_s27 + $0x8] sm:$0xf]  ;;  %s283_s10 = scalar_lea.vmem %s622_s4, %s476_s28  ;;  %v344_v15 = vld [vmem:[%s274_s5 + $0x10] sm:$0xff] }
  0x10   : > { %v302_v4 = vunpack.c.l.b16 %v288_v3  ;;  %v342_v8 = vld [vmem:[%s274_s5] sm:$0xff]  ;;  %v343_v14 = vld [vmem:[%s274_s5 + $0x8] sm:$0xff] }
  0x11   : > { %331 = vmatpush.bf16.msra.mxu0 %v495_v1  ;;  %498 = vmatpush.bf16.msra.mxu1 %v495_v1 }
  0x12   : > { %v304_v5 = vpack.c.b16 %v302_v4, %v302_v4 }
  0x14   : > { %490 = vmatmul.msk.bf16.vlgmr.msra.gmra.mxu0 %vm317_vm0, %v494_v2  ;;  %491 = vmatmul.msk.bf16.vlgmr.msra.gmra.mxu1 %vm317_vm0, %v304_v5 }
  0x91   : > { %v333_v7 = vpop.f32.mrf.mxu0  ;;  %v338_v11 = vpop.f32.mrf.mxu1 }
  0x92   : > { %v334_v9 = vadd.f32 %v523_v6, %v333_v7  ;;  %v339_v12 = vadd.f32 %v523_v6, %v338_v11 }
  0x94   : > { %v345_v10 = vadd.f32 %v342_v8, %v334_v9  ;;  %v347_v19 = vadd.f32 %v344_v15, %v339_v12 }
  0x96   : > { %348 = vst [vmem:[%s283_s10] sm:$0xff] %v345_v10 }
  0x97   : > { %350 = vst [vmem:[%s283_s10 + $0x10] sm:$0xff] %v347_v19 }
  0x99   : > { %v335_v13 = vpop.f32.mrf.mxu0  ;;  %v340_v18 = vpop.f32.mrf.mxu1 }
  0x9a   : > { %v336_v16 = vadd.f32 %v523_v6, %v335_v13 }
  0x9c   : > { %v346_v17 = vadd.f32 %v343_v14, %v336_v16 }
  0x9e   : > { %349 = vst [vmem:[%s283_s10 + $0x8] sm:$0xff] %v346_v17 }
  0x9f PF: > { %s14_s17 = sadd.s32 1, %s546_s17   ;;  %s623_s15 = smov %s542_s16 }
  0xa0   : > { %p11_p5 = scmp.ge.s32.totalorder %s14_s17, 4   ;;  %s624_s16 = smov %s626_s18 }
  0xa2   :  { %13 = sbr.rel (!%p11_p5) target bundleno = 2 (0x2), region = 75 }

// kernel: _forward_core.34
= control target key start
LH: loop header
LB: loop body
LE: loop exit
PB: predicated region body
PF: predicated region fallthrough
CT: control target
= control target key end

     0   :  { %s804_s18 = smov 0   ;;  %s806_s19 = smov 0   ;;  %s906_s0 = inlined_call_operand.vmem [shape: f32[48,32], index: 0, kind: input, shape index: {}]   ;;  %s907_s1 = inlined_call_operand.vmem [shape: f32[1,32], index: 1, kind: input, shape index: {}]   ;;  %s908_s2 = inlined_call_operand.vmem [shape: f32[1,32], index: 2, kind: input, shape index: {}]   ;;  %s909_s3 = inlined_call_operand.vmem [shape: bf16[32,128], index: 3, kind: input, shape index: {}]   ;;  %s910_s4 = inlined_call_operand.vmem [shape: f32[1,128], index: 4, kind: input, shape index: {}]   ;;  %s911_s5 = inlined_call_operand.vmem [shape: bf16[48,128], index: 5, kind: output, shape index: {}]  }
   0x1   :  { %s808_s20 = smov 0  }
   0x2 LB: > { %s27_s21 = sadd.s32 1, %s767_s19  ;;  %p672_p0 = scmp.ge.s32.totalorder %s771_s20, 1  ;;  %s771_s20 = sphi %s808_s20, %s15_s20   ;;  %s767_s19 = sphi %s806_s19, %s913_s19   ;;  %s763_s18 = sphi %s804_s18, %s912_s18  }
   0x3   : > { %p29_p1 = scmp.ge.s32.totalorder %s27_s21, 2  ;;  %p219_p2 = scmp.lt.s32.totalorder %s771_s20, 3 }
   0x5   : > { %s915_s21 = smov (%p29_p1, %s27_s21), 0  ;;  %p220_p3 = pnand %p672_p0, %p219_p2 }
   0x6   : > { %s257_s22 = smul.u32 (!%p220_p3), 3, %s763_s18 }
   0x7   : > { %223 = sbr.rel (%p220_p3) target bundleno = 499 (0x1f3), region = 40 }
   0x8   : > { %p258_p4 = scmp.lt.s32.totalorder (!%p220_p3), %s257_s22, 5 }
   0xc   : > { %s917_s22 = smov (!%p258_p4, %s257_s22), 5  ;;  %vm287_vm0 = vcmask 261120   ;;  %v773_v6 = vmov 32.0   ;;  %v693_v31 = vld [vmem:[%s909_s3 + $0x8] sm:$0xff]  ;;  %v692_v36 = vld [vmem:[%s909_s3] sm:$0xff]  ;;  %vm378_vm6 = vcmask 257024  }
   0xd   : > { %s673_s23 = sshll.u32 %s917_s22, 3  ;;  %729 = vrcp.f32 %v773_v6  ;;  %426 = vmatpush.bf16.msra.mxu0 %v693_v31  ;;  %699 = vmatpush.bf16.msra.mxu1 %v693_v31  ;;  %v726_v47 = vld [vmem:[%s907_s1] ss:$0 sm:$0xff]  ;;  %s674_s12 = sshll.u32 %s917_s22, 2 }
   0xe   : > { %s261_s26 = scalar_lea.vmem %s906_s0, %s673_s23  ;;  %v727_v50 = vld [vmem:[%s908_s2] ss:$0 sm:$0xff]  ;;  %s277_s15 = scalar_lea.vmem %s911_s5, %s674_s12 }
   0xf   : > { %v284_v0 = vld [vmem:[%s261_s26] sm:$0xff]  ;;  %v286_v1 = vld [vmem:[%s261_s26 + $0x10] sm:$0xff]  ;;  %v285_v4 = vld [vmem:[%s261_s26 + $0x8] sm:$0xff] }
  0x10   : > { %v288_v2 = vsel %vm287_vm0, %v284_v0, 0.0  ;;  %v294_v3 = vsel %vm287_vm0, %v286_v1, 0.0  ;;  %v291_v5 = vsel %vm287_vm0, %v285_v4, 0.0 }
  0x11   : > { %289 = vadd.xlane.f32.xlu0 %v288_v2  ;;  %295 = vadd.xlane.f32.xlu1 %v294_v3 }
  0x12   : > { %427 = vmatpush.bf16.msra.mxu0 %v692_v36  ;;  %700 = vmatpush.bf16.msra.mxu1 %v692_v36 }
  0x13   : > { %v730_v7 = vpop.eup %729 }
  0x14   : > { %v298_v8 = vmul.f32 32.0, %v730_v7  ;;  %vm302_vm1 = vweird.f32 %v730_v7 }
  0x16   : > { %v299_v9 = vsub.f32 1.0, %v298_v8 }
  0x18   : > { %v300_v10 = vmul.f32 %v730_v7, %v299_v9 }
  0x19   : > { %292 = vadd.xlane.f32.xlu0 %v291_v5 }
  0x1a   : > { %v301_v11 = vadd.f32 %v730_v7, %v300_v10 }
  0x1c   : > { %v303_v12 = vsel %vm302_vm1, %v730_v7, %v301_v11 }
  0x84   : > { %v290_v13 = vpop.xlane.xlu0 %289  ;;  %v296_v17 = vpop.xlane.xlu1 %295 }
  0x85   : > { %v304_v14 = vmul.f32 %v303_v12, %v290_v13  ;;  %v306_v21 = vmul.f32 %v303_v12, %v296_v17 }
  0x87   : > { %v307_v15 = vsub.f32 %v284_v0, %v304_v14  ;;  %v832_v23 = vsub.f32 %v286_v1, %v306_v21  ;;  %v728_v14 = vld [vmem:[%s910_s4] ss:$0 sm:$0xff] }
  0x89   : > { %v310_v16 = vmul.f32 %v307_v15, %v307_v15  ;;  %v312_v26 = vmul.f32 %v832_v23, %v832_v23 }
  0x8b   : > { %v313_v18 = vsel %vm287_vm0, %v310_v16, 0.0  ;;  %v319_v27 = vsel %vm287_vm0, %v312_v26, 0.0 }
  0x8c   : > { %314 = vadd.xlane.f32.xlu1 %v313_v18  ;;  %v293_v19 = vpop.xlane.xlu0 %292 }
  0x8d   : > { %v305_v20 = vmul.f32 %v303_v12, %v293_v19 }
  0x8f   : > { %v308_v22 = vsub.f32 %v285_v4, %v305_v20 }
  0x91   : > { %v311_v24 = vmul.f32 %v308_v22, %v308_v22 }
  0x93   : > { %v316_v25 = vsel %vm287_vm0, %v311_v24, 0.0 }
  0x94   : > { %317 = vadd.xlane.f32.xlu2 %v316_v25 }
  0x9c   : > { %320 = vadd.xlane.f32.xlu2 %v319_v27 }
  0xff   : > { %v315_v28 = vpop.xlane.xlu1 %314 }
 0x100   : > { %v322_v29 = vmul.f32 %v315_v28, %v303_v12 }
 0x102   : > { %v325_v30 = vadd.f32 1e-05, %v322_v29 }
 0x104   : > { %731 = vrsqrt.f32 %v325_v30  ;;  %vm334_vm3 = vweird.f32 %v325_v30 }
 0x107   : > { %v318_v32 = vpop.xlane.xlu2 %317 }
 0x108   : > { %v323_v33 = vmul.f32 %v318_v32, %v303_v12 }
 0x10a   : > { %v732_v34 = vpop.eup %731  ;;  %v326_v35 = vadd.f32 1e-05, %v323_v33 }
 0x10b   : > { %v329_v37 = vmul.f32 %v732_v34, %v325_v30  ;;  %vm335_vm2 = vweird.f32 %v732_v34 }
 0x10c   : > { %733 = vrsqrt.f32 %v326_v35  ;;  %vm336_vm4 = vmor %vm334_vm3, %vm335_vm2  ;;  %vm344_vm7 = vweird.f32 %v326_v35 }
 0x10d   : > { %v330_v38 = vmul.f32 %v732_v34, %v329_v37 }
 0x10f   : > { %v331_v39 = vmul.f32 0.5, %v330_v38  ;;  %v321_v40 = vpop.xlane.xlu2 %320 }
 0x110   : > { %v324_v41 = vmul.f32 %v321_v40, %v303_v12 }
 0x111   : > { %v332_v42 = vsub.f32 1.5, %v331_v39 }
 0x112   : > { %v734_v43 = vpop.eup %733  ;;  %v327_v44 = vadd.f32 1e-05, %v324_v41 }
 0x113   : > { %v333_v45 = vmul.f32 %v732_v34, %v332_v42  ;;  %v339_v46 = vmul.f32 %v734_v43, %v326_v35  ;;  %vm345_vm5 = vweird.f32 %v734_v43 }
 0x114   : > { %735 = vrsqrt.f32 %v327_v44  ;;  %vm346_vm8 = vmor %vm344_vm7, %vm345_vm5  ;;  %vm354_vm10 = vweird.f32 %v327_v44 }
 0x115   : > { %v337_v48 = vsel %vm336_vm4, %v732_v34, %v333_v45  ;;  %v340_v49 = vmul.f32 %v734_v43, %v339_v46 }
 0x116   : > { %v358_v51 = vmul.f32 %v337_v48, %v307_v15 }
 0x117   : > { %v341_v52 = vmul.f32 0.5, %v340_v49 }
 0x118   : > { %v365_v53 = vmul.f32 %v726_v47, %v358_v51 }
 0x119   : > { %v342_v54 = vsub.f32 1.5, %v341_v52 }
 0x11a   : > { %v736_v55 = vpop.eup %735  ;;  %v372_v56 = vadd.f32 %v727_v50, %v365_v53 }
 0x11b   : > { %v343_v57 = vmul.f32 %v734_v43, %v342_v54  ;;  %v349_v58 = vmul.f32 %v736_v55, %v327_v44  ;;  %vm355_vm9 = vweird.f32 %v736_v55 }
 0x11c   : > { %v375_v59 = vpack.c.bf16 %v372_v56, %v372_v56  ;;  %vm356_vm11 = vmor %vm354_vm10, %vm355_vm9 }
 0x11d   : > { %v347_v60 = vsel %vm346_vm8, %v734_v43, %v343_v57  ;;  %v350_v61 = vmul.f32 %v736_v55, %v349_v58 }
 0x11e   : > { %379 = vst.msk [vmem:[#allocation2] sm:$0xf] %vm378_vm6, %v375_v59  ;;  %v359_v62 = vmul.f32 %v347_v60, %v308_v22 }
 0x11f   : > { %v351_v63 = vmul.f32 0.5, %v350_v61 }
 0x120   : > { %v366_v0 = vmul.f32 %v726_v47, %v359_v62 }
 0x121   : > { %v352_v1 = vsub.f32 1.5, %v351_v63 }
 0x122   : > { %v373_v2 = vadd.f32 %v727_v50, %v366_v0 }
 0x123   : > { %v353_v3 = vmul.f32 %v736_v55, %v352_v1 }
 0x124   : > { %v376_v4 = vpack.c.bf16 %v373_v2, %v373_v2 }
 0x125   : > { %v357_v5 = vsel %vm356_vm11, %v736_v55, %v353_v3 }
 0x126   : > { %380 = vst.msk [vmem:[#allocation2 + $0x4] sm:$0xf] %vm378_vm6, %v376_v4  ;;  %v360_v6 = vmul.f32 %v357_v5, %v832_v23 }
 0x128   : > { %v367_v7 = vmul.f32 %v726_v47, %v360_v6 }
 0x12a   : > { %v374_v8 = vadd.f32 %v727_v50, %v367_v7 }
 0x12c   : > { %v377_v9 = vpack.c.bf16 %v374_v8, %v374_v8 }
 0x12d   : > { %v691_v10 = vld [vmem:[#allocation2] sm:$0xff] }
 0x12e   : > { %381 = vst.msk [vmem:[#allocation2 + $0x8] sm:$0xf] %vm378_vm6, %v377_v9  ;;  %687 = vmatmul.msk.bf16.vlgmr.msra.gmra.mxu0 %vm287_vm0, %v691_v10 }
 0x135   : > { %v384_v11 = vld [vmem:[#allocation2 + $0x8] sm:$0xf] }
 0x136   : > { %v398_v12 = vunpack.c.l.b16 %v384_v11 }
 0x138   : > { %v400_v13 = vpack.c.b16 %v398_v12, %v398_v12 }
 0x13a   : > { %688 = vmatmul.msk.bf16.vlgmr.msra.gmra.mxu1 %vm287_vm0, %v400_v13 }
 0x1ab   : > { %v429_v15 = vpop.f32.mrf.mxu0 }
 0x1ac   : > { %v859_v16 = vadd.f32 %v728_v14, %v429_v15 }
 0x1ae   : > { %v862_v17 = vmul.f32 0.70710677, %v859_v16 }
 0x1b0   : > { %v441_v18 = vand.u32 2147483647, %v862_v17  ;;  %vm540_vm8 = vcmp.ge.f32.partialorder %v862_v17, 0.0 }
 0x1b2   : > { %v444_v19 = vmul.f32 0.3275911, %v441_v18  ;;  %v522_v42 = vsub.f32 0.0, %v441_v18 }
 0x1b3   : > { %v431_v20 = vpop.f32.mrf.mxu0 }
 0x1b4   : > { %v447_v21 = vadd.f32 1.0, %v444_v19  ;;  %v865_v22 = vadd.f32 %v728_v14, %v431_v20  ;;  %v525_v48 = vmul.f32 %v522_v42, %v441_v18 }
 0x1b6   : > { %737 = vrcp.f32 %v447_v21  ;;  %v868_v24 = vmul.f32 0.70710677, %v865_v22  ;;  %v461_v36 = vand.u32 2147483648, %v447_v21  ;;  %v459_v39 = vand.u32 2147483647, %v447_v21 }
 0x1b7   : > { %v434_v23 = vpop.f32.mrf.mxu1  ;;  %vm455_vm13 = vweird.f32 %v447_v21  ;;  %v528_v57 = vmul.f32 1.442695, %v525_v48 }
 0x1b8   : > { %v870_v25 = vadd.f32 %v728_v14, %v434_v23  ;;  %v873_v26 = vand.u32 2147483647, %v868_v24  ;;  %v462_v41 = vor.u32 1.1754944e-38, %v461_v36  ;;  %vm460_vm15 = vcmp.eq.f32.partialorder %v459_v39, 8.507059e+37 }
 0x1b9   : > { %vm541_vm9 = vcmp.ge.f32.partialorder %v868_v24, 0.0 }
 0x1ba   : > { %v876_v27 = vmul.f32 0.70710677, %v870_v25  ;;  %v445_v28 = vmul.f32 0.3275911, %v873_v26  ;;  %v523_v4 = vsub.f32 0.0, %v873_v26  ;;  %v551_v24 = vmul.f32 0.5, %v870_v25 }
 0x1bc   : > { %v880_v29 = vand.u32 2147483647, %v876_v27  ;;  %v738_v30 = vpop.eup %737  ;;  %v448_v32 = vadd.f32 1.0, %v445_v28  ;;  %v526_v12 = vmul.f32 %v523_v4, %v873_v26  ;;  %vm542_vm10 = vcmp.ge.f32.partialorder %v876_v27, 0.0 }
 0x1bd   : > { %v451_v31 = vmul.f32 %v738_v30, %v447_v21  ;;  %vm456_vm12 = vweird.f32 %v738_v30 }
 0x1be   : > { %v446_v33 = vmul.f32 0.3275911, %v880_v29  ;;  %739 = vrcp.f32 %v448_v32  ;;  %vm457_vm14 = vmor %vm455_vm13, %vm456_vm12  ;;  %v474_v52 = vand.u32 2147483647, %v448_v32  ;;  %v476_v53 = vand.u32 2147483648, %v448_v32 }
 0x1bf   : > { %v436_v34 = vpop.f32.mrf.mxu1  ;;  %v452_v35 = vsub.f32 1.0, %v451_v31  ;;  %vm470_vm1 = vweird.f32 %v448_v32  ;;  %v524_v14 = vsub.f32 0.0, %v880_v29  ;;  %v530_v28 = vmul.f32 1.442695, %v526_v12 }
 0x1c0   : > { %v449_v37 = vadd.f32 1.0, %v446_v33  ;;  %vm475_vm3 = vcmp.eq.f32.partialorder %v474_v52, 8.507059e+37  ;;  %v477_v61 = vor.u32 1.1754944e-38, %v476_v53 }
 0x1c1   : > { %v453_v38 = vmul.f32 %v738_v30, %v452_v35 }
 0x1c2   : > { %741 = vrcp.f32 %v449_v37  ;;  %v491_v62 = vand.u32 2147483648, %v449_v37  ;;  %v489_v1 = vand.u32 2147483647, %v449_v37  ;;  %vm485_vm5 = vweird.f32 %v449_v37 }
 0x1c3   : > { %v454_v40 = vadd.f32 %v738_v30, %v453_v38  ;;  %743 = vpow2.f32 %v528_v57  ;;  %v550_v57 = vmul.f32 0.5, %v865_v22 }
 0x1c4   : > { %v740_v43 = vpop.eup %739  ;;  %v492_v8 = vor.u32 1.1754944e-38, %v491_v62  ;;  %vm490_vm7 = vcmp.eq.f32.partialorder %v489_v1, 8.507059e+37  ;;  %745 = vpow2.f32 %v530_v28 }
 0x1c5   : > { %v458_v44 = vsel %vm457_vm14, %v738_v30, %v454_v40  ;;  %v466_v46 = vmul.f32 %v740_v43, %v448_v32  ;;  %vm471_vm0 = vweird.f32 %v740_v43  ;;  %v527_v30 = vmul.f32 %v524_v14, %v880_v29 }
 0x1c6   : > { %v463_v45 = vsel %vm460_vm15, %v462_v41, %v458_v44  ;;  %vm472_vm2 = vmor %vm470_vm1, %vm471_vm0 }
 0x1c7   : > { %v495_v47 = vmul.f32 1.0614054, %v463_v45  ;;  %v467_v49 = vsub.f32 1.0, %v466_v46  ;;  %v532_v26 = vmul.f32 1.442695, %v527_v30 }
 0x1c8   : > { %v742_v50 = vpop.eup %741 }
 0x1c9   : > { %v498_v51 = vadd.f32 -1.4531521, %v495_v47  ;;  %v468_v54 = vmul.f32 %v740_v43, %v467_v49  ;;  %v481_v55 = vmul.f32 %v742_v50, %v449_v37  ;;  %vm486_vm4 = vweird.f32 %v742_v50  ;;  %v744_v31 = vpop.eup %743 }
 0x1ca   : > { %vm487_vm6 = vmor %vm485_vm5, %vm486_vm4  ;;  %747 = vpow2.f32 %v532_v26 }
 0x1cb   : > { %v501_v56 = vmul.f32 %v498_v51, %v463_v45  ;;  %v469_v58 = vadd.f32 %v740_v43, %v468_v54  ;;  %v482_v59 = vsub.f32 1.0, %v481_v55 }
 0x1cd   : > { %v504_v60 = vadd.f32 1.4214138, %v501_v56  ;;  %v473_v63 = vsel %vm472_vm2, %v740_v43, %v469_v58  ;;  %v483_v0 = vmul.f32 %v742_v50, %v482_v59  ;;  %v549_v56 = vmul.f32 0.5, %v859_v16 }
 0x1ce   : > { %v478_v3 = vsel %vm475_vm3, %v477_v61, %v473_v63 }
 0x1cf   : > { %v507_v2 = vmul.f32 %v504_v60, %v463_v45  ;;  %v496_v5 = vmul.f32 1.0614054, %v478_v3  ;;  %v484_v6 = vadd.f32 %v742_v50, %v483_v0 }
 0x1d1   : > { %v510_v7 = vadd.f32 -0.28449672, %v507_v2  ;;  %v499_v9 = vadd.f32 -1.4531521, %v496_v5  ;;  %v488_v10 = vsel %vm487_vm6, %v742_v50, %v484_v6 }
 0x1d2   : > { %v493_v13 = vsel %vm490_vm7, %v492_v8, %v488_v10 }
 0x1d3   : > { %v513_v11 = vmul.f32 %v510_v7, %v463_v45  ;;  %v502_v15 = vmul.f32 %v499_v9, %v478_v3  ;;  %v497_v18 = vmul.f32 1.0614054, %v493_v13 }
 0x1d5   : > { %v516_v19 = vadd.f32 0.2548296, %v513_v11  ;;  %v505_v20 = vadd.f32 1.4214138, %v502_v15  ;;  %v500_v21 = vadd.f32 -1.4531521, %v497_v18 }
 0x1d7   : > { %v519_v23 = vmul.f32 %v516_v19, %v463_v45  ;;  %v508_v32 = vmul.f32 %v505_v20, %v478_v3  ;;  %v503_v33 = vmul.f32 %v500_v21, %v493_v13  ;;  %v746_v45 = vpop.eup %745 }
 0x1d8   : > { %v748_v50 = vpop.eup %747 }
 0x1d9   : > { %v534_v34 = vmul.f32 %v744_v31, %v519_v23  ;;  %v511_v35 = vadd.f32 -0.28449672, %v508_v32  ;;  %v506_v36 = vadd.f32 1.4214138, %v503_v33 }
 0x1db   : > { %v537_v37 = vsub.f32 1.0, %v534_v34  ;;  %v514_v38 = vmul.f32 %v511_v35, %v478_v3  ;;  %v509_v39 = vmul.f32 %v506_v36, %v493_v13 }
 0x1dd   : > { %v517_v40 = vadd.f32 0.2548296, %v514_v38  ;;  %v512_v41 = vadd.f32 -0.28449672, %v509_v39  ;;  %v543_v42 = vsub.f32 0.0, %v537_v37 }
 0x1df   : > { %v520_v43 = vmul.f32 %v517_v40, %v478_v3  ;;  %v515_v44 = vmul.f32 %v512_v41, %v493_v13  ;;  %v546_v47 = vsel %vm540_vm8, %v537_v37, %v543_v42 }
 0x1e0   : > { %v552_v53 = vadd.f32 1.0, %v546_v47 }
 0x1e1   : > { %v535_v29 = vmul.f32 %v746_v45, %v520_v43  ;;  %v518_v46 = vadd.f32 0.2548296, %v515_v44 }
 0x1e2   : > { %v555_v60 = vmul.f32 %v552_v53, %v549_v56 }
 0x1e3   : > { %v538_v48 = vsub.f32 1.0, %v535_v29  ;;  %v521_v49 = vmul.f32 %v518_v46, %v493_v13 }
 0x1e5   : > { %v544_v51 = vsub.f32 0.0, %v538_v48  ;;  %v536_v52 = vmul.f32 %v748_v50, %v521_v49 }
 0x1e7   : > { %v547_v54 = vsel %vm541_vm9, %v538_v48, %v544_v51  ;;  %v539_v55 = vsub.f32 1.0, %v536_v52 }
 0x1e8   : > { %v553_v58 = vadd.f32 1.0, %v547_v54 }
 0x1e9   : > { %v545_v59 = vsub.f32 0.0, %v539_v55 }
 0x1ea   : > { %v556_v17 = vmul.f32 %v553_v58, %v550_v57 }
 0x1eb   : > { %v548_v61 = vsel %vm542_vm10, %v539_v55, %v545_v59 }
 0x1ec   : > { %v697_v62 = vpack.c.bf16 %v556_v17, %v555_v60  ;;  %v554_v63 = vadd.f32 1.0, %v548_v61 }
 0x1ee   : > { %698 = vst [vmem:[%s277_s15] sm:$0xff] %v697_v62   ;;  %v557_v0 = vmul.f32 %v554_v63, %v551_v24 }
 0x1f0   : > { %v560_v16 = vpack.c.bf16 %v557_v0, %v557_v0 }
 0x1f2   : > { %563 = vst [vmem:[%s277_s15 + $0x8] sm:$0xf] %v560_v16 }
 0x1f3 PF: > { %s15_s20 = sadd.s32 1, %s771_s20   ;;  %s912_s18 = smov %s767_s19 }
 0x1f4   : > { %p12_p5 = scmp.ge.s32.totalorder %s15_s20, 4   ;;  %s913_s19 = smov %s915_s21 }
 0x1f6   :  { %14 = sbr.rel (!%p12_p5) target bundleno = 2 (0x2), region = 80 }

// kernel: _forward_core.35
= control target key start
LH: loop header
LB: loop body
LE: loop exit
PB: predicated region body
PF: predicated region fallthrough
CT: control target
= control target key end

     0   :  { %s649_s15 = smov 0   ;;  %s651_s16 = smov 0   ;;  %s716_s0 = inlined_call_operand.vmem [shape: bf16[48,128], index: 0, kind: input, shape index: {}]   ;;  %s717_s1 = inlined_call_operand.vmem [shape: bf16[128,128], index: 1, kind: input, shape index: {}]   ;;  %s718_s2 = inlined_call_operand.vmem [shape: f32[1,128], index: 2, kind: input, shape index: {}]   ;;  %s719_s3 = inlined_call_operand.vmem [shape: f32[48,128], index: 3, kind: input, shape index: {}]   ;;  %s720_s4 = inlined_call_operand.vmem [shape: f32[48,128], index: 4, kind: output, shape index: {}]  }
   0x1   :  { %s653_s17 = smov 0  }
   0x2 LB: > { %s26_s18 = sadd.s32 1, %s618_s16  ;;  %p516_p0 = scmp.ge.s32.totalorder %s622_s17, 1  ;;  %s622_s17 = sphi %s653_s17, %s14_s17   ;;  %s618_s16 = sphi %s651_s16, %s722_s16   ;;  %s614_s15 = sphi %s649_s15, %s721_s15  }
   0x3   : > { %p28_p1 = scmp.ge.s32.totalorder %s26_s18, 2  ;;  %p210_p2 = scmp.lt.s32.totalorder %s622_s17, 3 }
   0x5   : > { %s724_s18 = smov (%p28_p1, %s26_s18), 0  ;;  %p211_p3 = pnand %p516_p0, %p210_p2 }
   0x6   : > { %s254_s23 = smul.u32 (!%p211_p3), 3, %s614_s15 }
   0x7   : > { %214 = sbr.rel (%p211_p3) target bundleno = 183 (0xb7), region = 36 }
   0x8   : > { %p255_p4 = scmp.lt.s32.totalorder (!%p211_p3), %s254_s23, 5 }
   0xc   : > { %v566_v0 = vld [vmem:[%s717_s1 + $0x38] sm:$0xff]  ;;  %v565_v1 = vld [vmem:[%s717_s1 + $0x30] sm:$0xff]  ;;  %v564_v2 = vld [vmem:[%s717_s1 + $0x28] sm:$0xff]  ;;  %s726_s23 = smov (!%p255_p4, %s254_s23), 5 }
   0xd   : > { %366 = vmatpush.bf16.msra.mxu0 %v566_v0  ;;  %567 = vmatpush.bf16.msra.mxu1 %v566_v0  ;;  %v563_v3 = vld [vmem:[%s717_s1 + $0x20] sm:$0xff]  ;;  %v562_v4 = vld [vmem:[%s717_s1 + $0x18] sm:$0xff]  ;;  %s517_s30 = sshll.u32 %s726_s23, 2  ;;  %v561_v5 = vld [vmem:[%s717_s1 + $0x10] sm:$0xff]  ;;  %s518_s14 = sshll.u32 %s726_s23, 3 }
   0xe   : > { %s258_s9 = scalar_lea.vmem %s716_s0, %s517_s30  ;;  %v560_v6 = vld [vmem:[%s717_s1 + $0x8] sm:$0xff]  ;;  %v559_v9 = vld [vmem:[%s717_s1] sm:$0xff]  ;;  %s274_s20 = scalar_lea.vmem %s719_s3, %s518_s14 }
   0xf   : > { %v287_v7 = vld [vmem:[%s258_s9 + $0x8] sm:$0xf]  ;;  %v558_v10 = vld [vmem:[%s258_s9] sm:$0xff]  ;;  %s283_s26 = scalar_lea.vmem %s720_s4, %s518_s14  ;;  %v386_v22 = vld [vmem:[%s274_s20 + $0x10] sm:$0xff] }
  0x10   : > { %v313_v8 = vunpack.c.l.b16 %v287_v7  ;;  %v599_v12 = vld [vmem:[%s718_s2] ss:$0 sm:$0xff]  ;;  %v385_v20 = vld [vmem:[%s274_s20 + $0x8] sm:$0xff] }
  0x11   : > { %367 = vmatpush.bf16.msra.mxu0 %v565_v1  ;;  %568 = vmatpush.bf16.msra.mxu1 %v565_v1  ;;  %v384_v14 = vld [vmem:[%s274_s20] sm:$0xff] }
  0x12   : > { %v315_v11 = vpack.c.b16 %v313_v8, %v313_v8 }
  0x15   : > { %368 = vmatpush.bf16.msra.mxu0 %v564_v2  ;;  %569 = vmatpush.bf16.msra.mxu1 %v564_v2 }
  0x19   : > { %369 = vmatpush.bf16.msra.mxu0 %v563_v3  ;;  %570 = vmatpush.bf16.msra.mxu1 %v563_v3 }
  0x1d   : > { %370 = vmatpush.bf16.msra.mxu0 %v562_v4  ;;  %571 = vmatpush.bf16.msra.mxu1 %v562_v4 }
  0x21   : > { %371 = vmatpush.bf16.msra.mxu0 %v561_v5  ;;  %572 = vmatpush.bf16.msra.mxu1 %v561_v5 }
  0x25   : > { %372 = vmatpush.bf16.msra.mxu0 %v560_v6  ;;  %573 = vmatpush.bf16.msra.mxu1 %v560_v6 }
  0x29   : > { %373 = vmatpush.bf16.msra.mxu0 %v559_v9  ;;  %574 = vmatpush.bf16.msra.mxu1 %v559_v9 }
  0x2c   : > { %374 = vmatmul.bf16.vlgmr.msra.gmra.mxu0 %v558_v10  ;;  %379 = vmatmul.bf16.vlgmr.msra.gmra.mxu1 %v315_v11 }
  0xa9   : > { %v375_v13 = vpop.f32.mrf.mxu0  ;;  %v380_v15 = vpop.f32.mrf.mxu1 }
  0xaa   : > { %v376_v16 = vadd.f32 %v599_v12, %v375_v13  ;;  %v381_v18 = vadd.f32 %v599_v12, %v380_v15 }
  0xac   : > { %v387_v17 = vadd.f32 %v384_v14, %v376_v16  ;;  %v389_v25 = vadd.f32 %v386_v22, %v381_v18 }
  0xae   : > { %390 = vst [vmem:[%s283_s26] sm:$0xff] %v387_v17 }
  0xaf   : > { %392 = vst [vmem:[%s283_s26 + $0x10] sm:$0xff] %v389_v25 }
  0xb1   : > { %v377_v19 = vpop.f32.mrf.mxu0  ;;  %v382_v21 = vpop.f32.mrf.mxu1 }
  0xb2   : > { %v378_v23 = vadd.f32 %v599_v12, %v377_v19 }
  0xb4   : > { %v388_v24 = vadd.f32 %v385_v20, %v378_v23 }
  0xb6   : > { %391 = vst [vmem:[%s283_s26 + $0x8] sm:$0xff] %v388_v24 }
  0xb7 PF: > { %s14_s17 = sadd.s32 1, %s622_s17   ;;  %s721_s15 = smov %s618_s16 }
  0xb8   : > { %p11_p5 = scmp.ge.s32.totalorder %s14_s17, 4   ;;  %s722_s16 = smov %s724_s18 }
  0xba   :  { %13 = sbr.rel (!%p11_p5) target bundleno = 2 (0x2), region = 75 }

// kernel: _forward_core.36
= control target key start
LH: loop header
LB: loop body
LE: loop exit
PB: predicated region body
PF: predicated region fallthrough
CT: control target
= control target key end

     0   :  { %s734_s18 = smov 0   ;;  %s736_s19 = smov 0   ;;  %s832_s0 = inlined_call_operand.vmem [shape: f32[48,32], index: 0, kind: input, shape index: {}]   ;;  %s833_s1 = inlined_call_operand.vmem [shape: f32[1,32], index: 1, kind: input, shape index: {}]   ;;  %s834_s2 = inlined_call_operand.vmem [shape: f32[1,32], index: 2, kind: input, shape index: {}]   ;;  %s835_s3 = inlined_call_operand.vmem [shape: bf16[32,256], index: 3, kind: input, shape index: {}]   ;;  %s836_s4 = inlined_call_operand.vmem [shape: f32[1,256], index: 4, kind: input, shape index: {}]   ;;  %s837_s5 = inlined_call_operand.vmem [shape: f32[48,256], index: 5, kind: output, shape index: {}]  }
   0x1   :  { %s738_s20 = smov 0  }
   0x2 LB: > { %s27_s21 = sadd.s32 1, %s697_s19  ;;  %p604_p0 = scmp.ge.s32.totalorder %s701_s20, 1  ;;  %s701_s20 = sphi %s738_s20, %s15_s20   ;;  %s697_s19 = sphi %s736_s19, %s839_s19   ;;  %s693_s18 = sphi %s734_s18, %s838_s18  }
   0x3   : > { %p29_p1 = scmp.ge.s32.totalorder %s27_s21, 2  ;;  %p223_p2 = scmp.lt.s32.totalorder %s701_s20, 3 }
   0x5   : > { %s841_s21 = smov (%p29_p1, %s27_s21), 0  ;;  %p224_p3 = pnand %p604_p0, %p223_p2 }
   0x6   : > { %s265_s22 = smul.u32 (!%p224_p3), 3, %s693_s18 }
   0x7   : > { %227 = sbr.rel (%p224_p3) target bundleno = 448 (0x1c0), region = 40 }
   0x8   : > { %p266_p4 = scmp.lt.s32.totalorder (!%p224_p3), %s265_s22, 5 }
   0xc   : > { %s843_s22 = smov (!%p266_p4, %s265_s22), 5  ;;  %vm302_vm0 = vcmask 261120   ;;  %v703_v6 = vmov 32.0   ;;  %v622_v30 = vld [vmem:[%s835_s3 + $0x10] sm:$0xf]  ;;  %vm393_vm6 = vcmask 257024  }
   0xd   : > { %s605_s23 = sshll.u32 %s843_s22, 3  ;;  %671 = vrcp.f32 %v703_v6  ;;  %v639_v31 = vld [vmem:[%s835_s3 + $0x14] sm:$0xf0]  ;;  %v638_v32 = vld [vmem:[%s835_s3 + $0x14] sm:$0xf]  ;;  %s634_s28 = sshll.u32 %s843_s22, 4 }
   0xe   : > { %s269_s26 = scalar_lea.vmem %s832_s0, %s605_s23  ;;  %v623_v33 = vor.u32 %v639_v31, %v622_v30  ;;  %v624_v34 = vld [vmem:[%s835_s3 + $0x18] sm:$0xf0]  ;;  %v614_v37 = vld [vmem:[%s835_s3] sm:$0xf]  ;;  %v637_v38 = vld [vmem:[%s835_s3 + $0x4] sm:$0xf0]  ;;  %s291_s6 = scalar_lea.vmem %s837_s5, %s634_s28 }
   0xf   : > { %v301_v0 = vld [vmem:[%s269_s26 + $0x10] sm:$0xff]  ;;  %v300_v1 = vld [vmem:[%s269_s26 + $0x8] sm:$0xff]  ;;  %v299_v4 = vld [vmem:[%s269_s26] sm:$0xff]  ;;  %v627_v36 = vor.u32 %v638_v32, %v624_v34  ;;  %v615_v40 = vor.u32 %v637_v38, %v614_v37 }
  0x10   : > { %v309_v2 = vsel %vm302_vm0, %v301_v0, 0.0  ;;  %v306_v3 = vsel %vm302_vm0, %v300_v1, 0.0  ;;  %v303_v5 = vsel %vm302_vm0, %v299_v4, 0.0  ;;  %640 = vmatpush.bf16.msra.mxu2 %v623_v33  ;;  %451 = vmatpush.bf16.msra.mxu0 %v623_v33  ;;  %v636_v39 = vld [vmem:[%s835_s3 + $0x4] sm:$0xf] }
  0x11   : > { %310 = vadd.xlane.f32.xlu0 %v309_v2  ;;  %307 = vadd.xlane.f32.xlu1 %v306_v3  ;;  %v616_v41 = vld [vmem:[%s835_s3 + $0x8] sm:$0xf0]  ;;  %v669_v57 = vld [vmem:[%s833_s1] ss:$0 sm:$0xff] }
  0x12   : > { %642 = vmatpush.bf16.msra.mxu3 %v627_v36  ;;  %469 = vmatpush.bf16.msra.mxu1 %v627_v36  ;;  %v619_v42 = vor.u32 %v636_v39, %v616_v41  ;;  %v670_v60 = vld [vmem:[%s834_s2] ss:$0 sm:$0xff] }
  0x13   : > { %v672_v7 = vpop.eup %671 }
  0x14   : > { %v313_v8 = vmul.f32 32.0, %v672_v7  ;;  %vm317_vm1 = vweird.f32 %v672_v7  ;;  %641 = vmatpush.bf16.msra.mxu2 %v615_v40  ;;  %452 = vmatpush.bf16.msra.mxu0 %v615_v40 }
  0x16   : > { %v314_v9 = vsub.f32 1.0, %v313_v8  ;;  %643 = vmatpush.bf16.msra.mxu3 %v619_v42  ;;  %470 = vmatpush.bf16.msra.mxu1 %v619_v42 }
  0x18   : > { %v315_v10 = vmul.f32 %v672_v7, %v314_v9 }
  0x19   : > { %304 = vadd.xlane.f32.xlu0 %v303_v5 }
  0x1a   : > { %v316_v11 = vadd.f32 %v672_v7, %v315_v10 }
  0x1c   : > { %v318_v12 = vsel %vm317_vm1, %v672_v7, %v316_v11 }
  0x84   : > { %v311_v13 = vpop.xlane.xlu0 %310  ;;  %v308_v17 = vpop.xlane.xlu1 %307 }
  0x85   : > { %v321_v14 = vmul.f32 %v318_v12, %v311_v13  ;;  %v320_v21 = vmul.f32 %v318_v12, %v308_v17 }
  0x87   : > { %v761_v15 = vsub.f32 %v301_v0, %v321_v14  ;;  %v768_v23 = vsub.f32 %v300_v1, %v320_v21 }
  0x89   : > { %v327_v16 = vmul.f32 %v761_v15, %v761_v15  ;;  %v326_v26 = vmul.f32 %v768_v23, %v768_v23 }
  0x8b   : > { %v334_v18 = vsel %vm302_vm0, %v327_v16, 0.0  ;;  %v331_v27 = vsel %vm302_vm0, %v326_v26, 0.0 }
  0x8c   : > { %335 = vadd.xlane.f32.xlu1 %v334_v18  ;;  %v305_v19 = vpop.xlane.xlu0 %304 }
  0x8d   : > { %v319_v20 = vmul.f32 %v318_v12, %v305_v19 }
  0x8f   : > { %v766_v22 = vsub.f32 %v299_v4, %v319_v20 }
  0x91   : > { %v325_v24 = vmul.f32 %v766_v22, %v766_v22 }
  0x93   : > { %v328_v25 = vsel %vm302_vm0, %v325_v24, 0.0 }
  0x94   : > { %329 = vadd.xlane.f32.xlu2 %v328_v25 }
  0x9c   : > { %332 = vadd.xlane.f32.xlu2 %v331_v27 }
  0xff   : > { %v336_v28 = vpop.xlane.xlu1 %335 }
 0x100   : > { %v339_v29 = vmul.f32 %v336_v28, %v318_v12 }
 0x102   : > { %v342_v35 = vadd.f32 1e-05, %v339_v29 }
 0x104   : > { %673 = vrsqrt.f32 %v342_v35  ;;  %vm369_vm3 = vweird.f32 %v342_v35 }
 0x107   : > { %v330_v43 = vpop.xlane.xlu2 %329 }
 0x108   : > { %v337_v44 = vmul.f32 %v330_v43, %v318_v12 }
 0x10a   : > { %v674_v45 = vpop.eup %673  ;;  %v340_v46 = vadd.f32 1e-05, %v337_v44 }
 0x10b   : > { %v364_v47 = vmul.f32 %v674_v45, %v342_v35  ;;  %vm370_vm2 = vweird.f32 %v674_v45 }
 0x10c   : > { %675 = vrsqrt.f32 %v340_v46  ;;  %vm371_vm4 = vmor %vm369_vm3, %vm370_vm2  ;;  %vm349_vm7 = vweird.f32 %v340_v46 }
 0x10d   : > { %v365_v48 = vmul.f32 %v674_v45, %v364_v47 }
 0x10f   : > { %v366_v49 = vmul.f32 0.5, %v365_v48  ;;  %v333_v50 = vpop.xlane.xlu2 %332 }
 0x110   : > { %v338_v51 = vmul.f32 %v333_v50, %v318_v12 }
 0x111   : > { %v367_v52 = vsub.f32 1.5, %v366_v49 }
 0x112   : > { %v676_v53 = vpop.eup %675  ;;  %v341_v54 = vadd.f32 1e-05, %v338_v51 }
 0x113   : > { %v368_v55 = vmul.f32 %v674_v45, %v367_v52  ;;  %v344_v56 = vmul.f32 %v676_v53, %v340_v46  ;;  %vm350_vm5 = vweird.f32 %v676_v53 }
 0x114   : > { %677 = vrsqrt.f32 %v341_v54  ;;  %vm351_vm8 = vmor %vm349_vm7, %vm350_vm5  ;;  %vm359_vm10 = vweird.f32 %v341_v54 }
 0x115   : > { %v372_v58 = vsel %vm371_vm4, %v674_v45, %v368_v55  ;;  %v345_v59 = vmul.f32 %v676_v53, %v344_v56 }
 0x116   : > { %v375_v61 = vmul.f32 %v372_v58, %v761_v15 }
 0x117   : > { %v346_v62 = vmul.f32 0.5, %v345_v59 }
 0x118   : > { %v382_v63 = vmul.f32 %v669_v57, %v375_v61 }
 0x119   : > { %v347_v0 = vsub.f32 1.5, %v346_v62 }
 0x11a   : > { %v678_v1 = vpop.eup %677  ;;  %v389_v2 = vadd.f32 %v670_v60, %v382_v63 }
 0x11b   : > { %v348_v3 = vmul.f32 %v676_v53, %v347_v0  ;;  %v354_v4 = vmul.f32 %v678_v1, %v341_v54  ;;  %vm360_vm9 = vweird.f32 %v678_v1 }
 0x11c   : > { %v392_v5 = vpack.c.bf16 %v389_v2, %v389_v2  ;;  %vm361_vm11 = vmor %vm359_vm10, %vm360_vm9 }
 0x11d   : > { %v352_v6 = vsel %vm351_vm8, %v676_v53, %v348_v3  ;;  %v355_v7 = vmul.f32 %v678_v1, %v354_v4 }
 0x11e   : > { %396 = vst.msk [vmem:[#allocation2 + $0x8] sm:$0xf] %vm393_vm6, %v392_v5  ;;  %v373_v8 = vmul.f32 %v352_v6, %v766_v22 }
 0x11f   : > { %v356_v9 = vmul.f32 0.5, %v355_v7 }
 0x120   : > { %v380_v10 = vmul.f32 %v669_v57, %v373_v8 }
 0x121   : > { %v357_v11 = vsub.f32 1.5, %v356_v9 }
 0x122   : > { %v387_v12 = vadd.f32 %v670_v60, %v380_v10 }
 0x123   : > { %v358_v13 = vmul.f32 %v678_v1, %v357_v11 }
 0x124   : > { %v390_v14 = vpack.c.bf16 %v387_v12, %v387_v12 }
 0x125   : > { %v362_v15 = vsel %vm361_vm11, %v678_v1, %v358_v13  ;;  %v399_v16 = vld [vmem:[#allocation2 + $0x8] sm:$0xf] }
 0x126   : > { %394 = vst.msk [vmem:[#allocation2] sm:$0xf] %vm393_vm6, %v390_v14  ;;  %v374_v17 = vmul.f32 %v362_v15, %v768_v23  ;;  %v415_v18 = vunpack.c.l.b16 %v399_v16  ;;  %v404_v23 = vld [vmem:[%s836_s4] sm:$0x3] }
 0x127   : > { %v406_v27 = vperm.slane %v404_v23, 0  ;;  %v407_v28 = vperm.slane %v404_v23, 1 }
 0x128   : > { %v381_v19 = vmul.f32 %v669_v57, %v374_v17  ;;  %v417_v20 = vpack.c.b16 %v415_v18, %v415_v18 }
 0x12a   : > { %v388_v21 = vadd.f32 %v670_v60, %v381_v19  ;;  %629 = vmatmul.msk.bf16.vlgmr.msra.gmra.mxu2 %vm302_vm0, %v417_v20  ;;  %631 = vmatmul.msk.bf16.vlgmr.msra.gmra.mxu3 %vm302_vm0, %v417_v20 }
 0x12c   : > { %v391_v22 = vpack.c.bf16 %v388_v21, %v388_v21 }
 0x12e   : > { %395 = vst.msk [vmem:[#allocation2 + $0x4] sm:$0xf] %vm393_vm6, %v391_v22 }
 0x135   : > { %v635_v24 = vld [vmem:[#allocation2] sm:$0xff] }
 0x136   : > { %628 = vmatmul.msk.bf16.vlgmr.msra.gmra.mxu0 %vm302_vm0, %v635_v24  ;;  %630 = vmatmul.msk.bf16.vlgmr.msra.gmra.mxu1 %vm302_vm0, %v635_v24 }
 0x1ad   : > { %v459_v25 = vpop.f32.mrf.mxu2  ;;  %v477_v26 = vpop.f32.mrf.mxu3 }
 0x1ae   : > { %v460_v39 = vadd.f32 %v459_v25, %v406_v27  ;;  %v478_v40 = vadd.f32 %v477_v26, %v407_v28 }
 0x1b0   : > { %485 = vst [vmem:[%s291_s6 + $0x20] sm:$0xff] %v460_v39 }
 0x1b1   : > { %486 = vst [vmem:[%s291_s6 + $0x28] sm:$0xff] %v478_v40 }
 0x1b3   : > { %v454_v29 = vpop.f32.mrf.mxu0  ;;  %v472_v30 = vpop.f32.mrf.mxu1 }
 0x1b4   : > { %v455_v31 = vadd.f32 %v454_v29, %v406_v27  ;;  %v473_v33 = vadd.f32 %v472_v30, %v407_v28 }
 0x1b5   : > { %v461_v32 = vpop.f32.mrf.mxu2  ;;  %v479_v34 = vpop.f32.mrf.mxu3 }
 0x1b6   : > { %481 = vst [vmem:[%s291_s6] sm:$0xff] %v455_v31 }
 0x1b7   : > { %482 = vst [vmem:[%s291_s6 + $0x8] sm:$0xff] %v473_v33 }
 0x1bb   : > { %v456_v35 = vpop.f32.mrf.mxu0  ;;  %v474_v36 = vpop.f32.mrf.mxu1 }
 0x1bc   : > { %v457_v37 = vadd.f32 %v456_v35, %v406_v27  ;;  %v475_v38 = vadd.f32 %v474_v36, %v407_v28 }
 0x1be   : > { %483 = vst [vmem:[%s291_s6 + $0x10] sm:$0xff] %v457_v37 }
 0x1bf   : > { %484 = vst [vmem:[%s291_s6 + $0x18] sm:$0xff] %v475_v38 }
 0x1c0 PF: > { %s15_s20 = sadd.s32 1, %s701_s20   ;;  %s838_s18 = smov %s697_s19 }
 0x1c1   : > { %p12_p5 = scmp.ge.s32.totalorder %s15_s20, 4   ;;  %s839_s19 = smov %s841_s21 }
 0x1c3   :  { %14 = sbr.rel (!%p12_p5) target bundleno = 2 (0x2), region = 80 }

// kernel: _forward_core.37
= control target key start
LH: loop header
LB: loop body
LE: loop exit
PB: predicated region body
PF: predicated region fallthrough
CT: control target
= control target key end

     0   :  { %v189_v2 = vmov 0   ;;  %s287_s0 = inlined_call_operand.vmem [shape: f32[32,192], index: 0, kind: input, shape index: {}]   ;;  %s288_s1 = inlined_call_operand.vmem [shape: f32[32,192], index: 1, kind: input, shape index: {}]   ;;  %s289_s2 = inlined_call_operand.vmem [shape: f32[32,1], index: 2, kind: input, shape index: {}]   ;;  %s290_s3 = inlined_call_operand.hbm [shape: f32[1,1], index: 3, kind: output, shape index: {}]  }
   0x1   :  { %v59_v0 = vld [vmem:[%s289_s2 + $0x10] sm:$0xff]  ;;  %v57_v1 = vld [vmem:[%s289_s2] sm:$0xff]  ;;  %162 = vset.pattern.permute.xlu1 %v189_v2  ;;  %161 = vset.pattern.permute.xlu0 %v189_v2 }
   0x2   :  { %8 = vsyncpa [#allocation4], 0  ;;  %73 = vperm.xlu1 %162, %v59_v0   ;;  %63 = vperm.xlu0 %161, %v57_v1   ;;  %v60_v3 = vld [vmem:[%s289_s2 + $0x18] sm:$0xff]  ;;  %v58_v4 = vld [vmem:[%s289_s2 + $0x8] sm:$0xff]  ;;  %v19_v5 = vlaneseq  ;;  %v190_v7 = vmov 0.0   ;;  %vm98_vm1 = vcmask 523264  }
   0x3   :  { %v24_v8 = vld [vmem:[%s287_s0] sm:$0xff]  ;;  %v25_v9 = vld [vmem:[%s287_s0 + $0x8] sm:$0xff]  ;;  %v26_v14 = vld [vmem:[%s287_s0 + $0x10] sm:$0xff]  ;;  %vm115_vm2 = vcmask 1040384   ;;  %vm134_vm3 = vcmask 516096   ;;  %s149_s25 = sshll.u32 %s290_s3, 4  ;;  %s150_s25 = int_to_ptr.hbm [resolvable:$true] %s149_s25 }
   0x4   :  { %vm224_vm0 = vcmp.lt.s32.totalorder %v19_v5, 192  ;;  %v32_v10 = vld [vmem:[%s288_s1] sm:$0xff]  ;;  %v33_v11 = vld [vmem:[%s288_s1 + $0x8] sm:$0xff]  ;;  %v27_v15 = vld [vmem:[%s287_s0 + $0x18] sm:$0xff]  ;;  %vm140_vm4 = vcmask 0  }
   0x5   :  { %23 = vst.msk [vmem:[#allocation2] sm:$0x3] %vm224_vm0, %v190_v7  ;;  %v29_v12 = vld [vmem:[%s287_s0 + $0x28] sm:$0xff]  ;;  %v34_v16 = vld [vmem:[%s288_s1 + $0x10] sm:$0xff]  ;;  %v35_v17 = vld [vmem:[%s288_s1 + $0x18] sm:$0xff]  ;;  %v41_v20 = vsub.f32 %v25_v9, %v33_v11  ;;  %v40_v26 = vsub.f32 %v24_v8, %v32_v10 }
   0x6   :  { %v37_v13 = vld [vmem:[%s288_s1 + $0x28] sm:$0xff]  ;;  %v28_v18 = vld [vmem:[%s287_s0 + $0x20] sm:$0xff]  ;;  %v31_v23 = vld [vmem:[%s287_s0 + $0x38] sm:$0xff]  ;;  %v42_v29 = vsub.f32 %v26_v14, %v34_v16  ;;  %v43_v30 = vsub.f32 %v27_v15, %v35_v17 }
   0x7   :  { %v36_v19 = vld [vmem:[%s288_s1 + $0x20] sm:$0xff]  ;;  %v39_v24 = vld [vmem:[%s288_s1 + $0x38] sm:$0xff]  ;;  %v45_v25 = vsub.f32 %v29_v12, %v37_v13  ;;  %v30_v27 = vld [vmem:[%s287_s0 + $0x30] sm:$0xff]  ;;  %v50_v32 = vmul.f32 %v41_v20, %v41_v20  ;;  %v49_v36 = vmul.f32 %v40_v26, %v40_v26  ;;  %s191_s0 = smov [#allocation3]  }
   0x8   :  { %v38_v28 = vld [vmem:[%s288_s1 + $0x30] sm:$0xff]  ;;  %v44_v31 = vsub.f32 %v28_v18, %v36_v19  ;;  %v47_v33 = vsub.f32 %v31_v23, %v39_v24  ;;  %v51_v37 = vmul.f32 %v42_v29, %v42_v29  ;;  %v52_v38 = vmul.f32 %v43_v30, %v43_v30  ;;  %s147_s1 = sshll.u32 %s191_s0, 4  ;;  %s148_s1 = int_to_ptr.vmem [resolvable:$true] %s147_s1 }
   0x9   :  { %v46_v34 = vsub.f32 %v30_v27, %v38_v28  ;;  %v54_v35 = vmul.f32 %v45_v25, %v45_v25 }
   0xa   :  { %78 = vperm.xlu1 %162, %v60_v3   ;;  %68 = vperm.xlu0 %161, %v58_v4   ;;  %v53_v39 = vmul.f32 %v44_v31, %v44_v31  ;;  %v56_v41 = vmul.f32 %v47_v33, %v47_v33 }
   0xb   :  { %v55_v43 = vmul.f32 %v46_v34, %v46_v34 }
   0xc   :  { %v48_v10 = vld [vmem:[#allocation2] sm:$0x3] }
  0x74   :  { %v74_v21 = vpop.permute.xlu1 %73  ;;  %v64_v22 = vpop.permute.xlu0 %63 }
  0x75   :  { %v82_v40 = vmul.f32 %v64_v22, %v50_v32  ;;  %v86_v45 = vmul.f32 %v74_v21, %v54_v35  ;;  %v81_v46 = vmul.f32 %v64_v22, %v49_v36  ;;  %v85_v49 = vmul.f32 %v74_v21, %v53_v39 }
  0x77   :  { %v99_v50 = vsel %vm98_vm1, %v82_v40, 0.0  ;;  %v102_v55 = vsel %vm98_vm1, %v86_v45, 0.0 }
  0x7c   :  { %v79_v42 = vpop.permute.xlu1 %78  ;;  %v69_v44 = vpop.permute.xlu0 %68 }
  0x7d   :  { %v83_v47 = vmul.f32 %v69_v44, %v51_v37  ;;  %v84_v48 = vmul.f32 %v69_v44, %v52_v38  ;;  %v88_v51 = vmul.f32 %v79_v42, %v56_v41  ;;  %v87_v56 = vmul.f32 %v79_v42, %v55_v43 }
  0x7f   :  { %v89_v52 = vadd.f32 %v83_v47, %v81_v46  ;;  %v100_v53 = vsel %vm98_vm1, %v84_v48, 0.0  ;;  %v104_v59 = vsel %vm98_vm1, %v88_v51, 0.0 }
  0x80   :  { %v101_v54 = vadd.f32 %v100_v53, %v99_v50 }
  0x81   :  { %v90_v57 = vadd.f32 %v89_v52, %v85_v49 }
  0x82   :  { %v103_v58 = vadd.f32 %v102_v55, %v101_v54 }
  0x83   :  { %v91_v60 = vadd.f32 %v90_v57, %v87_v56 }
  0x84   :  { %v105_v61 = vadd.f32 %v104_v59, %v103_v58 }
  0x85   :  { %v92_v62 = vrot.slane %v91_v60, 4 }
  0x86   :  { %v106_v63 = vrot.slane %v105_v61, 4 }
  0x87   :  { %v93_v0 = vadd.f32 %v92_v62, %v91_v60 }
  0x88   :  { %v107_v1 = vadd.f32 %v106_v63, %v105_v61 }
  0x89   :  { %v94_v2 = vrot.slane %v93_v0, 2 }
  0x8a   :  { %v108_v3 = vrot.slane %v107_v1, 2 }
  0x8b   :  { %v95_v4 = vadd.f32 %v94_v2, %v93_v0 }
  0x8c   :  { %v109_v5 = vadd.f32 %v108_v3, %v107_v1 }
  0x8d   :  { %v96_v7 = vrot.slane %v95_v4, 1 }
  0x8e   :  { %v110_v8 = vrot.slane %v109_v5, 1 }
  0x8f   :  { %v97_v11 = vadd.f32 %v96_v7, %v95_v4 }
  0x90   :  { %v111_v9 = vadd.f32 %v110_v8, %v109_v5 }
  0x92   :  { %v114_v12 = vrot.slane %v111_v9, 7 }
  0x94   :  { %v116_v13 = vsel %vm115_vm2, %v97_v11, %v114_v12 }
  0x95   :  { %v118_v14 = vadd.f32 %v116_v13, %v48_v10 }
  0x97   :  { %123 = vst.msk [vmem:[#allocation2] sm:$0x3] %vm224_vm0, %v118_v14 }
  0x9e   :  { %v127_v15 = vld [vmem:[#allocation2] sm:$0x3] }
  0x9f   :  { %v129_v16 = vperm.slane %v127_v15, 0  ;;  %v130_v17 = vperm.slane %v127_v15, 1 }
  0xa1   :  { %v133_v18 = vsel %vm115_vm2, %v129_v16, 0.0  ;;  %v135_v19 = vsel %vm134_vm3, %v130_v17, 0.0 }
  0xa2   :  { %v136_v20 = vadd.f32 %v135_v19, %v133_v18 }
  0xa4   :  { %137 = vadd.xlane.f32.xlu2 %v136_v20 }
 0x117   :  { %v138_v21 = vpop.xlane.xlu2 %137 }
 0x118   :  { %v139_v22 = vmul.f32 0.0052083335, %v138_v21 }
 0x11a   :  { %141 = vst.msk [vmem:[#allocation3] sm:$0x1] %vm140_vm4, %v139_v22 }
 0x11b   :  { %152 = dma.vmem_to_hbm [thread:$0]  %s148_s1, 16, %s150_s25, [#allocation4]  }
 0x11c   :  { %187 = dma.done.wait [#allocation4], 16  }
 0x11d   :  { %188 = vsyncadd [#allocation4], 4294967280 }
 0x11e   :  { %157 = vsyncpa [#allocation4], 1 }

</bundles_post_ra>
